<compile_context>
chip_gen: v5e
topology: v5e:2x2
jax: 0.10.0
libtpu: 0.0.40
codegen_flags: <defaults>
</compile_context>

<pallas_src>
import jax
import jax.numpy as jnp
from jax import lax
from jax.experimental import pallas as pl
from jax.experimental.pallas import tpu as pltpu


def _round_up(x, m):
    return (x + m - 1) // m * m


def _plan_time_chunks(T, Bb, four_h, itemsize, budget_bytes):
    """Split the T timesteps into chunks whose projection scratch fits the budget."""
    per_step = Bb * four_h * itemsize
    tc = max(1, min(T, budget_bytes // max(per_step, 1)))
    return tuple((s, min(tc, T - s)) for s in range(0, T, tc))


def _pick_vmem_limit_bytes():
    """Generation-aware scoped-VMEM limit (~75% of physical, conservative fallback)."""
    phys = 64 * 1024 * 1024  # safe fallback (v7x-sized); v5e/v6e detect 128 MiB below
    try:
        info = pltpu.get_tpu_info()
        cap = getattr(info, "vmem_capacity_bytes", None)
        if cap:
            phys = int(cap)
    except Exception:
        pass
    return int(max(32 * 1024 * 1024, min(100 * 1024 * 1024, phys * 3 // 4)))


# -----------------------------------------------------------------------------
# Fused kernel factory
# -----------------------------------------------------------------------------
def _make_fused_kernel(num_layers, H, Bb, chunks):
    """Kernel: `num_layers` LSTM layers over all timesteps for one batch block of
    Bb rows, followed by the fused Linear + ReLU head on the last hidden state.

    Kernel args (in order):
      x_ref                      : (T, Bb, F)        layer-0 input, time-major
      [w_ih_t, w_hh_t, bias] * L : (in, 4H), (H, 4H), (1, 4H) per layer
      w_out_t, b_out             : (H, O), (1, O)
      out_ref                    : (Bb, O)
      gates_sc                   : (Tc_max*Bb, 4H)   compute-dtype scratch (chunked proj.)
      seq_sc...                  : (T*Bb, H)         compute-dtype ping-pong inter-layer acts
    """

    def kernel(*args):
        x_ref = args[0]
        layer_refs = args[1:1 + 3 * num_layers]
        wout_ref = args[1 + 3 * num_layers]
        bout_ref = args[2 + 3 * num_layers]
        out_ref = args[3 + 3 * num_layers]
        gates_ref = args[4 + 3 * num_layers]
        seq_refs = args[5 + 3 * num_layers:]

        F = x_ref.shape[-1]

        for layer in range(num_layers):
            wih_ref = layer_refs[3 * layer + 0]
            whh_ref = layer_refs[3 * layer + 1]
            b_ref = layer_refs[3 * layer + 2]
            is_last = layer == num_layers - 1
            in_seq_ref = None if layer == 0 else seq_refs[(layer - 1) % 2]
            out_seq_ref = None if is_last else seq_refs[layer % 2]

            h = jnp.zeros((Bb, H), jnp.float32)
            c = jnp.zeros((Bb, H), jnp.float32)

            for (c0, tc) in chunks:
                # ---- Hoisted input projection for this time chunk: one MXU matmul ----
                if layer == 0:
                    xin = x_ref[c0:c0 + tc, :, :].reshape(tc * Bb, F)
                else:
                    xin = in_seq_ref[c0 * Bb:(c0 + tc) * Bb, :]
                gates_ref[0:tc * Bb, :] = jnp.dot(
                    xin.astype(wih_ref.dtype), wih_ref[...],
                    preferred_element_type=jnp.float32).astype(gates_ref.dtype)

                def step(t, carry, c0=c0, whh_ref=whh_ref, b_ref=b_ref,
                         out_seq_ref=out_seq_ref):
                    h, c = carry
                    off = pl.multiple_of(t * Bb, Bb)
                    # Serial critical path: hidden matmul + gate elementwise only.
                    # W_hh is streamed from VMEM each step (NOT held live in vregs).
                    g = (jnp.dot(h.astype(whh_ref.dtype), whh_ref[...],
                                 preferred_element_type=jnp.float32)
                         + gates_ref[pl.ds(off, Bb), :].astype(jnp.float32)
                         + b_ref[...])
                    # i/f/o columns were pre-scaled by 0.5 offline, so one wide tanh
                    # gives sigmoid via 0.5*(1+tanh(x/2)); gate order is i | f | g | o,
                    # each block 128-lane aligned.
                    t_all = jnp.tanh(g)
                    i_g = 0.5 * (t_all[:, 0 * H:1 * H] + 1.0)
                    f_g = 0.5 * (t_all[:, 1 * H:2 * H] + 1.0)
                    g_g = t_all[:, 2 * H:3 * H]
                    o_g = 0.5 * (t_all[:, 3 * H:4 * H] + 1.0)
                    c_new = f_g * c + i_g * g_g
                    h_new = o_g * jnp.tanh(c_new)
                    if out_seq_ref is not None:
                        soff = pl.multiple_of((c0 + t) * Bb, Bb)
                        out_seq_ref[pl.ds(soff, Bb), :] = h_new.astype(out_seq_ref.dtype)
                    return h_new, c_new

                unroll = True if tc <= 32 else 8
                h, c = lax.fori_loop(0, tc, step, (h, c), unroll=unroll)

            if is_last:
                # ---- Fused head: Linear + ReLU on the last-timestep hidden state ----
                # TODO(synk): dropout (on LSTM outputs / between layers) is identity in
                # eval mode and intentionally not applied.
                y = jnp.dot(h.astype(wout_ref.dtype), wout_ref[...],
                            preferred_element_type=jnp.float32) + bout_ref[...]
                out_ref[...] = jnp.maximum(y, 0.0).astype(out_ref.dtype)

    return kernel


# -----------------------------------------------------------------------------
# Parameter packing: PyTorch layout -> padded / transposed / scaled kernel layout
# -----------------------------------------------------------------------------
def _pad_gate_blocks(w, H, H_pad, prescale_sigmoid=False):
    """w has 4*H along axis 0 in gate order i|f|g|o; pad each block to H_pad.
    If prescale_sigmoid, fold the 0.5 of sigmoid(x)=0.5*(1+tanh(x/2)) into i/f/o."""
    i_b, f_b, g_b, o_b = jnp.split(w, 4, axis=0)
    if prescale_sigmoid:
        i_b, f_b, o_b = 0.5 * i_b, 0.5 * f_b, 0.5 * o_b
    pad = [(0, H_pad - H)] + [(0, 0)] * (w.ndim - 1)
    return jnp.concatenate([jnp.pad(p, pad) for p in (i_b, f_b, g_b, o_b)], axis=0)


def prepare_kernel_params(raw, compute_dtype=jnp.bfloat16):
    H = raw["sizes"]["hidden"]
    O = raw["sizes"]["output"]
    H_pad = _round_up(H, 128)       # lane-align each gate block / hidden dim
    O_pad = _round_up(O, 128)       # lane-dense head output store

    layers = []
    for l, lyr in enumerate(raw["lstm"]):
        in_dim = lyr["w_ih"].shape[1]
        in_pad = in_dim if l == 0 else H_pad
        w_ih = _pad_gate_blocks(lyr["w_ih"], H, H_pad, True)          # (4H_pad, in_dim)
        w_ih = jnp.pad(w_ih, ((0, 0), (0, in_pad - in_dim)))          # (4H_pad, in_pad)
        w_hh = _pad_gate_blocks(lyr["w_hh"], H, H_pad, True)          # (4H_pad, H)
        w_hh = jnp.pad(w_hh, ((0, 0), (0, H_pad - H)))                # (4H_pad, H_pad)
        bias = _pad_gate_blocks(lyr["b_ih"] + lyr["b_hh"], H, H_pad, True)
        layers.append({
            "w_ih_t": w_ih.T.astype(compute_dtype),                   # (in_pad, 4H_pad)
            "w_hh_t": w_hh.T.astype(compute_dtype),                   # (H_pad, 4H_pad)
            "bias": bias[None, :].astype(jnp.float32),                # (1, 4H_pad) f32
        })

    w_out = jnp.pad(raw["w_out"], ((0, O_pad - O), (0, H_pad - H)))   # (O_pad, H_pad)
    b_out = jnp.pad(raw["b_out"], ((0, O_pad - O),))
    return {
        "layers": layers,
        "w_out_t": w_out.T.astype(compute_dtype),                     # (H_pad, O_pad)
        "b_out": b_out[None, :].astype(jnp.float32),                  # (1, O_pad)
        "H_pad": H_pad, "O_pad": O_pad, "O": O,
        "compute_dtype": compute_dtype,
    }


# -----------------------------------------------------------------------------
# Forward wrapper
# -----------------------------------------------------------------------------
def lstm_model_forward(x, kparams, *, batch_block=32,
                       gates_budget_bytes=4 * 1024 * 1024):
    """Eval-mode forward equivalent to LSTMModel.forward. x: (B, T, F)."""
    B, T, F = x.shape
    H_pad = kparams["H_pad"]
    O_pad = kparams["O_pad"]
    O = kparams["O"]
    dt = jnp.dtype(kparams["compute_dtype"])
    num_layers = len(kparams["layers"])

    # Sublane tile rows for the compute dtype: 8 for f32, 16 for bf16.  The
    # effective batch block is a multiple of that tile (full-tile stores, free
    # reshapes), grows toward `batch_block` for throughput batches, and shrinks
    # for tiny batches so we don't burn MXU rows on padding.
    sub = 8 * (4 // dt.itemsize)
    Bb = max(sub, min(_round_up(batch_block, sub), _round_up(B, sub)))
    B_pad = _round_up(B, Bb)

    # Time-chunk the hoisted projection scratch so VMEM is bounded independent of T.
    chunks = _plan_time_chunks(T, Bb, 4 * H_pad, dt.itemsize, gates_budget_bytes)
    tc_max = chunks[0][1]

    # One wrapper-side transpose+pad+cast pass over x (negligible at these sizes).
    # TODO(synk): for long sequences, store x time-major upstream / transpose in-kernel.
    x_tm = jnp.transpose(x, (1, 0, 2))                                # (T, B, F)
    x_tm = jnp.pad(x_tm, ((0, 0), (0, B_pad - B), (0, 0))).astype(dt)

    inputs = [x_tm]
    in_specs = [pl.BlockSpec((T, Bb, F), lambda b: (0, b, 0))]
    # Weights/biases: full-array blocks with constant index_map -> DMA'd once, no
    # re-fetch across batch blocks.  TODO(synk): single-buffer (pl.Buffered(1)) or
    # stream per-layer weights via pl.ANY for very large H / num_layers (v7x).
    for lyr in kparams["layers"]:
        for name in ("w_ih_t", "w_hh_t", "bias"):
            arr = lyr[name]
            inputs.append(arr)
            in_specs.append(pl.BlockSpec(arr.shape, lambda b: (0, 0)))
    for name in ("w_out_t", "b_out"):
        arr = kparams[name]
        inputs.append(arr)
        in_specs.append(pl.BlockSpec(arr.shape, lambda b: (0, 0)))

    n_seq = min(num_layers - 1, 2)  # ping-pong inter-layer activation buffers
    scratch_shapes = [pltpu.VMEM((tc_max * Bb, 4 * H_pad), dt)]
    scratch_shapes += [pltpu.VMEM((T * Bb, H_pad), dt) for _ in range(n_seq)]

    kernel = _make_fused_kernel(num_layers, H_pad, Bb, chunks)

    out_pad = pl.pallas_call(
        kernel,
        out_shape=jax.ShapeDtypeStruct((B_pad, O_pad), jnp.float32),
        grid=(B_pad // Bb,),
        in_specs=in_specs,
        out_specs=pl.BlockSpec((Bb, O_pad), lambda b: (b, 0)),
        scratch_shapes=scratch_shapes,
        compiler_params=pltpu.CompilerParams(
            dimension_semantics=("parallel",),       # batch blocks are independent
            vmem_limit_bytes=_pick_vmem_limit_bytes(),
        ),
    )(*inputs)
    return out_pad[:B, :O]


# -----------------------------------------------------------------------------
# Deterministic PyTorch-layout parameter init (uniform(-1/sqrt(H), 1/sqrt(H)))
# -----------------------------------------------------------------------------
def init_params(key, input_size, hidden_size, num_layers, output_size):
    k = 1.0 / float(hidden_size) ** 0.5
    layers = []
    for layer in range(num_layers):
        in_dim = input_size if layer == 0 else hidden_size
        key, k1, k2, k3, k4 = jax.random.split(key, 5)
        layers.append({
            "w_ih": jax.random.uniform(k1, (4 * hidden_size, in_dim), jnp.float32, -k, k),
            "w_hh": jax.random.uniform(k2, (4 * hidden_size, hidden_size), jnp.float32, -k, k),
            "b_ih": jax.random.uniform(k3, (4 * hidden_size,), jnp.float32, -k, k),
            "b_hh": jax.random.uniform(k4, (4 * hidden_size,), jnp.float32, -k, k),
        })
    key, k5, k6 = jax.random.split(key, 3)
    w_out = jax.random.uniform(k5, (output_size, hidden_size), jnp.float32, -k, k)
    b_out = jax.random.uniform(k6, (output_size,), jnp.float32, -k, k)
    return {
        "lstm": layers, "w_out": w_out, "b_out": b_out,
        "sizes": {"input": input_size, "hidden": hidden_size,
                  "layers": num_layers, "output": output_size},
    }


# -----------------------------------------------------------------------------
# Pure-JAX f32 reference (PyTorch semantics, eval mode)
# -----------------------------------------------------------------------------
def reference_forward(x, raw):
    H = raw["sizes"]["hidden"]
    B, T, _ = x.shape
    seq = x
    for lyr in raw["lstm"]:
        w_ih_t, w_hh_t = lyr["w_ih"].T, lyr["w_hh"].T
        bias = lyr["b_ih"] + lyr["b_hh"]
        h = jnp.zeros((B, H), jnp.float32)
        c = jnp.zeros((B, H), jnp.float32)
        outs = []
        for t in range(T):
            g = seq[:, t, :] @ w_ih_t + h @ w_hh_t + bias
            i_g = jax.nn.sigmoid(g[:, 0 * H:1 * H])
            f_g = jax.nn.sigmoid(g[:, 1 * H:2 * H])
            g_g = jnp.tanh(g[:, 2 * H:3 * H])
            o_g = jax.nn.sigmoid(g[:, 3 * H:4 * H])
            c = f_g * c + i_g * g_g
            h = o_g * jnp.tanh(c)
            outs.append(h)
        seq = jnp.stack(outs, axis=1)
    y = seq[:, -1, :] @ raw["w_out"].T + raw["b_out"]
    return jnp.maximum(y, 0.0)


# -----------------------------------------------------------------------------
if __name__ == "__main__":
    B, T = 2, 8
    input_size, hidden_size, num_layers, output_size = 4, 32, 2, 4

    key = jax.random.PRNGKey(0)
    key, xkey = jax.random.split(key)
    x = jax.random.normal(xkey, (B, T, input_size), jnp.float32)

    raw = init_params(key, input_size, hidden_size, num_layers, output_size)
    ref = jax.block_until_ready(reference_forward(x, raw))

    # 1) f32 matmul path: tight correctness check.
    kp_f32 = prepare_kernel_params(raw, compute_dtype=jnp.float32)
    out_f32 = jax.block_until_ready(lstm_model_forward(x, kp_f32))
    assert out_f32.shape == (B, output_size), out_f32.shape
    assert jnp.allclose(out_f32, ref, rtol=2e-3, atol=2e-3), (out_f32, ref)

    # 2) bf16 matmul-operand path (perf default: f32 accumulation + f32 gate math).
    kp_bf16 = prepare_kernel_params(raw, compute_dtype=jnp.bfloat16)
    out_bf16 = jax.block_until_ready(lstm_model_forward(x, kp_bf16))
    assert out_bf16.shape == (B, output_size), out_bf16.shape
    assert jnp.allclose(out_bf16, ref, rtol=2e-2, atol=2e-2), (out_bf16, ref)

    print("KERNEL_OK")
</pallas_src>

<mosaic_0001>
module attributes {stable_mosaic.version = 11 : i64} {
  func.func @kernel(%arg0: i32, %arg1: memref<8x8x4xf32, #tpu.memory_space<vmem>>, %arg2: memref<4x512xf32, #tpu.memory_space<vmem>>, %arg3: memref<128x512xf32, #tpu.memory_space<vmem>>, %arg4: memref<1x512xf32, #tpu.memory_space<vmem>>, %arg5: memref<128x512xf32, #tpu.memory_space<vmem>>, %arg6: memref<128x512xf32, #tpu.memory_space<vmem>>, %arg7: memref<1x512xf32, #tpu.memory_space<vmem>>, %arg8: memref<128x128xf32, #tpu.memory_space<vmem>>, %arg9: memref<1x128xf32, #tpu.memory_space<vmem>>, %arg10: memref<8x128xf32, #tpu.memory_space<vmem>>, %arg11: memref<64x512xf32, #tpu.memory_space<vmem>>, %arg12: memref<64x128xf32, #tpu.memory_space<vmem>>) attributes {dimension_semantics = [#tpu.dimension_semantics<parallel>], iteration_bounds = array<i64: 1>, scalar_prefetch = 0 : i64, scratch_operands = 2 : i64, tpu.core_type = #tpu.core_type<tc>, window_params = [{transform_indices = @transform_0, window_bounds = array<i64: 8, 8, 4>}, {pipeline_mode = #tpu.pipeline_mode<synchronous>, transform_indices = @transform_1, window_bounds = array<i64: 4, 512>}, {pipeline_mode = #tpu.pipeline_mode<synchronous>, transform_indices = @transform_2, window_bounds = array<i64: 128, 512>}, {pipeline_mode = #tpu.pipeline_mode<synchronous>, transform_indices = @transform_3, window_bounds = array<i64: 1, 512>}, {pipeline_mode = #tpu.pipeline_mode<synchronous>, transform_indices = @transform_4, window_bounds = array<i64: 128, 512>}, {pipeline_mode = #tpu.pipeline_mode<synchronous>, transform_indices = @transform_5, window_bounds = array<i64: 128, 512>}, {pipeline_mode = #tpu.pipeline_mode<synchronous>, transform_indices = @transform_6, window_bounds = array<i64: 1, 512>}, {pipeline_mode = #tpu.pipeline_mode<synchronous>, transform_indices = @transform_7, window_bounds = array<i64: 128, 128>}, {pipeline_mode = #tpu.pipeline_mode<synchronous>, transform_indices = @transform_8, window_bounds = array<i64: 1, 128>}, {transform_indices = @transform_9, window_bounds = array<i64: 8, 128>}]} {
    %cst = arith.constant 0.000000e+00 : f32
    %0 = vector.broadcast %cst : f32 to vector<8x128xf32>
    %cst_0 = arith.constant 0.000000e+00 : f32
    %1 = vector.broadcast %cst_0 : f32 to vector<8x128xf32>
    %c0 = arith.constant 0 : index
    %c0_1 = arith.constant 0 : index
    %c0_2 = arith.constant 0 : index
    %2 = vector.load %arg1[%c0, %c0_1, %c0_2] : memref<8x8x4xf32, #tpu.memory_space<vmem>>, vector<8x8x4xf32>
    %3 = vector.shape_cast %2 : vector<8x8x4xf32> to vector<64x4xf32>
    %c0_3 = arith.constant 0 : index
    %c0_4 = arith.constant 0 : index
    %4 = vector.load %arg2[%c0_3, %c0_4] : memref<4x512xf32, #tpu.memory_space<vmem>>, vector<4x512xf32>
    %cst_5 = arith.constant dense<0.000000e+00> : vector<64x512xf32>
    %5 = tpu.matmul %3, %4, %cst_5 {dimension_numbers = #tpu.dot_dimension_numbers<[1], [0], [0], [1], [0, 0, 1, 1], [], []>} : vector<64x4xf32>, vector<4x512xf32>, vector<64x512xf32> -> vector<64x512xf32>
    %c0_6 = arith.constant 0 : index
    %c0_7 = arith.constant 0 : index
    %6 = vector.load %arg11[%c0_6, %c0_7] : memref<64x512xf32, #tpu.memory_space<vmem>>, vector<64x512xf32>
    tpu.vector_store %arg11[%c0_6, %c0_7], %5 {strides = array<i32>} : memref<64x512xf32, #tpu.memory_space<vmem>>, vector<64x512xf32>,
    %c0_i32 = arith.constant 0 : i32
    %c8_i32 = arith.constant 8 : i32
    %7 = arith.muli %c0_i32, %c8_i32 : i32
    %8 = tpu.assume_multiple %7, 8 : i32
    %c0_8 = arith.constant 0 : index
    %c0_9 = arith.constant 0 : index
    %9 = vector.load %arg3[%c0_8, %c0_9] : memref<128x512xf32, #tpu.memory_space<vmem>>, vector<128x512xf32>
    %cst_10 = arith.constant dense<0.000000e+00> : vector<8x512xf32>
    %10 = tpu.matmul %0, %9, %cst_10 {dimension_numbers = #tpu.dot_dimension_numbers<[1], [0], [0], [1], [0, 0, 1, 1], [], []>} : vector<8x128xf32>, vector<128x512xf32>, vector<8x512xf32> -> vector<8x512xf32>
    %11 = arith.index_cast %8 : i32 to index
    %c0_11 = arith.constant 0 : index
    %12 = vector.load %arg11[%11, %c0_11] : memref<64x512xf32, #tpu.memory_space<vmem>>, vector<8x512xf32>
    %13 = arith.addf %10, %12 : vector<8x512xf32>
    %c0_12 = arith.constant 0 : index
    %c0_13 = arith.constant 0 : index
    %14 = vector.load %arg4[%c0_12, %c0_13] : memref<1x512xf32, #tpu.memory_space<vmem>>, vector<1x512xf32>
    %15 = vector.broadcast %14 : vector<1x512xf32> to vector<8x512xf32>
    %16 = arith.addf %13, %15 : vector<8x512xf32>
    %17 = math.tanh %16 : vector<8x512xf32>
    %18 = vector.extract_strided_slice %17 {offsets = [0, 0], sizes = [8, 128], strides = [1, 1]} : vector<8x512xf32> to vector<8x128xf32>
    %cst_14 = arith.constant 1.000000e+00 : f32
    %19 = vector.broadcast %cst_14 : f32 to vector<8x128xf32>
    %20 = arith.addf %18, %19 : vector<8x128xf32>
    %cst_15 = arith.constant 5.000000e-01 : f32
    %21 = vector.broadcast %cst_15 : f32 to vector<8x128xf32>
    %22 = arith.mulf %21, %20 : vector<8x128xf32>
    %23 = vector.extract_strided_slice %17 {offsets = [0, 128], sizes = [8, 128], strides = [1, 1]} : vector<8x512xf32> to vector<8x128xf32>
    %cst_16 = arith.constant 1.000000e+00 : f32
    %24 = vector.broadcast %cst_16 : f32 to vector<8x128xf32>
    %25 = arith.addf %23, %24 : vector<8x128xf32>
    %cst_17 = arith.constant 5.000000e-01 : f32
    %26 = vector.broadcast %cst_17 : f32 to vector<8x128xf32>
    %27 = arith.mulf %26, %25 : vector<8x128xf32>
    %28 = vector.extract_strided_slice %17 {offsets = [0, 256], sizes = [8, 128], strides = [1, 1]} : vector<8x512xf32> to vector<8x128xf32>
    %29 = vector.extract_strided_slice %17 {offsets = [0, 384], sizes = [8, 128], strides = [1, 1]} : vector<8x512xf32> to vector<8x128xf32>
    %cst_18 = arith.constant 1.000000e+00 : f32
    %30 = vector.broadcast %cst_18 : f32 to vector<8x128xf32>
    %31 = arith.addf %29, %30 : vector<8x128xf32>
    %cst_19 = arith.constant 5.000000e-01 : f32
    %32 = vector.broadcast %cst_19 : f32 to vector<8x128xf32>
    %33 = arith.mulf %32, %31 : vector<8x128xf32>
    %34 = arith.mulf %27, %1 : vector<8x128xf32>
    %35 = arith.mulf %22, %28 : vector<8x128xf32>
    %36 = arith.addf %34, %35 : vector<8x128xf32>
    %37 = math.tanh %36 : vector<8x128xf32>
    %38 = arith.mulf %33, %37 : vector<8x128xf32>
    %c0_i32_20 = arith.constant 0 : i32
    %39 = arith.addi %c0_i32_20, %c0_i32 : i32
    %c8_i32_21 = arith.constant 8 : i32
    %40 = arith.muli %39, %c8_i32_21 : i32
    %41 = tpu.assume_multiple %40, 8 : i32
    %42 = arith.index_cast %41 : i32 to index
    %c0_22 = arith.constant 0 : index
    %43 = vector.load %arg12[%42, %c0_22] : memref<64x128xf32, #tpu.memory_space<vmem>>, vector<8x128xf32>
    tpu.vector_store %arg12[%42, %c0_22], %38 {strides = array<i32>} : memref<64x128xf32, #tpu.memory_space<vmem>>, vector<8x128xf32>,
    %c1_i32 = arith.constant 1 : i32
    %c8_i32_23 = arith.constant 8 : i32
    %44 = arith.muli %c1_i32, %c8_i32_23 : i32
    %45 = tpu.assume_multiple %44, 8 : i32
    %c0_24 = arith.constant 0 : index
    %c0_25 = arith.constant 0 : index
    %46 = vector.load %arg3[%c0_24, %c0_25] : memref<128x512xf32, #tpu.memory_space<vmem>>, vector<128x512xf32>
    %cst_26 = arith.constant dense<0.000000e+00> : vector<8x512xf32>
    %47 = tpu.matmul %38, %46, %cst_26 {dimension_numbers = #tpu.dot_dimension_numbers<[1], [0], [0], [1], [0, 0, 1, 1], [], []>} : vector<8x128xf32>, vector<128x512xf32>, vector<8x512xf32> -> vector<8x512xf32>
    %48 = arith.index_cast %45 : i32 to index
    %c0_27 = arith.constant 0 : index
    %49 = vector.load %arg11[%48, %c0_27] : memref<64x512xf32, #tpu.memory_space<vmem>>, vector<8x512xf32>
    %50 = arith.addf %47, %49 : vector<8x512xf32>
    %c0_28 = arith.constant 0 : index
    %c0_29 = arith.constant 0 : index
    %51 = vector.load %arg4[%c0_28, %c0_29] : memref<1x512xf32, #tpu.memory_space<vmem>>, vector<1x512xf32>
    %52 = vector.broadcast %51 : vector<1x512xf32> to vector<8x512xf32>
    %53 = arith.addf %50, %52 : vector<8x512xf32>
    %54 = math.tanh %53 : vector<8x512xf32>
    %55 = vector.extract_strided_slice %54 {offsets = [0, 0], sizes = [8, 128], strides = [1, 1]} : vector<8x512xf32> to vector<8x128xf32>
    %cst_30 = arith.constant 1.000000e+00 : f32
    %56 = vector.broadcast %cst_30 : f32 to vector<8x128xf32>
    %57 = arith.addf %55, %56 : vector<8x128xf32>
    %cst_31 = arith.constant 5.000000e-01 : f32
    %58 = vector.broadcast %cst_31 : f32 to vector<8x128xf32>
    %59 = arith.mulf %58, %57 : vector<8x128xf32>
    %60 = vector.extract_strided_slice %54 {offsets = [0, 128], sizes = [8, 128], strides = [1, 1]} : vector<8x512xf32> to vector<8x128xf32>
    %cst_32 = arith.constant 1.000000e+00 : f32
    %61 = vector.broadcast %cst_32 : f32 to vector<8x128xf32>
    %62 = arith.addf %60, %61 : vector<8x128xf32>
    %cst_33 = arith.constant 5.000000e-01 : f32
    %63 = vector.broadcast %cst_33 : f32 to vector<8x128xf32>
    %64 = arith.mulf %63, %62 : vector<8x128xf32>
    %65 = vector.extract_strided_slice %54 {offsets = [0, 256], sizes = [8, 128], strides = [1, 1]} : vector<8x512xf32> to vector<8x128xf32>
    %66 = vector.extract_strided_slice %54 {offsets = [0, 384], sizes = [8, 128], strides = [1, 1]} : vector<8x512xf32> to vector<8x128xf32>
    %cst_34 = arith.constant 1.000000e+00 : f32
    %67 = vector.broadcast %cst_34 : f32 to vector<8x128xf32>
    %68 = arith.addf %66, %67 : vector<8x128xf32>
    %cst_35 = arith.constant 5.000000e-01 : f32
    %69 = vector.broadcast %cst_35 : f32 to vector<8x128xf32>
    %70 = arith.mulf %69, %68 : vector<8x128xf32>
    %71 = arith.mulf %64, %36 : vector<8x128xf32>
    %72 = arith.mulf %59, %65 : vector<8x128xf32>
    %73 = arith.addf %71, %72 : vector<8x128xf32>
    %74 = math.tanh %73 : vector<8x128xf32>
    %75 = arith.mulf %70, %74 : vector<8x128xf32>
    %c0_i32_36 = arith.constant 0 : i32
    %76 = arith.addi %c0_i32_36, %c1_i32 : i32
    %c8_i32_37 = arith.constant 8 : i32
    %77 = arith.muli %76, %c8_i32_37 : i32
    %78 = tpu.assume_multiple %77, 8 : i32
    %79 = arith.index_cast %78 : i32 to index
    %c0_38 = arith.constant 0 : index
    %80 = vector.load %arg12[%79, %c0_38] : memref<64x128xf32, #tpu.memory_space<vmem>>, vector<8x128xf32>
    tpu.vector_store %arg12[%79, %c0_38], %75 {strides = array<i32>} : memref<64x128xf32, #tpu.memory_space<vmem>>, vector<8x128xf32>,
    %c2_i32 = arith.constant 2 : i32
    %c8_i32_39 = arith.constant 8 : i32
    %81 = arith.muli %c2_i32, %c8_i32_39 : i32
    %82 = tpu.assume_multiple %81, 8 : i32
    %c0_40 = arith.constant 0 : index
    %c0_41 = arith.constant 0 : index
    %83 = vector.load %arg3[%c0_40, %c0_41] : memref<128x512xf32, #tpu.memory_space<vmem>>, vector<128x512xf32>
    %cst_42 = arith.constant dense<0.000000e+00> : vector<8x512xf32>
    %84 = tpu.matmul %75, %83, %cst_42 {dimension_numbers = #tpu.dot_dimension_numbers<[1], [0], [0], [1], [0, 0, 1, 1], [], []>} : vector<8x128xf32>, vector<128x512xf32>, vector<8x512xf32> -> vector<8x512xf32>
    %85 = arith.index_cast %82 : i32 to index
    %c0_43 = arith.constant 0 : index
    %86 = vector.load %arg11[%85, %c0_43] : memref<64x512xf32, #tpu.memory_space<vmem>>, vector<8x512xf32>
    %87 = arith.addf %84, %86 : vector<8x512xf32>
    %c0_44 = arith.constant 0 : index
    %c0_45 = arith.constant 0 : index
    %88 = vector.load %arg4[%c0_44, %c0_45] : memref<1x512xf32, #tpu.memory_space<vmem>>, vector<1x512xf32>
    %89 = vector.broadcast %88 : vector<1x512xf32> to vector<8x512xf32>
    %90 = arith.addf %87, %89 : vector<8x512xf32>
    %91 = math.tanh %90 : vector<8x512xf32>
    %92 = vector.extract_strided_slice %91 {offsets = [0, 0], sizes = [8, 128], strides = [1, 1]} : vector<8x512xf32> to vector<8x128xf32>
    %cst_46 = arith.constant 1.000000e+00 : f32
    %93 = vector.broadcast %cst_46 : f32 to vector<8x128xf32>
    %94 = arith.addf %92, %93 : vector<8x128xf32>
    %cst_47 = arith.constant 5.000000e-01 : f32
    %95 = vector.broadcast %cst_47 : f32 to vector<8x128xf32>
    %96 = arith.mulf %95, %94 : vector<8x128xf32>
    %97 = vector.extract_strided_slice %91 {offsets = [0, 128], sizes = [8, 128], strides = [1, 1]} : vector<8x512xf32> to vector<8x128xf32>
    %cst_48 = arith.constant 1.000000e+00 : f32
    %98 = vector.broadcast %cst_48 : f32 to vector<8x128xf32>
    %99 = arith.addf %97, %98 : vector<8x128xf32>
    %cst_49 = arith.constant 5.000000e-01 : f32
    %100 = vector.broadcast %cst_49 : f32 to vector<8x128xf32>
    %101 = arith.mulf %100, %99 : vector<8x128xf32>
    %102 = vector.extract_strided_slice %91 {offsets = [0, 256], sizes = [8, 128], strides = [1, 1]} : vector<8x512xf32> to vector<8x128xf32>
    %103 = vector.extract_strided_slice %91 {offsets = [0, 384], sizes = [8, 128], strides = [1, 1]} : vector<8x512xf32> to vector<8x128xf32>
    %cst_50 = arith.constant 1.000000e+00 : f32
    %104 = vector.broadcast %cst_50 : f32 to vector<8x128xf32>
    %105 = arith.addf %103, %104 : vector<8x128xf32>
    %cst_51 = arith.constant 5.000000e-01 : f32
    %106 = vector.broadcast %cst_51 : f32 to vector<8x128xf32>
    %107 = arith.mulf %106, %105 : vector<8x128xf32>
    %108 = arith.mulf %101, %73 : vector<8x128xf32>
    %109 = arith.mulf %96, %102 : vector<8x128xf32>
    %110 = arith.addf %108, %109 : vector<8x128xf32>
    %111 = math.tanh %110 : vector<8x128xf32>
    %112 = arith.mulf %107, %111 : vector<8x128xf32>
    %c0_i32_52 = arith.constant 0 : i32
    %113 = arith.addi %c0_i32_52, %c2_i32 : i32
    %c8_i32_53 = arith.constant 8 : i32
    %114 = arith.muli %113, %c8_i32_53 : i32
    %115 = tpu.assume_multiple %114, 8 : i32
    %116 = arith.index_cast %115 : i32 to index
    %c0_54 = arith.constant 0 : index
    %117 = vector.load %arg12[%116, %c0_54] : memref<64x128xf32, #tpu.memory_space<vmem>>, vector<8x128xf32>
    tpu.vector_store %arg12[%116, %c0_54], %112 {strides = array<i32>} : memref<64x128xf32, #tpu.memory_space<vmem>>, vector<8x128xf32>,
    %c3_i32 = arith.constant 3 : i32
    %c8_i32_55 = arith.constant 8 : i32
    %118 = arith.muli %c3_i32, %c8_i32_55 : i32
    %119 = tpu.assume_multiple %118, 8 : i32
    %c0_56 = arith.constant 0 : index
    %c0_57 = arith.constant 0 : index
    %120 = vector.load %arg3[%c0_56, %c0_57] : memref<128x512xf32, #tpu.memory_space<vmem>>, vector<128x512xf32>
    %cst_58 = arith.constant dense<0.000000e+00> : vector<8x512xf32>
    %121 = tpu.matmul %112, %120, %cst_58 {dimension_numbers = #tpu.dot_dimension_numbers<[1], [0], [0], [1], [0, 0, 1, 1], [], []>} : vector<8x128xf32>, vector<128x512xf32>, vector<8x512xf32> -> vector<8x512xf32>
    %122 = arith.index_cast %119 : i32 to index
    %c0_59 = arith.constant 0 : index
    %123 = vector.load %arg11[%122, %c0_59] : memref<64x512xf32, #tpu.memory_space<vmem>>, vector<8x512xf32>
    %124 = arith.addf %121, %123 : vector<8x512xf32>
    %c0_60 = arith.constant 0 : index
    %c0_61 = arith.constant 0 : index
    %125 = vector.load %arg4[%c0_60, %c0_61] : memref<1x512xf32, #tpu.memory_space<vmem>>, vector<1x512xf32>
    %126 = vector.broadcast %125 : vector<1x512xf32> to vector<8x512xf32>
    %127 = arith.addf %124, %126 : vector<8x512xf32>
    %128 = math.tanh %127 : vector<8x512xf32>
    %129 = vector.extract_strided_slice %128 {offsets = [0, 0], sizes = [8, 128], strides = [1, 1]} : vector<8x512xf32> to vector<8x128xf32>
    %cst_62 = arith.constant 1.000000e+00 : f32
    %130 = vector.broadcast %cst_62 : f32 to vector<8x128xf32>
    %131 = arith.addf %129, %130 : vector<8x128xf32>
    %cst_63 = arith.constant 5.000000e-01 : f32
    %132 = vector.broadcast %cst_63 : f32 to vector<8x128xf32>
    %133 = arith.mulf %132, %131 : vector<8x128xf32>
    %134 = vector.extract_strided_slice %128 {offsets = [0, 128], sizes = [8, 128], strides = [1, 1]} : vector<8x512xf32> to vector<8x128xf32>
    %cst_64 = arith.constant 1.000000e+00 : f32
    %135 = vector.broadcast %cst_64 : f32 to vector<8x128xf32>
    %136 = arith.addf %134, %135 : vector<8x128xf32>
    %cst_65 = arith.constant 5.000000e-01 : f32
    %137 = vector.broadcast %cst_65 : f32 to vector<8x128xf32>
    %138 = arith.mulf %137, %136 : vector<8x128xf32>
    %139 = vector.extract_strided_slice %128 {offsets = [0, 256], sizes = [8, 128], strides = [1, 1]} : vector<8x512xf32> to vector<8x128xf32>
    %140 = vector.extract_strided_slice %128 {offsets = [0, 384], sizes = [8, 128], strides = [1, 1]} : vector<8x512xf32> to vector<8x128xf32>
    %cst_66 = arith.constant 1.000000e+00 : f32
    %141 = vector.broadcast %cst_66 : f32 to vector<8x128xf32>
    %142 = arith.addf %140, %141 : vector<8x128xf32>
    %cst_67 = arith.constant 5.000000e-01 : f32
    %143 = vector.broadcast %cst_67 : f32 to vector<8x128xf32>
    %144 = arith.mulf %143, %142 : vector<8x128xf32>
    %145 = arith.mulf %138, %110 : vector<8x128xf32>
    %146 = arith.mulf %133, %139 : vector<8x128xf32>
    %147 = arith.addf %145, %146 : vector<8x128xf32>
    %148 = math.tanh %147 : vector<8x128xf32>
    %149 = arith.mulf %144, %148 : vector<8x128xf32>
    %c0_i32_68 = arith.constant 0 : i32
    %150 = arith.addi %c0_i32_68, %c3_i32 : i32
    %c8_i32_69 = arith.constant 8 : i32
    %151 = arith.muli %150, %c8_i32_69 : i32
    %152 = tpu.assume_multiple %151, 8 : i32
    %153 = arith.index_cast %152 : i32 to index
    %c0_70 = arith.constant 0 : index
    %154 = vector.load %arg12[%153, %c0_70] : memref<64x128xf32, #tpu.memory_space<vmem>>, vector<8x128xf32>
    tpu.vector_store %arg12[%153, %c0_70], %149 {strides = array<i32>} : memref<64x128xf32, #tpu.memory_space<vmem>>, vector<8x128xf32>,
    %c4_i32 = arith.constant 4 : i32
    %c8_i32_71 = arith.constant 8 : i32
    %155 = arith.muli %c4_i32, %c8_i32_71 : i32
    %156 = tpu.assume_multiple %155, 8 : i32
    %c0_72 = arith.constant 0 : index
    %c0_73 = arith.constant 0 : index
    %157 = vector.load %arg3[%c0_72, %c0_73] : memref<128x512xf32, #tpu.memory_space<vmem>>, vector<128x512xf32>
    %cst_74 = arith.constant dense<0.000000e+00> : vector<8x512xf32>
    %158 = tpu.matmul %149, %157, %cst_74 {dimension_numbers = #tpu.dot_dimension_numbers<[1], [0], [0], [1], [0, 0, 1, 1], [], []>} : vector<8x128xf32>, vector<128x512xf32>, vector<8x512xf32> -> vector<8x512xf32>
    %159 = arith.index_cast %156 : i32 to index
    %c0_75 = arith.constant 0 : index
    %160 = vector.load %arg11[%159, %c0_75] : memref<64x512xf32, #tpu.memory_space<vmem>>, vector<8x512xf32>
    %161 = arith.addf %158, %160 : vector<8x512xf32>
    %c0_76 = arith.constant 0 : index
    %c0_77 = arith.constant 0 : index
    %162 = vector.load %arg4[%c0_76, %c0_77] : memref<1x512xf32, #tpu.memory_space<vmem>>, vector<1x512xf32>
    %163 = vector.broadcast %162 : vector<1x512xf32> to vector<8x512xf32>
    %164 = arith.addf %161, %163 : vector<8x512xf32>
    %165 = math.tanh %164 : vector<8x512xf32>
    %166 = vector.extract_strided_slice %165 {offsets = [0, 0], sizes = [8, 128], strides = [1, 1]} : vector<8x512xf32> to vector<8x128xf32>
    %cst_78 = arith.constant 1.000000e+00 : f32
    %167 = vector.broadcast %cst_78 : f32 to vector<8x128xf32>
    %168 = arith.addf %166, %167 : vector<8x128xf32>
    %cst_79 = arith.constant 5.000000e-01 : f32
    %169 = vector.broadcast %cst_79 : f32 to vector<8x128xf32>
    %170 = arith.mulf %169, %168 : vector<8x128xf32>
    %171 = vector.extract_strided_slice %165 {offsets = [0, 128], sizes = [8, 128], strides = [1, 1]} : vector<8x512xf32> to vector<8x128xf32>
    %cst_80 = arith.constant 1.000000e+00 : f32
    %172 = vector.broadcast %cst_80 : f32 to vector<8x128xf32>
    %173 = arith.addf %171, %172 : vector<8x128xf32>
    %cst_81 = arith.constant 5.000000e-01 : f32
    %174 = vector.broadcast %cst_81 : f32 to vector<8x128xf32>
    %175 = arith.mulf %174, %173 : vector<8x128xf32>
    %176 = vector.extract_strided_slice %165 {offsets = [0, 256], sizes = [8, 128], strides = [1, 1]} : vector<8x512xf32> to vector<8x128xf32>
    %177 = vector.extract_strided_slice %165 {offsets = [0, 384], sizes = [8, 128], strides = [1, 1]} : vector<8x512xf32> to vector<8x128xf32>
    %cst_82 = arith.constant 1.000000e+00 : f32
    %178 = vector.broadcast %cst_82 : f32 to vector<8x128xf32>
    %179 = arith.addf %177, %178 : vector<8x128xf32>
    %cst_83 = arith.constant 5.000000e-01 : f32
    %180 = vector.broadcast %cst_83 : f32 to vector<8x128xf32>
    %181 = arith.mulf %180, %179 : vector<8x128xf32>
    %182 = arith.mulf %175, %147 : vector<8x128xf32>
    %183 = arith.mulf %170, %176 : vector<8x128xf32>
    %184 = arith.addf %182, %183 : vector<8x128xf32>
    %185 = math.tanh %184 : vector<8x128xf32>
    %186 = arith.mulf %181, %185 : vector<8x128xf32>
    %c0_i32_84 = arith.constant 0 : i32
    %187 = arith.addi %c0_i32_84, %c4_i32 : i32
    %c8_i32_85 = arith.constant 8 : i32
    %188 = arith.muli %187, %c8_i32_85 : i32
    %189 = tpu.assume_multiple %188, 8 : i32
    %190 = arith.index_cast %189 : i32 to index
    %c0_86 = arith.constant 0 : index
    %191 = vector.load %arg12[%190, %c0_86] : memref<64x128xf32, #tpu.memory_space<vmem>>, vector<8x128xf32>
    tpu.vector_store %arg12[%190, %c0_86], %186 {strides = array<i32>} : memref<64x128xf32, #tpu.memory_space<vmem>>, vector<8x128xf32>,
    %c5_i32 = arith.constant 5 : i32
    %c8_i32_87 = arith.constant 8 : i32
    %192 = arith.muli %c5_i32, %c8_i32_87 : i32
    %193 = tpu.assume_multiple %192, 8 : i32
    %c0_88 = arith.constant 0 : index
    %c0_89 = arith.constant 0 : index
    %194 = vector.load %arg3[%c0_88, %c0_89] : memref<128x512xf32, #tpu.memory_space<vmem>>, vector<128x512xf32>
    %cst_90 = arith.constant dense<0.000000e+00> : vector<8x512xf32>
    %195 = tpu.matmul %186, %194, %cst_90 {dimension_numbers = #tpu.dot_dimension_numbers<[1], [0], [0], [1], [0, 0, 1, 1], [], []>} : vector<8x128xf32>, vector<128x512xf32>, vector<8x512xf32> -> vector<8x512xf32>
    %196 = arith.index_cast %193 : i32 to index
    %c0_91 = arith.constant 0 : index
    %197 = vector.load %arg11[%196, %c0_91] : memref<64x512xf32, #tpu.memory_space<vmem>>, vector<8x512xf32>
    %198 = arith.addf %195, %197 : vector<8x512xf32>
    %c0_92 = arith.constant 0 : index
    %c0_93 = arith.constant 0 : index
    %199 = vector.load %arg4[%c0_92, %c0_93] : memref<1x512xf32, #tpu.memory_space<vmem>>, vector<1x512xf32>
    %200 = vector.broadcast %199 : vector<1x512xf32> to vector<8x512xf32>
    %201 = arith.addf %198, %200 : vector<8x512xf32>
    %202 = math.tanh %201 : vector<8x512xf32>
    %203 = vector.extract_strided_slice %202 {offsets = [0, 0], sizes = [8, 128], strides = [1, 1]} : vector<8x512xf32> to vector<8x128xf32>
    %cst_94 = arith.constant 1.000000e+00 : f32
    %204 = vector.broadcast %cst_94 : f32 to vector<8x128xf32>
    %205 = arith.addf %203, %204 : vector<8x128xf32>
    %cst_95 = arith.constant 5.000000e-01 : f32
    %206 = vector.broadcast %cst_95 : f32 to vector<8x128xf32>
    %207 = arith.mulf %206, %205 : vector<8x128xf32>
    %208 = vector.extract_strided_slice %202 {offsets = [0, 128], sizes = [8, 128], strides = [1, 1]} : vector<8x512xf32> to vector<8x128xf32>
    %cst_96 = arith.constant 1.000000e+00 : f32
    %209 = vector.broadcast %cst_96 : f32 to vector<8x128xf32>
    %210 = arith.addf %208, %209 : vector<8x128xf32>
    %cst_97 = arith.constant 5.000000e-01 : f32
    %211 = vector.broadcast %cst_97 : f32 to vector<8x128xf32>
    %212 = arith.mulf %211, %210 : vector<8x128xf32>
    %213 = vector.extract_strided_slice %202 {offsets = [0, 256], sizes = [8, 128], strides = [1, 1]} : vector<8x512xf32> to vector<8x128xf32>
    %214 = vector.extract_strided_slice %202 {offsets = [0, 384], sizes = [8, 128], strides = [1, 1]} : vector<8x512xf32> to vector<8x128xf32>
    %cst_98 = arith.constant 1.000000e+00 : f32
    %215 = vector.broadcast %cst_98 : f32 to vector<8x128xf32>
    %216 = arith.addf %214, %215 : vector<8x128xf32>
    %cst_99 = arith.constant 5.000000e-01 : f32
    %217 = vector.broadcast %cst_99 : f32 to vector<8x128xf32>
    %218 = arith.mulf %217, %216 : vector<8x128xf32>
    %219 = arith.mulf %212, %184 : vector<8x128xf32>
    %220 = arith.mulf %207, %213 : vector<8x128xf32>
    %221 = arith.addf %219, %220 : vector<8x128xf32>
    %222 = math.tanh %221 : vector<8x128xf32>
    %223 = arith.mulf %218, %222 : vector<8x128xf32>
    %c0_i32_100 = arith.constant 0 : i32
    %224 = arith.addi %c0_i32_100, %c5_i32 : i32
    %c8_i32_101 = arith.constant 8 : i32
    %225 = arith.muli %224, %c8_i32_101 : i32
    %226 = tpu.assume_multiple %225, 8 : i32
    %227 = arith.index_cast %226 : i32 to index
    %c0_102 = arith.constant 0 : index
    %228 = vector.load %arg12[%227, %c0_102] : memref<64x128xf32, #tpu.memory_space<vmem>>, vector<8x128xf32>
    tpu.vector_store %arg12[%227, %c0_102], %223 {strides = array<i32>} : memref<64x128xf32, #tpu.memory_space<vmem>>, vector<8x128xf32>,
    %c6_i32 = arith.constant 6 : i32
    %c8_i32_103 = arith.constant 8 : i32
    %229 = arith.muli %c6_i32, %c8_i32_103 : i32
    %230 = tpu.assume_multiple %229, 8 : i32
    %c0_104 = arith.constant 0 : index
    %c0_105 = arith.constant 0 : index
    %231 = vector.load %arg3[%c0_104, %c0_105] : memref<128x512xf32, #tpu.memory_space<vmem>>, vector<128x512xf32>
    %cst_106 = arith.constant dense<0.000000e+00> : vector<8x512xf32>
    %232 = tpu.matmul %223, %231, %cst_106 {dimension_numbers = #tpu.dot_dimension_numbers<[1], [0], [0], [1], [0, 0, 1, 1], [], []>} : vector<8x128xf32>, vector<128x512xf32>, vector<8x512xf32> -> vector<8x512xf32>
    %233 = arith.index_cast %230 : i32 to index
    %c0_107 = arith.constant 0 : index
    %234 = vector.load %arg11[%233, %c0_107] : memref<64x512xf32, #tpu.memory_space<vmem>>, vector<8x512xf32>
    %235 = arith.addf %232, %234 : vector<8x512xf32>
    %c0_108 = arith.constant 0 : index
    %c0_109 = arith.constant 0 : index
    %236 = vector.load %arg4[%c0_108, %c0_109] : memref<1x512xf32, #tpu.memory_space<vmem>>, vector<1x512xf32>
    %237 = vector.broadcast %236 : vector<1x512xf32> to vector<8x512xf32>
    %238 = arith.addf %235, %237 : vector<8x512xf32>
    %239 = math.tanh %238 : vector<8x512xf32>
    %240 = vector.extract_strided_slice %239 {offsets = [0, 0], sizes = [8, 128], strides = [1, 1]} : vector<8x512xf32> to vector<8x128xf32>
    %cst_110 = arith.constant 1.000000e+00 : f32
    %241 = vector.broadcast %cst_110 : f32 to vector<8x128xf32>
    %242 = arith.addf %240, %241 : vector<8x128xf32>
    %cst_111 = arith.constant 5.000000e-01 : f32
    %243 = vector.broadcast %cst_111 : f32 to vector<8x128xf32>
    %244 = arith.mulf %243, %242 : vector<8x128xf32>
    %245 = vector.extract_strided_slice %239 {offsets = [0, 128], sizes = [8, 128], strides = [1, 1]} : vector<8x512xf32> to vector<8x128xf32>
    %cst_112 = arith.constant 1.000000e+00 : f32
    %246 = vector.broadcast %cst_112 : f32 to vector<8x128xf32>
    %247 = arith.addf %245, %246 : vector<8x128xf32>
    %cst_113 = arith.constant 5.000000e-01 : f32
    %248 = vector.broadcast %cst_113 : f32 to vector<8x128xf32>
    %249 = arith.mulf %248, %247 : vector<8x128xf32>
    %250 = vector.extract_strided_slice %239 {offsets = [0, 256], sizes = [8, 128], strides = [1, 1]} : vector<8x512xf32> to vector<8x128xf32>
    %251 = vector.extract_strided_slice %239 {offsets = [0, 384], sizes = [8, 128], strides = [1, 1]} : vector<8x512xf32> to vector<8x128xf32>
    %cst_114 = arith.constant 1.000000e+00 : f32
    %252 = vector.broadcast %cst_114 : f32 to vector<8x128xf32>
    %253 = arith.addf %251, %252 : vector<8x128xf32>
    %cst_115 = arith.constant 5.000000e-01 : f32
    %254 = vector.broadcast %cst_115 : f32 to vector<8x128xf32>
    %255 = arith.mulf %254, %253 : vector<8x128xf32>
    %256 = arith.mulf %249, %221 : vector<8x128xf32>
    %257 = arith.mulf %244, %250 : vector<8x128xf32>
    %258 = arith.addf %256, %257 : vector<8x128xf32>
    %259 = math.tanh %258 : vector<8x128xf32>
    %260 = arith.mulf %255, %259 : vector<8x128xf32>
    %c0_i32_116 = arith.constant 0 : i32
    %261 = arith.addi %c0_i32_116, %c6_i32 : i32
    %c8_i32_117 = arith.constant 8 : i32
    %262 = arith.muli %261, %c8_i32_117 : i32
    %263 = tpu.assume_multiple %262, 8 : i32
    %264 = arith.index_cast %263 : i32 to index
    %c0_118 = arith.constant 0 : index
    %265 = vector.load %arg12[%264, %c0_118] : memref<64x128xf32, #tpu.memory_space<vmem>>, vector<8x128xf32>
    tpu.vector_store %arg12[%264, %c0_118], %260 {strides = array<i32>} : memref<64x128xf32, #tpu.memory_space<vmem>>, vector<8x128xf32>,
    %c7_i32 = arith.constant 7 : i32
    %c8_i32_119 = arith.constant 8 : i32
    %266 = arith.muli %c7_i32, %c8_i32_119 : i32
    %267 = tpu.assume_multiple %266, 8 : i32
    %c0_120 = arith.constant 0 : index
    %c0_121 = arith.constant 0 : index
    %268 = vector.load %arg3[%c0_120, %c0_121] : memref<128x512xf32, #tpu.memory_space<vmem>>, vector<128x512xf32>
    %cst_122 = arith.constant dense<0.000000e+00> : vector<8x512xf32>
    %269 = tpu.matmul %260, %268, %cst_122 {dimension_numbers = #tpu.dot_dimension_numbers<[1], [0], [0], [1], [0, 0, 1, 1], [], []>} : vector<8x128xf32>, vector<128x512xf32>, vector<8x512xf32> -> vector<8x512xf32>
    %270 = arith.index_cast %267 : i32 to index
    %c0_123 = arith.constant 0 : index
    %271 = vector.load %arg11[%270, %c0_123] : memref<64x512xf32, #tpu.memory_space<vmem>>, vector<8x512xf32>
    %272 = arith.addf %269, %271 : vector<8x512xf32>
    %c0_124 = arith.constant 0 : index
    %c0_125 = arith.constant 0 : index
    %273 = vector.load %arg4[%c0_124, %c0_125] : memref<1x512xf32, #tpu.memory_space<vmem>>, vector<1x512xf32>
    %274 = vector.broadcast %273 : vector<1x512xf32> to vector<8x512xf32>
    %275 = arith.addf %272, %274 : vector<8x512xf32>
    %276 = math.tanh %275 : vector<8x512xf32>
    %277 = vector.extract_strided_slice %276 {offsets = [0, 0], sizes = [8, 128], strides = [1, 1]} : vector<8x512xf32> to vector<8x128xf32>
    %cst_126 = arith.constant 1.000000e+00 : f32
    %278 = vector.broadcast %cst_126 : f32 to vector<8x128xf32>
    %279 = arith.addf %277, %278 : vector<8x128xf32>
    %cst_127 = arith.constant 5.000000e-01 : f32
    %280 = vector.broadcast %cst_127 : f32 to vector<8x128xf32>
    %281 = arith.mulf %280, %279 : vector<8x128xf32>
    %282 = vector.extract_strided_slice %276 {offsets = [0, 128], sizes = [8, 128], strides = [1, 1]} : vector<8x512xf32> to vector<8x128xf32>
    %cst_128 = arith.constant 1.000000e+00 : f32
    %283 = vector.broadcast %cst_128 : f32 to vector<8x128xf32>
    %284 = arith.addf %282, %283 : vector<8x128xf32>
    %cst_129 = arith.constant 5.000000e-01 : f32
    %285 = vector.broadcast %cst_129 : f32 to vector<8x128xf32>
    %286 = arith.mulf %285, %284 : vector<8x128xf32>
    %287 = vector.extract_strided_slice %276 {offsets = [0, 256], sizes = [8, 128], strides = [1, 1]} : vector<8x512xf32> to vector<8x128xf32>
    %288 = vector.extract_strided_slice %276 {offsets = [0, 384], sizes = [8, 128], strides = [1, 1]} : vector<8x512xf32> to vector<8x128xf32>
    %cst_130 = arith.constant 1.000000e+00 : f32
    %289 = vector.broadcast %cst_130 : f32 to vector<8x128xf32>
    %290 = arith.addf %288, %289 : vector<8x128xf32>
    %cst_131 = arith.constant 5.000000e-01 : f32
    %291 = vector.broadcast %cst_131 : f32 to vector<8x128xf32>
    %292 = arith.mulf %291, %290 : vector<8x128xf32>
    %293 = arith.mulf %286, %258 : vector<8x128xf32>
    %294 = arith.mulf %281, %287 : vector<8x128xf32>
    %295 = arith.addf %293, %294 : vector<8x128xf32>
    %296 = math.tanh %295 : vector<8x128xf32>
    %297 = arith.mulf %292, %296 : vector<8x128xf32>
    %c0_i32_132 = arith.constant 0 : i32
    %298 = arith.addi %c0_i32_132, %c7_i32 : i32
    %c8_i32_133 = arith.constant 8 : i32
    %299 = arith.muli %298, %c8_i32_133 : i32
    %300 = tpu.assume_multiple %299, 8 : i32
    %301 = arith.index_cast %300 : i32 to index
    %c0_134 = arith.constant 0 : index
    %302 = vector.load %arg12[%301, %c0_134] : memref<64x128xf32, #tpu.memory_space<vmem>>, vector<8x128xf32>
    tpu.vector_store %arg12[%301, %c0_134], %297 {strides = array<i32>} : memref<64x128xf32, #tpu.memory_space<vmem>>, vector<8x128xf32>,
    %c8_i32_135 = arith.constant 8 : i32
    %cst_136 = arith.constant 0.000000e+00 : f32
    %303 = vector.broadcast %cst_136 : f32 to vector<8x128xf32>
    %cst_137 = arith.constant 0.000000e+00 : f32
    %304 = vector.broadcast %cst_137 : f32 to vector<8x128xf32>
    %c0_138 = arith.constant 0 : index
    %c0_139 = arith.constant 0 : index
    %305 = vector.load %arg12[%c0_138, %c0_139] : memref<64x128xf32, #tpu.memory_space<vmem>>, vector<64x128xf32>
    %c0_140 = arith.constant 0 : index
    %c0_141 = arith.constant 0 : index
    %306 = vector.load %arg5[%c0_140, %c0_141] : memref<128x512xf32, #tpu.memory_space<vmem>>, vector<128x512xf32>
    %cst_142 = arith.constant dense<0.000000e+00> : vector<64x512xf32>
    %307 = tpu.matmul %305, %306, %cst_142 {dimension_numbers = #tpu.dot_dimension_numbers<[1], [0], [0], [1], [0, 0, 1, 1], [], []>} : vector<64x128xf32>, vector<128x512xf32>, vector<64x512xf32> -> vector<64x512xf32>
    %c0_143 = arith.constant 0 : index
    %c0_144 = arith.constant 0 : index
    %308 = vector.load %arg11[%c0_143, %c0_144] : memref<64x512xf32, #tpu.memory_space<vmem>>, vector<64x512xf32>
    tpu.vector_store %arg11[%c0_143, %c0_144], %307 {strides = array<i32>} : memref<64x512xf32, #tpu.memory_space<vmem>>, vector<64x512xf32>,
    %c0_i32_145 = arith.constant 0 : i32
    %c8_i32_146 = arith.constant 8 : i32
    %309 = arith.muli %c0_i32_145, %c8_i32_146 : i32
    %310 = tpu.assume_multiple %309, 8 : i32
    %c0_147 = arith.constant 0 : index
    %c0_148 = arith.constant 0 : index
    %311 = vector.load %arg6[%c0_147, %c0_148] : memref<128x512xf32, #tpu.memory_space<vmem>>, vector<128x512xf32>
    %cst_149 = arith.constant dense<0.000000e+00> : vector<8x512xf32>
    %312 = tpu.matmul %303, %311, %cst_149 {dimension_numbers = #tpu.dot_dimension_numbers<[1], [0], [0], [1], [0, 0, 1, 1], [], []>} : vector<8x128xf32>, vector<128x512xf32>, vector<8x512xf32> -> vector<8x512xf32>
    %313 = arith.index_cast %310 : i32 to index
    %c0_150 = arith.constant 0 : index
    %314 = vector.load %arg11[%313, %c0_150] : memref<64x512xf32, #tpu.memory_space<vmem>>, vector<8x512xf32>
    %315 = arith.addf %312, %314 : vector<8x512xf32>
    %c0_151 = arith.constant 0 : index
    %c0_152 = arith.constant 0 : index
    %316 = vector.load %arg7[%c0_151, %c0_152] : memref<1x512xf32, #tpu.memory_space<vmem>>, vector<1x512xf32>
    %317 = vector.broadcast %316 : vector<1x512xf32> to vector<8x512xf32>
    %318 = arith.addf %315, %317 : vector<8x512xf32>
    %319 = math.tanh %318 : vector<8x512xf32>
    %320 = vector.extract_strided_slice %319 {offsets = [0, 0], sizes = [8, 128], strides = [1, 1]} : vector<8x512xf32> to vector<8x128xf32>
    %cst_153 = arith.constant 1.000000e+00 : f32
    %321 = vector.broadcast %cst_153 : f32 to vector<8x128xf32>
    %322 = arith.addf %320, %321 : vector<8x128xf32>
    %cst_154 = arith.constant 5.000000e-01 : f32
    %323 = vector.broadcast %cst_154 : f32 to vector<8x128xf32>
    %324 = arith.mulf %323, %322 : vector<8x128xf32>
    %325 = vector.extract_strided_slice %319 {offsets = [0, 128], sizes = [8, 128], strides = [1, 1]} : vector<8x512xf32> to vector<8x128xf32>
    %cst_155 = arith.constant 1.000000e+00 : f32
    %326 = vector.broadcast %cst_155 : f32 to vector<8x128xf32>
    %327 = arith.addf %325, %326 : vector<8x128xf32>
    %cst_156 = arith.constant 5.000000e-01 : f32
    %328 = vector.broadcast %cst_156 : f32 to vector<8x128xf32>
    %329 = arith.mulf %328, %327 : vector<8x128xf32>
    %330 = vector.extract_strided_slice %319 {offsets = [0, 256], sizes = [8, 128], strides = [1, 1]} : vector<8x512xf32> to vector<8x128xf32>
    %331 = vector.extract_strided_slice %319 {offsets = [0, 384], sizes = [8, 128], strides = [1, 1]} : vector<8x512xf32> to vector<8x128xf32>
    %cst_157 = arith.constant 1.000000e+00 : f32
    %332 = vector.broadcast %cst_157 : f32 to vector<8x128xf32>
    %333 = arith.addf %331, %332 : vector<8x128xf32>
    %cst_158 = arith.constant 5.000000e-01 : f32
    %334 = vector.broadcast %cst_158 : f32 to vector<8x128xf32>
    %335 = arith.mulf %334, %333 : vector<8x128xf32>
    %336 = arith.mulf %329, %304 : vector<8x128xf32>
    %337 = arith.mulf %324, %330 : vector<8x128xf32>
    %338 = arith.addf %336, %337 : vector<8x128xf32>
    %339 = math.tanh %338 : vector<8x128xf32>
    %340 = arith.mulf %335, %339 : vector<8x128xf32>
    %c1_i32_159 = arith.constant 1 : i32
    %c8_i32_160 = arith.constant 8 : i32
    %341 = arith.muli %c1_i32_159, %c8_i32_160 : i32
    %342 = tpu.assume_multiple %341, 8 : i32
    %c0_161 = arith.constant 0 : index
    %c0_162 = arith.constant 0 : index
    %343 = vector.load %arg6[%c0_161, %c0_162] : memref<128x512xf32, #tpu.memory_space<vmem>>, vector<128x512xf32>
    %cst_163 = arith.constant dense<0.000000e+00> : vector<8x512xf32>
    %344 = tpu.matmul %340, %343, %cst_163 {dimension_numbers = #tpu.dot_dimension_numbers<[1], [0], [0], [1], [0, 0, 1, 1], [], []>} : vector<8x128xf32>, vector<128x512xf32>, vector<8x512xf32> -> vector<8x512xf32>
    %345 = arith.index_cast %342 : i32 to index
    %c0_164 = arith.constant 0 : index
    %346 = vector.load %arg11[%345, %c0_164] : memref<64x512xf32, #tpu.memory_space<vmem>>, vector<8x512xf32>
    %347 = arith.addf %344, %346 : vector<8x512xf32>
    %c0_165 = arith.constant 0 : index
    %c0_166 = arith.constant 0 : index
    %348 = vector.load %arg7[%c0_165, %c0_166] : memref<1x512xf32, #tpu.memory_space<vmem>>, vector<1x512xf32>
    %349 = vector.broadcast %348 : vector<1x512xf32> to vector<8x512xf32>
    %350 = arith.addf %347, %349 : vector<8x512xf32>
    %351 = math.tanh %350 : vector<8x512xf32>
    %352 = vector.extract_strided_slice %351 {offsets = [0, 0], sizes = [8, 128], strides = [1, 1]} : vector<8x512xf32> to vector<8x128xf32>
    %cst_167 = arith.constant 1.000000e+00 : f32
    %353 = vector.broadcast %cst_167 : f32 to vector<8x128xf32>
    %354 = arith.addf %352, %353 : vector<8x128xf32>
    %cst_168 = arith.constant 5.000000e-01 : f32
    %355 = vector.broadcast %cst_168 : f32 to vector<8x128xf32>
    %356 = arith.mulf %355, %354 : vector<8x128xf32>
    %357 = vector.extract_strided_slice %351 {offsets = [0, 128], sizes = [8, 128], strides = [1, 1]} : vector<8x512xf32> to vector<8x128xf32>
    %cst_169 = arith.constant 1.000000e+00 : f32
    %358 = vector.broadcast %cst_169 : f32 to vector<8x128xf32>
    %359 = arith.addf %357, %358 : vector<8x128xf32>
    %cst_170 = arith.constant 5.000000e-01 : f32
    %360 = vector.broadcast %cst_170 : f32 to vector<8x128xf32>
    %361 = arith.mulf %360, %359 : vector<8x128xf32>
    %362 = vector.extract_strided_slice %351 {offsets = [0, 256], sizes = [8, 128], strides = [1, 1]} : vector<8x512xf32> to vector<8x128xf32>
    %363 = vector.extract_strided_slice %351 {offsets = [0, 384], sizes = [8, 128], strides = [1, 1]} : vector<8x512xf32> to vector<8x128xf32>
    %cst_171 = arith.constant 1.000000e+00 : f32
    %364 = vector.broadcast %cst_171 : f32 to vector<8x128xf32>
    %365 = arith.addf %363, %364 : vector<8x128xf32>
    %cst_172 = arith.constant 5.000000e-01 : f32
    %366 = vector.broadcast %cst_172 : f32 to vector<8x128xf32>
    %367 = arith.mulf %366, %365 : vector<8x128xf32>
    %368 = arith.mulf %361, %338 : vector<8x128xf32>
    %369 = arith.mulf %356, %362 : vector<8x128xf32>
    %370 = arith.addf %368, %369 : vector<8x128xf32>
    %371 = math.tanh %370 : vector<8x128xf32>
    %372 = arith.mulf %367, %371 : vector<8x128xf32>
    %c2_i32_173 = arith.constant 2 : i32
    %c8_i32_174 = arith.constant 8 : i32
    %373 = arith.muli %c2_i32_173, %c8_i32_174 : i32
    %374 = tpu.assume_multiple %373, 8 : i32
    %c0_175 = arith.constant 0 : index
    %c0_176 = arith.constant 0 : index
    %375 = vector.load %arg6[%c0_175, %c0_176] : memref<128x512xf32, #tpu.memory_space<vmem>>, vector<128x512xf32>
    %cst_177 = arith.constant dense<0.000000e+00> : vector<8x512xf32>
    %376 = tpu.matmul %372, %375, %cst_177 {dimension_numbers = #tpu.dot_dimension_numbers<[1], [0], [0], [1], [0, 0, 1, 1], [], []>} : vector<8x128xf32>, vector<128x512xf32>, vector<8x512xf32> -> vector<8x512xf32>
    %377 = arith.index_cast %374 : i32 to index
    %c0_178 = arith.constant 0 : index
    %378 = vector.load %arg11[%377, %c0_178] : memref<64x512xf32, #tpu.memory_space<vmem>>, vector<8x512xf32>
    %379 = arith.addf %376, %378 : vector<8x512xf32>
    %c0_179 = arith.constant 0 : index
    %c0_180 = arith.constant 0 : index
    %380 = vector.load %arg7[%c0_179, %c0_180] : memref<1x512xf32, #tpu.memory_space<vmem>>, vector<1x512xf32>
    %381 = vector.broadcast %380 : vector<1x512xf32> to vector<8x512xf32>
    %382 = arith.addf %379, %381 : vector<8x512xf32>
    %383 = math.tanh %382 : vector<8x512xf32>
    %384 = vector.extract_strided_slice %383 {offsets = [0, 0], sizes = [8, 128], strides = [1, 1]} : vector<8x512xf32> to vector<8x128xf32>
    %cst_181 = arith.constant 1.000000e+00 : f32
    %385 = vector.broadcast %cst_181 : f32 to vector<8x128xf32>
    %386 = arith.addf %384, %385 : vector<8x128xf32>
    %cst_182 = arith.constant 5.000000e-01 : f32
    %387 = vector.broadcast %cst_182 : f32 to vector<8x128xf32>
    %388 = arith.mulf %387, %386 : vector<8x128xf32>
    %389 = vector.extract_strided_slice %383 {offsets = [0, 128], sizes = [8, 128], strides = [1, 1]} : vector<8x512xf32> to vector<8x128xf32>
    %cst_183 = arith.constant 1.000000e+00 : f32
    %390 = vector.broadcast %cst_183 : f32 to vector<8x128xf32>
    %391 = arith.addf %389, %390 : vector<8x128xf32>
    %cst_184 = arith.constant 5.000000e-01 : f32
    %392 = vector.broadcast %cst_184 : f32 to vector<8x128xf32>
    %393 = arith.mulf %392, %391 : vector<8x128xf32>
    %394 = vector.extract_strided_slice %383 {offsets = [0, 256], sizes = [8, 128], strides = [1, 1]} : vector<8x512xf32> to vector<8x128xf32>
    %395 = vector.extract_strided_slice %383 {offsets = [0, 384], sizes = [8, 128], strides = [1, 1]} : vector<8x512xf32> to vector<8x128xf32>
    %cst_185 = arith.constant 1.000000e+00 : f32
    %396 = vector.broadcast %cst_185 : f32 to vector<8x128xf32>
    %397 = arith.addf %395, %396 : vector<8x128xf32>
    %cst_186 = arith.constant 5.000000e-01 : f32
    %398 = vector.broadcast %cst_186 : f32 to vector<8x128xf32>
    %399 = arith.mulf %398, %397 : vector<8x128xf32>
    %400 = arith.mulf %393, %370 : vector<8x128xf32>
    %401 = arith.mulf %388, %394 : vector<8x128xf32>
    %402 = arith.addf %400, %401 : vector<8x128xf32>
    %403 = math.tanh %402 : vector<8x128xf32>
    %404 = arith.mulf %399, %403 : vector<8x128xf32>
    %c3_i32_187 = arith.constant 3 : i32
    %c8_i32_188 = arith.constant 8 : i32
    %405 = arith.muli %c3_i32_187, %c8_i32_188 : i32
    %406 = tpu.assume_multiple %405, 8 : i32
    %c0_189 = arith.constant 0 : index
    %c0_190 = arith.constant 0 : index
    %407 = vector.load %arg6[%c0_189, %c0_190] : memref<128x512xf32, #tpu.memory_space<vmem>>, vector<128x512xf32>
    %cst_191 = arith.constant dense<0.000000e+00> : vector<8x512xf32>
    %408 = tpu.matmul %404, %407, %cst_191 {dimension_numbers = #tpu.dot_dimension_numbers<[1], [0], [0], [1], [0, 0, 1, 1], [], []>} : vector<8x128xf32>, vector<128x512xf32>, vector<8x512xf32> -> vector<8x512xf32>
    %409 = arith.index_cast %406 : i32 to index
    %c0_192 = arith.constant 0 : index
    %410 = vector.load %arg11[%409, %c0_192] : memref<64x512xf32, #tpu.memory_space<vmem>>, vector<8x512xf32>
    %411 = arith.addf %408, %410 : vector<8x512xf32>
    %c0_193 = arith.constant 0 : index
    %c0_194 = arith.constant 0 : index
    %412 = vector.load %arg7[%c0_193, %c0_194] : memref<1x512xf32, #tpu.memory_space<vmem>>, vector<1x512xf32>
    %413 = vector.broadcast %412 : vector<1x512xf32> to vector<8x512xf32>
    %414 = arith.addf %411, %413 : vector<8x512xf32>
    %415 = math.tanh %414 : vector<8x512xf32>
    %416 = vector.extract_strided_slice %415 {offsets = [0, 0], sizes = [8, 128], strides = [1, 1]} : vector<8x512xf32> to vector<8x128xf32>
    %cst_195 = arith.constant 1.000000e+00 : f32
    %417 = vector.broadcast %cst_195 : f32 to vector<8x128xf32>
    %418 = arith.addf %416, %417 : vector<8x128xf32>
    %cst_196 = arith.constant 5.000000e-01 : f32
    %419 = vector.broadcast %cst_196 : f32 to vector<8x128xf32>
    %420 = arith.mulf %419, %418 : vector<8x128xf32>
    %421 = vector.extract_strided_slice %415 {offsets = [0, 128], sizes = [8, 128], strides = [1, 1]} : vector<8x512xf32> to vector<8x128xf32>
    %cst_197 = arith.constant 1.000000e+00 : f32
    %422 = vector.broadcast %cst_197 : f32 to vector<8x128xf32>
    %423 = arith.addf %421, %422 : vector<8x128xf32>
    %cst_198 = arith.constant 5.000000e-01 : f32
    %424 = vector.broadcast %cst_198 : f32 to vector<8x128xf32>
    %425 = arith.mulf %424, %423 : vector<8x128xf32>
    %426 = vector.extract_strided_slice %415 {offsets = [0, 256], sizes = [8, 128], strides = [1, 1]} : vector<8x512xf32> to vector<8x128xf32>
    %427 = vector.extract_strided_slice %415 {offsets = [0, 384], sizes = [8, 128], strides = [1, 1]} : vector<8x512xf32> to vector<8x128xf32>
    %cst_199 = arith.constant 1.000000e+00 : f32
    %428 = vector.broadcast %cst_199 : f32 to vector<8x128xf32>
    %429 = arith.addf %427, %428 : vector<8x128xf32>
    %cst_200 = arith.constant 5.000000e-01 : f32
    %430 = vector.broadcast %cst_200 : f32 to vector<8x128xf32>
    %431 = arith.mulf %430, %429 : vector<8x128xf32>
    %432 = arith.mulf %425, %402 : vector<8x128xf32>
    %433 = arith.mulf %420, %426 : vector<8x128xf32>
    %434 = arith.addf %432, %433 : vector<8x128xf32>
    %435 = math.tanh %434 : vector<8x128xf32>
    %436 = arith.mulf %431, %435 : vector<8x128xf32>
    %c4_i32_201 = arith.constant 4 : i32
    %c8_i32_202 = arith.constant 8 : i32
    %437 = arith.muli %c4_i32_201, %c8_i32_202 : i32
    %438 = tpu.assume_multiple %437, 8 : i32
    %c0_203 = arith.constant 0 : index
    %c0_204 = arith.constant 0 : index
    %439 = vector.load %arg6[%c0_203, %c0_204] : memref<128x512xf32, #tpu.memory_space<vmem>>, vector<128x512xf32>
    %cst_205 = arith.constant dense<0.000000e+00> : vector<8x512xf32>
    %440 = tpu.matmul %436, %439, %cst_205 {dimension_numbers = #tpu.dot_dimension_numbers<[1], [0], [0], [1], [0, 0, 1, 1], [], []>} : vector<8x128xf32>, vector<128x512xf32>, vector<8x512xf32> -> vector<8x512xf32>
    %441 = arith.index_cast %438 : i32 to index
    %c0_206 = arith.constant 0 : index
    %442 = vector.load %arg11[%441, %c0_206] : memref<64x512xf32, #tpu.memory_space<vmem>>, vector<8x512xf32>
    %443 = arith.addf %440, %442 : vector<8x512xf32>
    %c0_207 = arith.constant 0 : index
    %c0_208 = arith.constant 0 : index
    %444 = vector.load %arg7[%c0_207, %c0_208] : memref<1x512xf32, #tpu.memory_space<vmem>>, vector<1x512xf32>
    %445 = vector.broadcast %444 : vector<1x512xf32> to vector<8x512xf32>
    %446 = arith.addf %443, %445 : vector<8x512xf32>
    %447 = math.tanh %446 : vector<8x512xf32>
    %448 = vector.extract_strided_slice %447 {offsets = [0, 0], sizes = [8, 128], strides = [1, 1]} : vector<8x512xf32> to vector<8x128xf32>
    %cst_209 = arith.constant 1.000000e+00 : f32
    %449 = vector.broadcast %cst_209 : f32 to vector<8x128xf32>
    %450 = arith.addf %448, %449 : vector<8x128xf32>
    %cst_210 = arith.constant 5.000000e-01 : f32
    %451 = vector.broadcast %cst_210 : f32 to vector<8x128xf32>
    %452 = arith.mulf %451, %450 : vector<8x128xf32>
    %453 = vector.extract_strided_slice %447 {offsets = [0, 128], sizes = [8, 128], strides = [1, 1]} : vector<8x512xf32> to vector<8x128xf32>
    %cst_211 = arith.constant 1.000000e+00 : f32
    %454 = vector.broadcast %cst_211 : f32 to vector<8x128xf32>
    %455 = arith.addf %453, %454 : vector<8x128xf32>
    %cst_212 = arith.constant 5.000000e-01 : f32
    %456 = vector.broadcast %cst_212 : f32 to vector<8x128xf32>
    %457 = arith.mulf %456, %455 : vector<8x128xf32>
    %458 = vector.extract_strided_slice %447 {offsets = [0, 256], sizes = [8, 128], strides = [1, 1]} : vector<8x512xf32> to vector<8x128xf32>
    %459 = vector.extract_strided_slice %447 {offsets = [0, 384], sizes = [8, 128], strides = [1, 1]} : vector<8x512xf32> to vector<8x128xf32>
    %cst_213 = arith.constant 1.000000e+00 : f32
    %460 = vector.broadcast %cst_213 : f32 to vector<8x128xf32>
    %461 = arith.addf %459, %460 : vector<8x128xf32>
    %cst_214 = arith.constant 5.000000e-01 : f32
    %462 = vector.broadcast %cst_214 : f32 to vector<8x128xf32>
    %463 = arith.mulf %462, %461 : vector<8x128xf32>
    %464 = arith.mulf %457, %434 : vector<8x128xf32>
    %465 = arith.mulf %452, %458 : vector<8x128xf32>
    %466 = arith.addf %464, %465 : vector<8x128xf32>
    %467 = math.tanh %466 : vector<8x128xf32>
    %468 = arith.mulf %463, %467 : vector<8x128xf32>
    %c5_i32_215 = arith.constant 5 : i32
    %c8_i32_216 = arith.constant 8 : i32
    %469 = arith.muli %c5_i32_215, %c8_i32_216 : i32
    %470 = tpu.assume_multiple %469, 8 : i32
    %c0_217 = arith.constant 0 : index
    %c0_218 = arith.constant 0 : index
    %471 = vector.load %arg6[%c0_217, %c0_218] : memref<128x512xf32, #tpu.memory_space<vmem>>, vector<128x512xf32>
    %cst_219 = arith.constant dense<0.000000e+00> : vector<8x512xf32>
    %472 = tpu.matmul %468, %471, %cst_219 {dimension_numbers = #tpu.dot_dimension_numbers<[1], [0], [0], [1], [0, 0, 1, 1], [], []>} : vector<8x128xf32>, vector<128x512xf32>, vector<8x512xf32> -> vector<8x512xf32>
    %473 = arith.index_cast %470 : i32 to index
    %c0_220 = arith.constant 0 : index
    %474 = vector.load %arg11[%473, %c0_220] : memref<64x512xf32, #tpu.memory_space<vmem>>, vector<8x512xf32>
    %475 = arith.addf %472, %474 : vector<8x512xf32>
    %c0_221 = arith.constant 0 : index
    %c0_222 = arith.constant 0 : index
    %476 = vector.load %arg7[%c0_221, %c0_222] : memref<1x512xf32, #tpu.memory_space<vmem>>, vector<1x512xf32>
    %477 = vector.broadcast %476 : vector<1x512xf32> to vector<8x512xf32>
    %478 = arith.addf %475, %477 : vector<8x512xf32>
    %479 = math.tanh %478 : vector<8x512xf32>
    %480 = vector.extract_strided_slice %479 {offsets = [0, 0], sizes = [8, 128], strides = [1, 1]} : vector<8x512xf32> to vector<8x128xf32>
    %cst_223 = arith.constant 1.000000e+00 : f32
    %481 = vector.broadcast %cst_223 : f32 to vector<8x128xf32>
    %482 = arith.addf %480, %481 : vector<8x128xf32>
    %cst_224 = arith.constant 5.000000e-01 : f32
    %483 = vector.broadcast %cst_224 : f32 to vector<8x128xf32>
    %484 = arith.mulf %483, %482 : vector<8x128xf32>
    %485 = vector.extract_strided_slice %479 {offsets = [0, 128], sizes = [8, 128], strides = [1, 1]} : vector<8x512xf32> to vector<8x128xf32>
    %cst_225 = arith.constant 1.000000e+00 : f32
    %486 = vector.broadcast %cst_225 : f32 to vector<8x128xf32>
    %487 = arith.addf %485, %486 : vector<8x128xf32>
    %cst_226 = arith.constant 5.000000e-01 : f32
    %488 = vector.broadcast %cst_226 : f32 to vector<8x128xf32>
    %489 = arith.mulf %488, %487 : vector<8x128xf32>
    %490 = vector.extract_strided_slice %479 {offsets = [0, 256], sizes = [8, 128], strides = [1, 1]} : vector<8x512xf32> to vector<8x128xf32>
    %491 = vector.extract_strided_slice %479 {offsets = [0, 384], sizes = [8, 128], strides = [1, 1]} : vector<8x512xf32> to vector<8x128xf32>
    %cst_227 = arith.constant 1.000000e+00 : f32
    %492 = vector.broadcast %cst_227 : f32 to vector<8x128xf32>
    %493 = arith.addf %491, %492 : vector<8x128xf32>
    %cst_228 = arith.constant 5.000000e-01 : f32
    %494 = vector.broadcast %cst_228 : f32 to vector<8x128xf32>
    %495 = arith.mulf %494, %493 : vector<8x128xf32>
    %496 = arith.mulf %489, %466 : vector<8x128xf32>
    %497 = arith.mulf %484, %490 : vector<8x128xf32>
    %498 = arith.addf %496, %497 : vector<8x128xf32>
    %499 = math.tanh %498 : vector<8x128xf32>
    %500 = arith.mulf %495, %499 : vector<8x128xf32>
    %c6_i32_229 = arith.constant 6 : i32
    %c8_i32_230 = arith.constant 8 : i32
    %501 = arith.muli %c6_i32_229, %c8_i32_230 : i32
    %502 = tpu.assume_multiple %501, 8 : i32
    %c0_231 = arith.constant 0 : index
    %c0_232 = arith.constant 0 : index
    %503 = vector.load %arg6[%c0_231, %c0_232] : memref<128x512xf32, #tpu.memory_space<vmem>>, vector<128x512xf32>
    %cst_233 = arith.constant dense<0.000000e+00> : vector<8x512xf32>
    %504 = tpu.matmul %500, %503, %cst_233 {dimension_numbers = #tpu.dot_dimension_numbers<[1], [0], [0], [1], [0, 0, 1, 1], [], []>} : vector<8x128xf32>, vector<128x512xf32>, vector<8x512xf32> -> vector<8x512xf32>
    %505 = arith.index_cast %502 : i32 to index
    %c0_234 = arith.constant 0 : index
    %506 = vector.load %arg11[%505, %c0_234] : memref<64x512xf32, #tpu.memory_space<vmem>>, vector<8x512xf32>
    %507 = arith.addf %504, %506 : vector<8x512xf32>
    %c0_235 = arith.constant 0 : index
    %c0_236 = arith.constant 0 : index
    %508 = vector.load %arg7[%c0_235, %c0_236] : memref<1x512xf32, #tpu.memory_space<vmem>>, vector<1x512xf32>
    %509 = vector.broadcast %508 : vector<1x512xf32> to vector<8x512xf32>
    %510 = arith.addf %507, %509 : vector<8x512xf32>
    %511 = math.tanh %510 : vector<8x512xf32>
    %512 = vector.extract_strided_slice %511 {offsets = [0, 0], sizes = [8, 128], strides = [1, 1]} : vector<8x512xf32> to vector<8x128xf32>
    %cst_237 = arith.constant 1.000000e+00 : f32
    %513 = vector.broadcast %cst_237 : f32 to vector<8x128xf32>
    %514 = arith.addf %512, %513 : vector<8x128xf32>
    %cst_238 = arith.constant 5.000000e-01 : f32
    %515 = vector.broadcast %cst_238 : f32 to vector<8x128xf32>
    %516 = arith.mulf %515, %514 : vector<8x128xf32>
    %517 = vector.extract_strided_slice %511 {offsets = [0, 128], sizes = [8, 128], strides = [1, 1]} : vector<8x512xf32> to vector<8x128xf32>
    %cst_239 = arith.constant 1.000000e+00 : f32
    %518 = vector.broadcast %cst_239 : f32 to vector<8x128xf32>
    %519 = arith.addf %517, %518 : vector<8x128xf32>
    %cst_240 = arith.constant 5.000000e-01 : f32
    %520 = vector.broadcast %cst_240 : f32 to vector<8x128xf32>
    %521 = arith.mulf %520, %519 : vector<8x128xf32>
    %522 = vector.extract_strided_slice %511 {offsets = [0, 256], sizes = [8, 128], strides = [1, 1]} : vector<8x512xf32> to vector<8x128xf32>
    %523 = vector.extract_strided_slice %511 {offsets = [0, 384], sizes = [8, 128], strides = [1, 1]} : vector<8x512xf32> to vector<8x128xf32>
    %cst_241 = arith.constant 1.000000e+00 : f32
    %524 = vector.broadcast %cst_241 : f32 to vector<8x128xf32>
    %525 = arith.addf %523, %524 : vector<8x128xf32>
    %cst_242 = arith.constant 5.000000e-01 : f32
    %526 = vector.broadcast %cst_242 : f32 to vector<8x128xf32>
    %527 = arith.mulf %526, %525 : vector<8x128xf32>
    %528 = arith.mulf %521, %498 : vector<8x128xf32>
    %529 = arith.mulf %516, %522 : vector<8x128xf32>
    %530 = arith.addf %528, %529 : vector<8x128xf32>
    %531 = math.tanh %530 : vector<8x128xf32>
    %532 = arith.mulf %527, %531 : vector<8x128xf32>
    %c7_i32_243 = arith.constant 7 : i32
    %c8_i32_244 = arith.constant 8 : i32
    %533 = arith.muli %c7_i32_243, %c8_i32_244 : i32
    %534 = tpu.assume_multiple %533, 8 : i32
    %c0_245 = arith.constant 0 : index
    %c0_246 = arith.constant 0 : index
    %535 = vector.load %arg6[%c0_245, %c0_246] : memref<128x512xf32, #tpu.memory_space<vmem>>, vector<128x512xf32>
    %cst_247 = arith.constant dense<0.000000e+00> : vector<8x512xf32>
    %536 = tpu.matmul %532, %535, %cst_247 {dimension_numbers = #tpu.dot_dimension_numbers<[1], [0], [0], [1], [0, 0, 1, 1], [], []>} : vector<8x128xf32>, vector<128x512xf32>, vector<8x512xf32> -> vector<8x512xf32>
    %537 = arith.index_cast %534 : i32 to index
    %c0_248 = arith.constant 0 : index
    %538 = vector.load %arg11[%537, %c0_248] : memref<64x512xf32, #tpu.memory_space<vmem>>, vector<8x512xf32>
    %539 = arith.addf %536, %538 : vector<8x512xf32>
    %c0_249 = arith.constant 0 : index
    %c0_250 = arith.constant 0 : index
    %540 = vector.load %arg7[%c0_249, %c0_250] : memref<1x512xf32, #tpu.memory_space<vmem>>, vector<1x512xf32>
    %541 = vector.broadcast %540 : vector<1x512xf32> to vector<8x512xf32>
    %542 = arith.addf %539, %541 : vector<8x512xf32>
    %543 = math.tanh %542 : vector<8x512xf32>
    %544 = vector.extract_strided_slice %543 {offsets = [0, 0], sizes = [8, 128], strides = [1, 1]} : vector<8x512xf32> to vector<8x128xf32>
    %cst_251 = arith.constant 1.000000e+00 : f32
    %545 = vector.broadcast %cst_251 : f32 to vector<8x128xf32>
    %546 = arith.addf %544, %545 : vector<8x128xf32>
    %cst_252 = arith.constant 5.000000e-01 : f32
    %547 = vector.broadcast %cst_252 : f32 to vector<8x128xf32>
    %548 = arith.mulf %547, %546 : vector<8x128xf32>
    %549 = vector.extract_strided_slice %543 {offsets = [0, 128], sizes = [8, 128], strides = [1, 1]} : vector<8x512xf32> to vector<8x128xf32>
    %cst_253 = arith.constant 1.000000e+00 : f32
    %550 = vector.broadcast %cst_253 : f32 to vector<8x128xf32>
    %551 = arith.addf %549, %550 : vector<8x128xf32>
    %cst_254 = arith.constant 5.000000e-01 : f32
    %552 = vector.broadcast %cst_254 : f32 to vector<8x128xf32>
    %553 = arith.mulf %552, %551 : vector<8x128xf32>
    %554 = vector.extract_strided_slice %543 {offsets = [0, 256], sizes = [8, 128], strides = [1, 1]} : vector<8x512xf32> to vector<8x128xf32>
    %555 = vector.extract_strided_slice %543 {offsets = [0, 384], sizes = [8, 128], strides = [1, 1]} : vector<8x512xf32> to vector<8x128xf32>
    %cst_255 = arith.constant 1.000000e+00 : f32
    %556 = vector.broadcast %cst_255 : f32 to vector<8x128xf32>
    %557 = arith.addf %555, %556 : vector<8x128xf32>
    %cst_256 = arith.constant 5.000000e-01 : f32
    %558 = vector.broadcast %cst_256 : f32 to vector<8x128xf32>
    %559 = arith.mulf %558, %557 : vector<8x128xf32>
    %560 = arith.mulf %553, %530 : vector<8x128xf32>
    %561 = arith.mulf %548, %554 : vector<8x128xf32>
    %562 = arith.addf %560, %561 : vector<8x128xf32>
    %563 = math.tanh %562 : vector<8x128xf32>
    %564 = arith.mulf %559, %563 : vector<8x128xf32>
    %c8_i32_257 = arith.constant 8 : i32
    %c0_258 = arith.constant 0 : index
    %c0_259 = arith.constant 0 : index
    %565 = vector.load %arg8[%c0_258, %c0_259] : memref<128x128xf32, #tpu.memory_space<vmem>>, vector<128x128xf32>
    %cst_260 = arith.constant dense<0.000000e+00> : vector<8x128xf32>
    %566 = tpu.matmul %564, %565, %cst_260 {dimension_numbers = #tpu.dot_dimension_numbers<[1], [0], [0], [1], [0, 0, 1, 1], [], []>} : vector<8x128xf32>, vector<128x128xf32>, vector<8x128xf32> -> vector<8x128xf32>
    %c0_261 = arith.constant 0 : index
    %c0_262 = arith.constant 0 : index
    %567 = vector.load %arg9[%c0_261, %c0_262] : memref<1x128xf32, #tpu.memory_space<vmem>>, vector<1x128xf32>
    %568 = vector.broadcast %567 : vector<1x128xf32> to vector<8x128xf32>
    %569 = arith.addf %566, %568 : vector<8x128xf32>
    %cst_263 = arith.constant 0.000000e+00 : f32
    %570 = vector.broadcast %cst_263 : f32 to vector<8x128xf32>
    %571 = arith.maximumf %569, %570 : vector<8x128xf32>
    %c0_264 = arith.constant 0 : index
    %c0_265 = arith.constant 0 : index
    %572 = vector.load %arg10[%c0_264, %c0_265] : memref<8x128xf32, #tpu.memory_space<vmem>>, vector<8x128xf32>
    tpu.vector_store %arg10[%c0_264, %c0_265], %571 {strides = array<i32>} : memref<8x128xf32, #tpu.memory_space<vmem>>, vector<8x128xf32>,
    return
  }
  func.func @transform_0(%arg0: i32) -> (i32, i32, i32) {
    %c0_i32 = arith.constant 0 : i32
    %c0_i32_0 = arith.constant 0 : i32
    %c0_i32_1 = arith.constant 0 : i32
    return %c0_i32, %arg0, %c0_i32_0 : i32, i32, i32
  }
  func.func @transform_1(%arg0: i32) -> (i32, i32) {
    %c0_i32 = arith.constant 0 : i32
    %c0_i32_0 = arith.constant 0 : i32
    %c0_i32_1 = arith.constant 0 : i32
    return %c0_i32, %c0_i32_0 : i32, i32
  }
  func.func @transform_2(%arg0: i32) -> (i32, i32) {
    %c0_i32 = arith.constant 0 : i32
    %c0_i32_0 = arith.constant 0 : i32
    %c0_i32_1 = arith.constant 0 : i32
    return %c0_i32, %c0_i32_0 : i32, i32
  }
  func.func @transform_3(%arg0: i32) -> (i32, i32) {
    %c0_i32 = arith.constant 0 : i32
    %c0_i32_0 = arith.constant 0 : i32
    %c0_i32_1 = arith.constant 0 : i32
    return %c0_i32, %c0_i32_0 : i32, i32
  }
  func.func @transform_4(%arg0: i32) -> (i32, i32) {
    %c0_i32 = arith.constant 0 : i32
    %c0_i32_0 = arith.constant 0 : i32
    %c0_i32_1 = arith.constant 0 : i32
    return %c0_i32, %c0_i32_0 : i32, i32
  }
  func.func @transform_5(%arg0: i32) -> (i32, i32) {
    %c0_i32 = arith.constant 0 : i32
    %c0_i32_0 = arith.constant 0 : i32
    %c0_i32_1 = arith.constant 0 : i32
    return %c0_i32, %c0_i32_0 : i32, i32
  }
  func.func @transform_6(%arg0: i32) -> (i32, i32) {
    %c0_i32 = arith.constant 0 : i32
    %c0_i32_0 = arith.constant 0 : i32
    %c0_i32_1 = arith.constant 0 : i32
    return %c0_i32, %c0_i32_0 : i32, i32
  }
  func.func @transform_7(%arg0: i32) -> (i32, i32) {
    %c0_i32 = arith.constant 0 : i32
    %c0_i32_0 = arith.constant 0 : i32
    %c0_i32_1 = arith.constant 0 : i32
    return %c0_i32, %c0_i32_0 : i32, i32
  }
  func.func @transform_8(%arg0: i32) -> (i32, i32) {
    %c0_i32 = arith.constant 0 : i32
    %c0_i32_0 = arith.constant 0 : i32
    %c0_i32_1 = arith.constant 0 : i32
    return %c0_i32, %c0_i32_0 : i32, i32
  }
  func.func @transform_9(%arg0: i32) -> (i32, i32) {
    %c0_i32 = arith.constant 0 : i32
    %c0_i32_0 = arith.constant 0 : i32
    return %arg0, %c0_i32 : i32, i32
  }
}

</mosaic_0001>

<bundles_post_ra>
// kernel: tpu_custom_call.1
= control target key start
LH: loop header
LB: loop body
LE: loop exit
PB: predicated region body
PF: predicated region fallthrough
CT: control target
= control target key end

     0   :  { %14 = vsyncpa [#allocation5], 0  ;;  %s5447_s0 = inlined_call_operand.vmem [shape: f32[8,8,4], index: 0, kind: input, shape index: {}]   ;;  %s5448_s1 = inlined_call_operand.vmem [shape: f32[4,512], index: 1, kind: input, shape index: {}]   ;;  %s5449_s2 = inlined_call_operand.hbm [shape: f32[128,512], index: 2, kind: input, shape index: {}]   ;;  %s5450_s3 = inlined_call_operand.vmem [shape: f32[1,512], index: 3, kind: input, shape index: {}]   ;;  %s5451_s4 = inlined_call_operand.hbm [shape: f32[128,512], index: 4, kind: input, shape index: {}]   ;;  %s5452_s5 = inlined_call_operand.hbm [shape: f32[128,512], index: 5, kind: input, shape index: {}]   ;;  %s5453_s6 = inlined_call_operand.vmem [shape: f32[1,512], index: 6, kind: input, shape index: {}]   ;;  %s5454_s7 = inlined_call_operand.hbm [shape: f32[128,128], index: 7, kind: input, shape index: {}]   ;;  %s5455_s8 = inlined_call_operand.vmem [shape: f32[1,128], index: 8, kind: input, shape index: {}]   ;;  %s5456_s9 = inlined_call_operand.hbm [shape: f32[8,128], index: 9, kind: output, shape index: {}]  }
   0x1   :  { %15 = vsyncpa [#allocation8], 0 }
   0x2   :  { %16 = vsyncpa [#allocation11], 0 }
   0x3   :  { %17 = vsyncpa [#allocation6], 0  ;;  %s41_s11 = sshll.u32 %s5451_s4, 4  ;;  %s3436_s12 = smov [#allocation7]   ;;  %s42_s11 = int_to_ptr.hbm [resolvable:$true] %s41_s11 }
   0x4   :  { %s43_s13 = sshll.u32 %s3436_s12, 4  ;;  %s26_s16 = sshll.u32 %s5449_s2, 4  ;;  %s44_s13 = int_to_ptr.vmem [resolvable:$true] %s43_s13  ;;  %s27_s16 = int_to_ptr.hbm [resolvable:$true] %s26_s16 }
   0x5   :  { %s3437_s17 = smov 512   ;;  %s3438_s18 = smov 32  }
   0x6   :  { %49 = dma.hbm_to_vmem [thread:$0]  %s42_s11, 8192, %s44_s13, [#allocation8], %s3437_s17, %s3437_s17, %s3438_s18  }
   0x7   :  { %s3439_s19 = smov [#allocation4]   ;;  %s54_s23 = sshll.u32 %s5452_s5, 4  ;;  %s55_s23 = int_to_ptr.hbm [resolvable:$true] %s54_s23 }
   0x8   :  { %s28_s20 = sshll.u32 %s3439_s19, 4  ;;  %s69_s25 = sshll.u32 %s5454_s7, 4  ;;  %s29_s20 = int_to_ptr.vmem [resolvable:$true] %s28_s20  ;;  %s70_s25 = int_to_ptr.hbm [resolvable:$true] %s69_s25 }
   0x9   :  { %34 = dma.hbm_to_vmem [thread:$0]  %s27_s16, 8192, %s29_s20, [#allocation5], %s3437_s17, %s3437_s17, %s3438_s18  }
   0xa   :  { %s3440_s26 = smov [#allocation9]   ;;  %s3441_s2 = smov [#allocation10]  }
   0xb   :  { %s56_s27 = sshll.u32 %s3440_s26, 4  ;;  %s71_s28 = sshll.u32 %s3441_s2, 4  ;;  %s57_s27 = int_to_ptr.vmem [resolvable:$true] %s56_s27  ;;  %s72_s28 = int_to_ptr.vmem [resolvable:$true] %s71_s28 }
   0xc   :  { %62 = dma.hbm_to_vmem [thread:$0]  %s55_s23, 8192, %s57_s27, [#allocation8], %s3437_s17, %s3437_s17, %s3438_s18  }
   0xd   :  { %s3442_s29 = smov 128   ;;  %s3443_s30 = smov 8  }
   0xe   :  { %77 = dma.hbm_to_vmem [thread:$0]  %s70_s25, 2048, %s72_s28, [#allocation11], %s3442_s29, %s3442_s29, %s3443_s30  }
   0xf   :  { %3428 = dma.done.wait [#allocation5], 8192  }
  0x10   :  { %3429 = vsyncadd [#allocation5], 4294959104 }
  0x11   :  { %3430 = dma.done.wait [#allocation8], 16384  }
  0x12   :  { %3431 = vsyncadd [#allocation8], 4294950912 }
  0x13   :  { %3432 = dma.done.wait [#allocation11], 2048  }
  0x14   :  { %3433 = vsyncadd [#allocation11], 4294965248  ;;  %v104_v0 = vld [vmem:[%s5448_s1] sm:$0xff]  ;;  %v105_v1 = vld [vmem:[%s5448_s1 + $0x8] sm:$0xff]  ;;  %vm140_vm0 = vcmask 1043456   ;;  %vm115_vm1 = vcmask 31744  }
  0x15   :  { %108 = vst [vmem:[#allocation1] ss:$2 sm:$0xff] %v104_v0  ;;  %v96_v3 = vld [vmem:[%s5447_s0] sm:$0xff]  ;;  %v3520_v4 = vld [vmem:[%s5447_s0 + $0x28] sm:$0xff]  ;;  %v3527_v5 = vld [vmem:[%s5447_s0 + $0x30] sm:$0xff]  ;;  %s3445_s18 = smov [#allocation12]  }
  0x16   :  { %110 = vst [vmem:[#allocation1 + $0x10] ss:$2 sm:$0xff] %v105_v1  ;;  %v3532_v6 = vld [vmem:[%s5447_s0 + $0x38] sm:$0xff]  ;;  %v3545_v11 = vld [vmem:[#allocation4 + $0x1e0] sm:$0xff]  ;;  %v3547_v12 = vld [vmem:[#allocation4 + $0x1e8] sm:$0xff]  ;;  %s3013_s19 = sshll.u32 %s3445_s18, 4  ;;  %s3014_s19 = int_to_ptr.vmem [resolvable:$true] %s3013_s19 }
  0x17   :  { %v3539_v10 = vld [vmem:[#allocation4 + $0x1f0] sm:$0xff]  ;;  %v3553_v14 = vld [vmem:[#allocation4 + $0x1f8] sm:$0xff]  ;;  %v3557_v15 = vld [vmem:[#allocation4 + $0x1c0] sm:$0xff]  ;;  %s3015_s22 = sshll.u32 %s5456_s9, 4  ;;  %s3016_s22 = int_to_ptr.hbm [resolvable:$true] %s3015_s22 }
  0x18   :  { %v3551_v13 = vld [vmem:[#allocation4 + $0x1d0] sm:$0xff]  ;;  %v3559_v16 = vld [vmem:[#allocation4 + $0x1c8] sm:$0xff]  ;;  %v3565_v18 = vld [vmem:[#allocation4 + $0x1d8] sm:$0xff] }
  0x19   :  { %v3563_v17 = vld [vmem:[#allocation4 + $0x1b0] sm:$0xff]  ;;  %v97_v19 = vld [vmem:[%s5447_s0 + $0x8] sm:$0xff]  ;;  %v3577_v21 = vld [vmem:[#allocation4 + $0x1a8] sm:$0xff] }
  0x1a   :  { %v3574_v20 = vld [vmem:[#allocation4 + $0x1a0] sm:$0xff]  ;;  %v3582_v22 = vld [vmem:[#allocation4 + $0x190] sm:$0xff]  ;;  %v3584_v23 = vld [vmem:[#allocation4 + $0x1b8] sm:$0xff] }
  0x1b   :  { %v3588_v24 = vld [vmem:[#allocation4 + $0x180] sm:$0xff]  ;;  %v3590_v25 = vld [vmem:[#allocation4 + $0x188] sm:$0xff]  ;;  %v3594_v26 = vld [vmem:[#allocation4 + $0x170] sm:$0xff] }
  0x1c   :  { %v111_v2 = vld.sshfl [vmem:[#allocation1] sm:$0xff pattern:$0x75316420]  ;;  %v112_v8 = vld.sshfl [vmem:[#allocation1 + $0x8] sm:$0xff pattern:$0x75316420] }
  0x1d   :  { %3034 = vmatpush.msk.msra.mxu0 %vm140_vm0, %v111_v2  ;;  %3070 = vmatpush.msk.msra.mxu1 %vm140_vm0, %v111_v2  ;;  %v113_v7 = vld.sshfl [vmem:[#allocation1 + $0x10] sm:$0xff pattern:$0x75316420]  ;;  %v114_v9 = vld.sshfl [vmem:[#allocation1 + $0x18] sm:$0xff pattern:$0x75316420] }
  0x1e   :  { %3071 = vmatpush.msk.msra.mxu2 %vm140_vm0, %v111_v2  ;;  %3072 = vmatpush.msk.msra.mxu3 %vm140_vm0, %v111_v2  ;;  %v3596_v27 = vld [vmem:[#allocation4 + $0x198] sm:$0xff]  ;;  %v3598_v28 = vld [vmem:[#allocation4 + $0x160] sm:$0xff]  ;;  %v3602_v29 = vld [vmem:[#allocation4 + $0x168] sm:$0xff] }
  0x1f   :  { %3035 = vmatmul.msk.f32.vlgmr.msra.gmra.mxu0 %vm115_vm1, %v96_v3  ;;  %3040 = vmatmul.msk.f32.vlgmr.msra.gmra.mxu1 %vm115_vm1, %v3520_v4  ;;  %v3606_v30 = vld [vmem:[#allocation4 + $0x150] sm:$0xff]  ;;  %v3608_v31 = vld [vmem:[#allocation4 + $0x178] sm:$0xff]  ;;  %v98_v32 = vld [vmem:[%s5447_s0 + $0x10] sm:$0xff] }
  0x20   :  { %3041 = vmatmul.msk.f32.vlgmr.msra.gmra.mxu2 %vm115_vm1, %v3527_v5  ;;  %3042 = vmatmul.msk.f32.vlgmr.msra.gmra.mxu3 %vm115_vm1, %v3532_v6  ;;  %v3617_v33 = vld [vmem:[#allocation4 + $0x140] sm:$0xff]  ;;  %v3620_v34 = vld [vmem:[#allocation4 + $0x148] sm:$0xff]  ;;  %v3625_v35 = vld [vmem:[#allocation4 + $0x130] sm:$0xff] }
  0x21   :  { %3052 = vmatpush.msk.msrb.mxu2 %vm140_vm0, %v113_v7  ;;  %3043 = vmatpush.msk.msrb.mxu1 %vm140_vm0, %v112_v8  ;;  %v3627_v36 = vld [vmem:[#allocation4 + $0x158] sm:$0xff]  ;;  %v3631_v37 = vld [vmem:[#allocation4 + $0x120] sm:$0xff]  ;;  %v3633_v38 = vld [vmem:[#allocation4 + $0x128] sm:$0xff] }
  0x22   :  { %3061 = vmatpush.msk.msrb.mxu3 %vm140_vm0, %v114_v9  ;;  %416 = vmatpush.msrb.mxu0 %v3545_v11  ;;  %v3637_v39 = vld [vmem:[#allocation4 + $0x110] sm:$0xff]  ;;  %v3639_v40 = vld [vmem:[#allocation4 + $0x138] sm:$0xff]  ;;  %v3641_v41 = vld [vmem:[#allocation4 + $0x100] sm:$0xff] }
  0x23   :  { %456 = vmatpush.msra.mxu2 %v3539_v10  ;;  %436 = vmatpush.msra.mxu1 %v3547_v12  ;;  %v3645_v42 = vld [vmem:[#allocation4 + $0x108] sm:$0xff]  ;;  %v3649_v43 = vld [vmem:[#allocation4 + $0xf0] sm:$0xff]  ;;  %v3651_v44 = vld [vmem:[#allocation4 + $0x118] sm:$0xff] }
  0x24   :  { %476 = vmatpush.msra.mxu3 %v3553_v14  ;;  %417 = vmatpush.msrb.mxu0 %v3557_v15  ;;  %v99_v45 = vld [vmem:[%s5447_s0 + $0x18] sm:$0xff]  ;;  %v3660_v46 = vld [vmem:[#allocation4 + $0xe0] sm:$0xff]  ;;  %v3663_v47 = vld [vmem:[#allocation4 + $0xe8] sm:$0xff] }
  0x25   :  { %457 = vmatpush.msra.mxu2 %v3551_v13  ;;  %437 = vmatpush.msra.mxu1 %v3559_v16  ;;  %v3668_v48 = vld [vmem:[#allocation4 + $0xd0] sm:$0xff]  ;;  %v3670_v49 = vld [vmem:[#allocation4 + $0xf8] sm:$0xff]  ;;  %v3674_v50 = vld [vmem:[#allocation4 + $0xc0] sm:$0xff] }
  0x26   :  { %477 = vmatpush.msra.mxu3 %v3565_v18  ;;  %418 = vmatpush.msrb.mxu0 %v3574_v20  ;;  %v3676_v51 = vld [vmem:[#allocation4 + $0xc8] sm:$0xff]  ;;  %v3680_v52 = vld [vmem:[#allocation4 + $0xb0] sm:$0xff]  ;;  %v3682_v53 = vld [vmem:[#allocation4 + $0xd8] sm:$0xff] }
  0x27   :  { %458 = vmatpush.msra.mxu2 %v3563_v17  ;;  %3036 = vmatmul.msk.f32.gmra.mxu0 %vm115_vm1, %v97_v19  ;;  %v3684_v54 = vld [vmem:[#allocation4 + $0xa0] sm:$0xff]  ;;  %v3688_v55 = vld [vmem:[#allocation4 + $0xa8] sm:$0xff]  ;;  %v3692_v56 = vld [vmem:[#allocation4 + $0x90] sm:$0xff] }
  0x28   :  { %3044 = vmatmul.msk.f32.vlgmr.msrb.gmra.mxu1 %vm115_vm1, %v96_v3  ;;  %3053 = vmatmul.msk.f32.vlgmr.msrb.gmra.mxu2 %vm115_vm1, %v96_v3  ;;  %v3694_v57 = vld [vmem:[#allocation4 + $0xb8] sm:$0xff]  ;;  %v3696_v58 = vld [vmem:[#allocation4 + $0x80] sm:$0xff]  ;;  %v3711_v61 = vld [vmem:[#allocation4 + $0x88] sm:$0xff] }
  0x29   :  { %3062 = vmatmul.msk.f32.vlgmr.msrb.gmra.mxu3 %vm115_vm1, %v96_v3  ;;  %438 = vmatpush.msra.mxu1 %v3577_v21  ;;  %v100_v59 = vld [vmem:[%s5447_s0 + $0x20] sm:$0xff]  ;;  %v3705_v60 = vld [vmem:[#allocation4 + $0x60] sm:$0xff]  ;;  %v3713_v62 = vld [vmem:[#allocation4 + $0x70] sm:$0xff] }
  0x2a   :  { %459 = vmatpush.msra.mxu2 %v3582_v22  ;;  %478 = vmatpush.msra.mxu3 %v3584_v23  ;;  %v3717_v63 = vld [vmem:[#allocation4 + $0x40] sm:$0xff]  ;;  %v3719_v0 = vld [vmem:[#allocation4 + $0x98] sm:$0xff]  ;;  %v3723_v1 = vld [vmem:[#allocation4 + $0x68] sm:$0xff] }
  0x2b   :  { %419 = vmatpush.msrb.mxu0 %v3588_v24  ;;  %439 = vmatpush.msra.mxu1 %v3590_v25  ;;  %5616 = vst [vmem:[#allocation17_spill] sm:$0xff] %v3717_v63  ;;  %v3725_v2 = vld [vmem:[#allocation4 + $0x50] sm:$0xff]  ;;  %v3727_v3 = vld [vmem:[#allocation4 + $0x20] sm:$0xff]  ;;  %v3731_v7 = vld [vmem:[#allocation4 + $0x78] sm:$0xff] }
  0x2c   :  { %460 = vmatpush.msra.mxu2 %v3594_v26  ;;  %479 = vmatpush.msra.mxu3 %v3596_v27  ;;  %5617 = vst [vmem:[#allocation18_spill] sm:$0xff] %v3725_v2  ;;  %v3735_v8 = vld [vmem:[#allocation4 + $0x48] sm:$0xff]  ;;  %v3737_v9 = vld [vmem:[#allocation4 + $0x30] sm:$0xff] }
  0x2d   :  { %420 = vmatpush.msrb.mxu0 %v3598_v28  ;;  %440 = vmatpush.msra.mxu1 %v3602_v29  ;;  %5618 = vst [vmem:[#allocation19_spill] sm:$0xff] %v3727_v3 }
  0x2e   :  { %461 = vmatpush.msra.mxu2 %v3606_v30  ;;  %480 = vmatpush.msra.mxu3 %v3608_v31  ;;  %5619 = vst [vmem:[#allocation20_spill] sm:$0xff] %v3737_v9 }
  0x2f   :  { %3037 = vmatmul.msk.f32.gmra.mxu0 %vm115_vm1, %v98_v32  ;;  %441 = vmatpush.msra.mxu1 %v3620_v34 }
  0x30   :  { %3045 = vmatmul.msk.f32.gmra.mxu1 %vm115_vm1, %v97_v19  ;;  %3054 = vmatmul.msk.f32.gmra.mxu2 %vm115_vm1, %v97_v19 }
  0x31   :  { %3063 = vmatmul.msk.f32.gmra.mxu3 %vm115_vm1, %v97_v19  ;;  %421 = vmatpush.msrb.mxu0 %v3617_v33  ;;  %v3739_v19 = vld [vmem:[#allocation4] sm:$0xff] }
  0x32   :  { %462 = vmatpush.msra.mxu2 %v3625_v35  ;;  %481 = vmatpush.msra.mxu3 %v3627_v36  ;;  %5620 = vst [vmem:[#allocation21_spill] sm:$0xff] %v3739_v19 }
  0x33   :  { %422 = vmatpush.msrb.mxu0 %v3631_v37  ;;  %442 = vmatpush.msra.mxu1 %v3633_v38 }
  0x34   :  { %463 = vmatpush.msra.mxu2 %v3637_v39  ;;  %482 = vmatpush.msra.mxu3 %v3639_v40 }
  0x35   :  { %423 = vmatpush.msrb.mxu0 %v3641_v41  ;;  %443 = vmatpush.msra.mxu1 %v3645_v42 }
  0x36   :  { %464 = vmatpush.msra.mxu2 %v3649_v43  ;;  %483 = vmatpush.msra.mxu3 %v3651_v44 }
  0x37   :  { %3038 = vmatmul.msk.f32.gmra.mxu0 %vm115_vm1, %v99_v45  ;;  %444 = vmatpush.msra.mxu1 %v3663_v47 }
  0x38   :  { %3046 = vmatmul.msk.f32.gmra.mxu1 %vm115_vm1, %v98_v32  ;;  %3055 = vmatmul.msk.f32.gmra.mxu2 %vm115_vm1, %v98_v32 }
  0x39   :  { %3064 = vmatmul.msk.f32.gmra.mxu3 %vm115_vm1, %v98_v32  ;;  %424 = vmatpush.msrb.mxu0 %v3660_v46  ;;  %v3747_v32 = vld [vmem:[#allocation4 + $0x28] sm:$0xff] }
  0x3a   :  { %465 = vmatpush.msra.mxu2 %v3668_v48  ;;  %484 = vmatpush.msra.mxu3 %v3670_v49 }
  0x3b   :  { %425 = vmatpush.msrb.mxu0 %v3674_v50  ;;  %445 = vmatpush.msra.mxu1 %v3676_v51 }
  0x3c   :  { %466 = vmatpush.msra.mxu2 %v3680_v52  ;;  %485 = vmatpush.msra.mxu3 %v3682_v53 }
  0x3d   :  { %426 = vmatpush.msrb.mxu0 %v3684_v54  ;;  %446 = vmatpush.msra.mxu1 %v3688_v55 }
  0x3e   :  { %467 = vmatpush.msra.mxu2 %v3692_v56  ;;  %486 = vmatpush.msra.mxu3 %v3694_v57 }
  0x3f   :  { %427 = vmatpush.msrb.mxu0 %v3696_v58  ;;  %447 = vmatpush.msra.mxu1 %v3711_v61 }
  0x40   :  { %3047 = vmatmul.msk.f32.gmra.mxu1 %vm115_vm1, %v99_v45  ;;  %3039 = vmatmul.msk.f32.gmra.mxu0 %vm115_vm1, %v100_v59 }
  0x41   :  { %3056 = vmatmul.msk.f32.gmra.mxu2 %vm115_vm1, %v99_v45  ;;  %3065 = vmatmul.msk.f32.gmra.mxu3 %vm115_vm1, %v99_v45  ;;  %v3751_v45 = vld [vmem:[#allocation4 + $0x58] sm:$0xff] }
  0x42   :  { %428 = vmatpush.msrb.mxu0 %v3705_v60  ;;  %468 = vmatpush.msra.mxu2 %v3713_v62 }
  0x43   :  { %487 = vmatpush.msra.mxu3 %v3719_v0  ;;  %448 = vmatpush.msra.mxu1 %v3723_v1 }
  0x44   :  { %429 = vmatpush.msrb.mxu0 %v3717_v63  ;;  %469 = vmatpush.msra.mxu2 %v3725_v2  ;;  %v3753_v63 = vld [vmem:[#allocation4 + $0x10] sm:$0xff]  ;;  %v5467_v2 = vmov 0.0  }
  0x45   :  { %488 = vmatpush.msra.mxu3 %v3731_v7  ;;  %449 = vmatpush.msra.mxu1 %v3735_v8 }
  0x46   :  { %430 = vmatpush.msrb.mxu0 %v3727_v3  ;;  %470 = vmatpush.msra.mxu2 %v3737_v9  ;;  %v3757_v3 = vld [vmem:[#allocation4 + $0x8] sm:$0xff]  ;;  %v3761_v9 = vld [vmem:[#allocation4 + $0x38] sm:$0xff] }
  0x47   :  { %450 = vmatpush.msra.mxu1 %v3747_v32  ;;  %489 = vmatpush.msra.mxu3 %v3751_v45 }
  0x48   :  { %431 = vmatpush.msrb.mxu0 %v3739_v19  ;;  %3048 = vmatmul.msk.f32.gmra.mxu1 %vm115_vm1, %v100_v59  ;;  %v3766_v19 = vld [vmem:[#allocation4 + $0x18] sm:$0xff] }
  0x49   :  { %3057 = vmatmul.msk.f32.gmra.mxu2 %vm115_vm1, %v100_v59  ;;  %432 = vmatmul.f32.vlgmr.msrb.gmra.mxu0 %v5467_v2 }
  0x4a   :  { %3066 = vmatmul.msk.f32.gmra.mxu3 %vm115_vm1, %v100_v59  ;;  %471 = vmatpush.msra.mxu2 %v3753_v63  ;;  %v5624_v59 = vld [vmem:[#allocation20_spill] sm:$0xff] }
  0x4b   :  { %451 = vmatpush.msra.mxu1 %v3757_v3  ;;  %597 = vmatpush.msra.mxu0 %v3545_v11 }
  0x4c   :  { %490 = vmatpush.msra.mxu3 %v3761_v9  ;;  %637 = vmatpush.msrb.mxu2 %v3539_v10 }
  0x4d   :  { %617 = vmatpush.msrb.mxu1 %v3547_v12  ;;  %598 = vmatpush.msra.mxu0 %v3557_v15 }
  0x4e   :  { %491 = vmatpush.msra.mxu3 %v3766_v19  ;;  %638 = vmatpush.msrb.mxu2 %v3551_v13 }
  0x4f   :  { %618 = vmatpush.msrb.mxu1 %v3559_v16  ;;  %599 = vmatpush.msra.mxu0 %v3574_v20 }
  0x50   :  { %3049 = vmatmul.msk.f32.gmra.mxu1 %vm115_vm1, %v3520_v4  ;;  %657 = vmatpush.msrb.mxu3 %v3553_v14 }
  0x51   :  { %3058 = vmatmul.msk.f32.gmra.mxu2 %vm115_vm1, %v3520_v4  ;;  %619 = vmatpush.msrb.mxu1 %v3577_v21 }
  0x52   :  { %3067 = vmatmul.msk.f32.gmra.mxu3 %vm115_vm1, %v3520_v4  ;;  %639 = vmatpush.msrb.mxu2 %v3563_v17  ;;  %v5621_v4 = vld [vmem:[#allocation17_spill] sm:$0xff] }
  0x53   :  { %658 = vmatpush.msrb.mxu3 %v3565_v18  ;;  %600 = vmatpush.msra.mxu0 %v3588_v24 }
  0x54   :  { %620 = vmatpush.msrb.mxu1 %v3590_v25  ;;  %640 = vmatpush.msrb.mxu2 %v3582_v22 }
  0x55   :  { %659 = vmatpush.msrb.mxu3 %v3584_v23  ;;  %601 = vmatpush.msra.mxu0 %v3598_v28 }
  0x56   :  { %621 = vmatpush.msrb.mxu1 %v3602_v29  ;;  %641 = vmatpush.msrb.mxu2 %v3594_v26 }
  0x57   :  { %660 = vmatpush.msrb.mxu3 %v3596_v27  ;;  %602 = vmatpush.msra.mxu0 %v3617_v33 }
  0x58   :  { %3050 = vmatmul.msk.f32.gmra.mxu1 %vm115_vm1, %v3527_v5  ;;  %642 = vmatpush.msrb.mxu2 %v3606_v30 }
  0x59   :  { %3059 = vmatmul.msk.f32.gmra.mxu2 %vm115_vm1, %v3527_v5  ;;  %661 = vmatpush.msrb.mxu3 %v3608_v31 }
  0x5a   :  { %3068 = vmatmul.msk.f32.gmra.mxu3 %vm115_vm1, %v3527_v5  ;;  %622 = vmatpush.msrb.mxu1 %v3620_v34  ;;  %v5622_v5 = vld [vmem:[#allocation18_spill] sm:$0xff] }
  0x5b   :  { %662 = vmatpush.msrb.mxu3 %v3627_v36  ;;  %603 = vmatpush.msra.mxu0 %v3631_v37 }
  0x5c   :  { %623 = vmatpush.msrb.mxu1 %v3633_v38  ;;  %643 = vmatpush.msrb.mxu2 %v3625_v35 }
  0x5d   :  { %663 = vmatpush.msrb.mxu3 %v3639_v40  ;;  %604 = vmatpush.msra.mxu0 %v3641_v41 }
  0x5e   :  { %624 = vmatpush.msrb.mxu1 %v3645_v42  ;;  %644 = vmatpush.msrb.mxu2 %v3637_v39 }
  0x5f   :  { %664 = vmatpush.msrb.mxu3 %v3651_v44  ;;  %605 = vmatpush.msra.mxu0 %v3660_v46 }
  0x60   :  { %3051 = vmatmul.msk.f32.gmra.mxu1 %vm115_vm1, %v3532_v6  ;;  %645 = vmatpush.msrb.mxu2 %v3649_v43 }
  0x61   :  { %3060 = vmatmul.msk.f32.gmra.mxu2 %vm115_vm1, %v3532_v6  ;;  %625 = vmatpush.msrb.mxu1 %v3663_v47 }
  0x62   :  { %3069 = vmatmul.msk.f32.gmra.mxu3 %vm115_vm1, %v3532_v6  ;;  %606 = vmatpush.msra.mxu0 %v3674_v50  ;;  %v5623_v6 = vld [vmem:[#allocation19_spill] sm:$0xff] }
  0x63   :  { %665 = vmatpush.msrb.mxu3 %v3670_v49  ;;  %626 = vmatpush.msrb.mxu1 %v3676_v51 }
  0x64   :  { %646 = vmatpush.msrb.mxu2 %v3668_v48  ;;  %607 = vmatpush.msra.mxu0 %v3684_v54 }
  0x65   :  { %666 = vmatpush.msrb.mxu3 %v3682_v53  ;;  %627 = vmatpush.msrb.mxu1 %v3688_v55 }
  0x66   :  { %647 = vmatpush.msrb.mxu2 %v3680_v52  ;;  %608 = vmatpush.msra.mxu0 %v3696_v58 }
  0x67   :  { %667 = vmatpush.msrb.mxu3 %v3694_v57  ;;  %628 = vmatpush.msrb.mxu1 %v3711_v61 }
  0x68   :  { %452 = vmatmul.f32.vlgmr.msra.gmra.mxu1 %v5467_v2  ;;  %648 = vmatpush.msrb.mxu2 %v3692_v56 }
  0x69   :  { %472 = vmatmul.f32.vlgmr.msra.gmra.mxu2 %v5467_v2  ;;  %668 = vmatpush.msrb.mxu3 %v3719_v0 }
  0x6a   :  { %492 = vmatmul.f32.vlgmr.msra.gmra.mxu3 %v5467_v2  ;;  %609 = vmatpush.msra.mxu0 %v3705_v60  ;;  %v5625_v2 = vld [vmem:[#allocation21_spill] sm:$0xff] }
  0x6b   :  { %629 = vmatpush.msrb.mxu1 %v3723_v1  ;;  %649 = vmatpush.msrb.mxu2 %v3713_v62 }
  0x6c   :  { %669 = vmatpush.msrb.mxu3 %v3731_v7  ;;  %610 = vmatpush.msra.mxu0 %v5621_v4 }
  0x6d   :  { %630 = vmatpush.msrb.mxu1 %v3735_v8  ;;  %650 = vmatpush.msrb.mxu2 %v5622_v5 }
  0x6e   :  { %670 = vmatpush.msrb.mxu3 %v3751_v45  ;;  %611 = vmatpush.msra.mxu0 %v5623_v6 }
  0x6f   :  { %631 = vmatpush.msrb.mxu1 %v3747_v32  ;;  %651 = vmatpush.msrb.mxu2 %v5624_v59 }
  0x70   :  { %671 = vmatpush.msrb.mxu3 %v3761_v9  ;;  %612 = vmatpush.msra.mxu0 %v5625_v2 }
  0x71   :  { %632 = vmatpush.msrb.mxu1 %v3757_v3  ;;  %652 = vmatpush.msrb.mxu2 %v3753_v63 }
  0x72   :  { %672 = vmatpush.msrb.mxu3 %v3766_v19  ;;  %779 = vmatpush.msrb.mxu0 %v3545_v11 }
  0x73   :  { %799 = vmatpush.msra.mxu1 %v3547_v12  ;;  %819 = vmatpush.msra.mxu2 %v3539_v10 }
  0x74   :  { %839 = vmatpush.msra.mxu3 %v3553_v14  ;;  %780 = vmatpush.msrb.mxu0 %v3557_v15 }
  0x75   :  { %800 = vmatpush.msra.mxu1 %v3559_v16  ;;  %820 = vmatpush.msra.mxu2 %v3551_v13 }
  0x76   :  { %840 = vmatpush.msra.mxu3 %v3565_v18  ;;  %781 = vmatpush.msrb.mxu0 %v3574_v20 }
  0x77   :  { %801 = vmatpush.msra.mxu1 %v3577_v21  ;;  %821 = vmatpush.msra.mxu2 %v3563_v17 }
  0x78   :  { %841 = vmatpush.msra.mxu3 %v3584_v23  ;;  %782 = vmatpush.msrb.mxu0 %v3588_v24 }
  0x79   :  { %802 = vmatpush.msra.mxu1 %v3590_v25  ;;  %822 = vmatpush.msra.mxu2 %v3582_v22 }
  0x7a   :  { %842 = vmatpush.msra.mxu3 %v3596_v27  ;;  %783 = vmatpush.msrb.mxu0 %v3598_v28 }
  0x7b   :  { %803 = vmatpush.msra.mxu1 %v3602_v29  ;;  %823 = vmatpush.msra.mxu2 %v3594_v26 }
  0x7c   :  { %843 = vmatpush.msra.mxu3 %v3608_v31  ;;  %784 = vmatpush.msrb.mxu0 %v3617_v33 }
  0x7d   :  { %804 = vmatpush.msra.mxu1 %v3620_v34  ;;  %824 = vmatpush.msra.mxu2 %v3606_v30 }
  0x7e   :  { %844 = vmatpush.msra.mxu3 %v3627_v36  ;;  %785 = vmatpush.msrb.mxu0 %v3631_v37 }
  0x7f   :  { %805 = vmatpush.msra.mxu1 %v3633_v38  ;;  %825 = vmatpush.msra.mxu2 %v3625_v35 }
  0x80   :  { %845 = vmatpush.msra.mxu3 %v3639_v40  ;;  %786 = vmatpush.msrb.mxu0 %v3641_v41 }
  0x81   :  { %806 = vmatpush.msra.mxu1 %v3645_v42  ;;  %826 = vmatpush.msra.mxu2 %v3637_v39 }
  0x82   :  { %846 = vmatpush.msra.mxu3 %v3651_v44  ;;  %787 = vmatpush.msrb.mxu0 %v3660_v46 }
  0x83   :  { %807 = vmatpush.msra.mxu1 %v3663_v47  ;;  %827 = vmatpush.msra.mxu2 %v3649_v43  ;;  %v496_v43 = vld [vmem:[%s5450_s3] sm:$0xf] }
  0x84   :  { %847 = vmatpush.msra.mxu3 %v3670_v49  ;;  %788 = vmatpush.msrb.mxu0 %v3674_v50  ;;  %v498_v47 = vperm.slane %v496_v43, 0  ;;  %v499_v49 = vperm.slane %v496_v43, 1 }
  0x85   :  { %808 = vmatpush.msra.mxu1 %v3676_v51  ;;  %828 = vmatpush.msra.mxu2 %v3668_v48 }
  0x86   :  { %848 = vmatpush.msra.mxu3 %v3682_v53  ;;  %789 = vmatpush.msrb.mxu0 %v3684_v54 }
  0x87   :  { %809 = vmatpush.msra.mxu1 %v3688_v55  ;;  %829 = vmatpush.msra.mxu2 %v3680_v52  ;;  %v500_v55 = vperm.slane %v496_v43, 2 }
  0x88   :  { %849 = vmatpush.msra.mxu3 %v3694_v57  ;;  %790 = vmatpush.msrb.mxu0 %v3696_v58  ;;  %v501_v57 = vperm.slane %v496_v43, 3 }
  0x89   :  { %810 = vmatpush.msra.mxu1 %v3711_v61  ;;  %830 = vmatpush.msra.mxu2 %v3692_v56 }
  0x8a   :  { %850 = vmatpush.msra.mxu3 %v3719_v0  ;;  %791 = vmatpush.msrb.mxu0 %v3705_v60 }
  0x8b   :  { %811 = vmatpush.msra.mxu1 %v3723_v1  ;;  %831 = vmatpush.msra.mxu2 %v3713_v62 }
  0x8c   :  { %851 = vmatpush.msra.mxu3 %v3731_v7  ;;  %792 = vmatpush.msrb.mxu0 %v5621_v4 }
  0x8d   :  { %812 = vmatpush.msra.mxu1 %v3735_v8  ;;  %832 = vmatpush.msra.mxu2 %v5622_v5 }
  0x8e   :  { %852 = vmatpush.msra.mxu3 %v3751_v45  ;;  %793 = vmatpush.msrb.mxu0 %v5623_v6 }
  0x8f   :  { %813 = vmatpush.msra.mxu1 %v3747_v32  ;;  %833 = vmatpush.msra.mxu2 %v5624_v59 }
  0x90   :  { %853 = vmatpush.msra.mxu3 %v3761_v9  ;;  %794 = vmatpush.msrb.mxu0 %v5625_v2 }
  0x91   :  { %814 = vmatpush.msra.mxu1 %v3757_v3  ;;  %834 = vmatpush.msra.mxu2 %v3753_v63 }
  0x92   :  { %854 = vmatpush.msra.mxu3 %v3766_v19 }
  0x9c   :  { %v3919_v10 = vpop.f32.mrf.mxu1  ;;  %v166_v14 = vpop.f32.mrf.mxu0 }
  0x9d   :  { %5626 = vst [vmem:[#allocation17_spill] sm:$0xff] %v3919_v10  ;;  %v4150_v10 = vld [vmem:[#allocation4 + $0x78] sm:$0xff] }
  0x9e   :  { %5660 = vst [vmem:[#allocation51_spill] sm:$0xff] %v4150_v10 }
  0xa3   :  { %v3921_v11 = vpop.f32.mrf.mxu2  ;;  %v3923_v12 = vpop.f32.mrf.mxu3 }
  0xa4   :  { %5627 = vst [vmem:[#allocation18_spill] sm:$0xff] %v3921_v11  ;;  %v3933_v22 = vpop.f32.mrf.mxu0  ;;  %v4138_v11 = vld [vmem:[#allocation4 + $0x98] sm:$0xff] }
  0xa5   :  { %5628 = vst [vmem:[#allocation19_spill] sm:$0xff] %v3923_v12  ;;  %v207_v13 = vpop.f32.mrf.mxu1  ;;  %v4120_v12 = vld [vmem:[#allocation4 + $0xa8] sm:$0xff] }
  0xa6   :  { %5650 = vst [vmem:[#allocation41_spill] sm:$0xff] %v4120_v12 }
  0xa7   :  { %5656 = vst [vmem:[#allocation47_spill] sm:$0xff] %v4138_v11 }
  0xab   :  { %v248_v15 = vpop.f32.mrf.mxu2 }
  0xac   :  { %v289_v16 = vpop.f32.mrf.mxu3  ;;  %v3941_v26 = vpop.f32.mrf.mxu0 }
  0xad   :  { %v3925_v17 = vpop.f32.mrf.mxu1 }
  0xb3   :  { %v3927_v18 = vpop.f32.mrf.mxu2 }
  0xb4   :  { %v3929_v20 = vpop.f32.mrf.mxu3  ;;  %v3949_v30 = vpop.f32.mrf.mxu0 }
  0xb5   :  { %v3931_v21 = vpop.f32.mrf.mxu1  ;;  %5633 = vst [vmem:[#allocation24_spill] sm:$0xff] %v3949_v30  ;;  %v4173_v30 = vld [vmem:[#allocation4 + $0x30] sm:$0xff] }
  0xb6   :  { %5667 = vst [vmem:[#allocation58_spill] sm:$0xff] %v4173_v30 }
  0xbb   :  { %v3935_v23 = vpop.f32.mrf.mxu2 }
  0xbc   :  { %v3937_v24 = vpop.f32.mrf.mxu3 }
  0xbd   :  { %v3939_v25 = vpop.f32.mrf.mxu1  ;;  %v3957_v35 = vpop.f32.mrf.mxu0 }
  0xbe   :  { %5629 = vst [vmem:[#allocation20_spill] sm:$0xff] %v3939_v25  ;;  %v4171_v25 = vld [vmem:[#allocation4 + $0x28] sm:$0xff] }
  0xbf   :  { %5637 = vst [vmem:[#allocation28_spill] sm:$0xff] %v3957_v35  ;;  %v859_v35 = vld [vmem:[%s5450_s3] sm:$0xf] }
  0xc0   :  { %5666 = vst [vmem:[#allocation57_spill] sm:$0xff] %v4171_v25 }
  0xc4   :  { %v3943_v27 = vpop.f32.mrf.mxu2  ;;  %v3945_v28 = vpop.f32.mrf.mxu3 }
  0xc5   :  { %5630 = vst [vmem:[#allocation21_spill] sm:$0xff] %v3943_v27  ;;  %v3947_v29 = vpop.f32.mrf.mxu1  ;;  %v4169_v27 = vld [vmem:[#allocation4 + $0x20] sm:$0xff] }
  0xc6   :  { %5631 = vst [vmem:[#allocation22_spill] sm:$0xff] %v3945_v28  ;;  %v433_v42 = vpop.f32.mrf.mxu0  ;;  %v4165_v28 = vld [vmem:[#allocation4 + $0x58] sm:$0xff] }
  0xc7   :  { %5632 = vst [vmem:[#allocation23_spill] sm:$0xff] %v3947_v29  ;;  %v434_v46 = vadd.f32 %v433_v42, %v166_v14  ;;  %v677_v14 = vld [vmem:[%s5450_s3] sm:$0xf]  ;;  %v4158_v29 = vld [vmem:[#allocation4 + $0x50] sm:$0xff] }
  0xc8   :  { %5663 = vst [vmem:[#allocation54_spill] sm:$0xff] %v4158_v29 }
  0xc9   :  { %v506_v50 = vadd.f32 %v498_v47, %v434_v46  ;;  %5664 = vst [vmem:[#allocation55_spill] sm:$0xff] %v4165_v28 }
  0xca   :  { %5665 = vst [vmem:[#allocation56_spill] sm:$0xff] %v4169_v27 }
  0xcb   :  { %3084 = vtanh.f32 %v506_v50 }
  0xcc   :  { %v3951_v31 = vpop.f32.mrf.mxu2 }
  0xcd   :  { %5634 = vst [vmem:[#allocation25_spill] sm:$0xff] %v3951_v31  ;;  %v3953_v33 = vpop.f32.mrf.mxu3  ;;  %v3955_v34 = vpop.f32.mrf.mxu1  ;;  %v4156_v31 = vld [vmem:[#allocation4 + $0x48] sm:$0xff] }
  0xce   :  { %5635 = vst [vmem:[#allocation26_spill] sm:$0xff] %v3953_v33  ;;  %v4154_v33 = vld [vmem:[#allocation4 + $0x40] sm:$0xff] }
  0xcf   :  { %5636 = vst [vmem:[#allocation27_spill] sm:$0xff] %v3955_v34  ;;  %v4146_v34 = vld [vmem:[#allocation4 + $0x70] sm:$0xff] }
  0xd0   :  { %5659 = vst [vmem:[#allocation50_spill] sm:$0xff] %v4146_v34 }
  0xd1   :  { %v3085_v62 = vpop.eup %3084  ;;  %5661 = vst [vmem:[#allocation52_spill] sm:$0xff] %v4154_v33 }
  0xd2   :  { %v514_v3 = vadd.f32 1.0, %v3085_v62  ;;  %5662 = vst [vmem:[#allocation53_spill] sm:$0xff] %v4156_v31 }
  0xd4   :  { %v3959_v36 = vpop.f32.mrf.mxu2  ;;  %v515_v8 = vmul.f32 0.5, %v514_v3 }
  0xd5   :  { %5638 = vst [vmem:[#allocation29_spill] sm:$0xff] %v3959_v36  ;;  %v3961_v37 = vpop.f32.mrf.mxu3  ;;  %v3963_v38 = vpop.f32.mrf.mxu1  ;;  %v4144_v36 = vld [vmem:[#allocation4 + $0x68] sm:$0xff] }
  0xd6   :  { %5639 = vst [vmem:[#allocation30_spill] sm:$0xff] %v3961_v37  ;;  %v4142_v37 = vld [vmem:[#allocation4 + $0x60] sm:$0xff] }
  0xd7   :  { %5640 = vst [vmem:[#allocation31_spill] sm:$0xff] %v3963_v38  ;;  %v4134_v38 = vld [vmem:[#allocation4 + $0x90] sm:$0xff] }
  0xd8   :  { %5655 = vst [vmem:[#allocation46_spill] sm:$0xff] %v4134_v38 }
  0xd9   :  { %5657 = vst [vmem:[#allocation48_spill] sm:$0xff] %v4142_v37 }
  0xda   :  { %5658 = vst [vmem:[#allocation49_spill] sm:$0xff] %v4144_v36 }
  0xdc   :  { %v3965_v39 = vpop.f32.mrf.mxu2 }
  0xdd   :  { %5641 = vst [vmem:[#allocation32_spill] sm:$0xff] %v3965_v39  ;;  %v3967_v40 = vpop.f32.mrf.mxu3  ;;  %v3969_v41 = vpop.f32.mrf.mxu1  ;;  %v4132_v39 = vld [vmem:[#allocation4 + $0x88] sm:$0xff] }
  0xde   :  { %5642 = vst [vmem:[#allocation33_spill] sm:$0xff] %v3967_v40  ;;  %v4130_v40 = vld [vmem:[#allocation4 + $0x80] sm:$0xff] }
  0xdf   :  { %5643 = vst [vmem:[#allocation34_spill] sm:$0xff] %v3969_v41  ;;  %v4118_v41 = vld [vmem:[#allocation4 + $0xa0] sm:$0xff] }
  0xe0   :  { %5653 = vst [vmem:[#allocation44_spill] sm:$0xff] %v4130_v40 }
  0xe1   :  { %5654 = vst [vmem:[#allocation45_spill] sm:$0xff] %v4132_v39 }
  0xe4   :  { %v3974_v48 = vpop.f32.mrf.mxu2 }
  0xe5   :  { %5644 = vst [vmem:[#allocation35_spill] sm:$0xff] %v3974_v48  ;;  %v3976_v51 = vpop.f32.mrf.mxu3  ;;  %v453_v52 = vpop.f32.mrf.mxu1  ;;  %v4114_v48 = vld [vmem:[#allocation4 + $0xd8] sm:$0xff] }
  0xe6   :  { %5645 = vst [vmem:[#allocation36_spill] sm:$0xff] %v3976_v51  ;;  %v454_v53 = vadd.f32 %v453_v52, %v207_v13  ;;  %v681_v52 = vperm.slane %v677_v14, 2  ;;  %v4108_v51 = vld [vmem:[#allocation4 + $0xc8] sm:$0xff] }
  0xe7   :  { %5649 = vst [vmem:[#allocation40_spill] sm:$0xff] %v4114_v48 }
  0xe8   :  { %v507_v54 = vadd.f32 %v499_v49, %v454_v53 }
  0xea   :  { %3086 = vtanh.f32 %v507_v54 }
  0xec   :  { %v473_v56 = vpop.f32.mrf.mxu2 }
  0xed   :  { %v474_v58 = vadd.f32 %v473_v56, %v248_v15  ;;  %v493_v60 = vpop.f32.mrf.mxu3  ;;  %v679_v15 = vperm.slane %v677_v14, 0 }
  0xee   :  { %v494_v61 = vadd.f32 %v493_v60, %v289_v16  ;;  %v680_v16 = vperm.slane %v677_v14, 1 }
  0xef   :  { %v508_v63 = vadd.f32 %v500_v55, %v474_v58  ;;  %v682_v55 = vperm.slane %v677_v14, 3  ;;  %v4016_v14 = vld [vmem:[#allocation4 + $0x1d0] sm:$0xff] }
  0xf0   :  { %v3087_v0 = vpop.eup %3086  ;;  %v509_v1 = vadd.f32 %v501_v57, %v494_v61 }
  0xf1   :  { %v516_v2 = vadd.f32 1.0, %v3087_v0  ;;  %3088 = vtanh.f32 %v508_v63 }
  0xf2   :  { %3090 = vtanh.f32 %v509_v1 }
  0xf3   :  { %v517_v7 = vmul.f32 0.5, %v516_v2 }
  0xf5   :  { %v520_v19 = vmul.f32 0.0, %v517_v7 }
  0xf7   :  { %v3089_v9 = vpop.eup %3088 }
  0xf8   :  { %v521_v32 = vmul.f32 %v3089_v9, %v515_v8  ;;  %v3091_v45 = vpop.eup %3090 }
  0xf9   :  { %v518_v5 = vadd.f32 1.0, %v3091_v45  ;;  %v4002_v45 = vld [vmem:[#allocation4 + $0x1e8] sm:$0xff] }
  0xfa   :  { %v522_v4 = vadd.f32 %v521_v32, %v520_v19  ;;  %v4000_v32 = vld [vmem:[#allocation4 + $0x1e0] sm:$0xff] }
  0xfb   :  { %v519_v6 = vmul.f32 0.5, %v518_v5  ;;  %v4008_v5 = vld [vmem:[#allocation4 + $0x1f8] sm:$0xff] }
  0xfc   :  { %3092 = vtanh.f32 %v522_v4 }
 0x102   :  { %v3093_v59 = vpop.eup %3092 }
 0x103   :  { %v3978_v13 = vmul.f32 %v3093_v59, %v519_v6  ;;  %v4012_v6 = vld [vmem:[#allocation4 + $0x1c0] sm:$0xff]  ;;  %v4014_v59 = vld [vmem:[#allocation4 + $0x1c8] sm:$0xff] }
 0x105   :  { %5646 = vst [vmem:[#allocation37_spill] sm:$0xff] %v3978_v13  ;;  %613 = vmatmul.f32.vlgmr.msra.gmra.mxu0 %v3978_v13  ;;  %633 = vmatmul.f32.vlgmr.msrb.gmra.mxu1 %v3978_v13 }
 0x106   :  { %653 = vmatmul.f32.vlgmr.msrb.gmra.mxu2 %v3978_v13  ;;  %673 = vmatmul.f32.vlgmr.msrb.gmra.mxu3 %v3978_v13  ;;  %v4126_v13 = vld [vmem:[#allocation4 + $0xb8] sm:$0xff] }
 0x107   :  { %961 = vmatpush.msra.mxu0 %v4000_v32  ;;  %981 = vmatpush.msrb.mxu1 %v4002_v45  ;;  %5652 = vst [vmem:[#allocation43_spill] sm:$0xff] %v4126_v13 }
 0x108   :  { %1021 = vmatpush.msrb.mxu3 %v4008_v5 }
 0x109   :  { %962 = vmatpush.msra.mxu0 %v4012_v6  ;;  %982 = vmatpush.msrb.mxu1 %v4014_v59 }
 0x182   :  { %v614_v42 = vpop.f32.mrf.mxu0  ;;  %v634_v43 = vpop.f32.mrf.mxu1 }
 0x183   :  { %v615_v46 = vadd.f32 %v614_v42, %v3933_v22  ;;  %v635_v47 = vadd.f32 %v634_v43, %v3925_v17  ;;  %v4026_v42 = vld [vmem:[#allocation4 + $0x1a8] sm:$0xff]  ;;  %v4028_v43 = vld [vmem:[#allocation4 + $0x1b0] sm:$0xff] }
 0x184   :  { %983 = vmatpush.msrb.mxu1 %v4026_v42 }
 0x185   :  { %v687_v49 = vadd.f32 %v679_v15, %v615_v46  ;;  %v688_v50 = vadd.f32 %v680_v16, %v635_v47  ;;  %v4020_v15 = vld [vmem:[#allocation4 + $0x1d8] sm:$0xff]  ;;  %v4024_v16 = vld [vmem:[#allocation4 + $0x1a0] sm:$0xff] }
 0x186   :  { %1022 = vmatpush.msrb.mxu3 %v4020_v15  ;;  %963 = vmatpush.msra.mxu0 %v4024_v16  ;;  %v4032_v46 = vld [vmem:[#allocation4 + $0x1b8] sm:$0xff]  ;;  %v4036_v47 = vld [vmem:[#allocation4 + $0x180] sm:$0xff] }
 0x187   :  { %3094 = vtanh.f32 %v687_v49  ;;  %v4038_v49 = vld [vmem:[#allocation4 + $0x188] sm:$0xff] }
 0x188   :  { %3096 = vtanh.f32 %v688_v50  ;;  %1023 = vmatpush.msrb.mxu3 %v4032_v46  ;;  %v4040_v50 = vld [vmem:[#allocation4 + $0x190] sm:$0xff]  ;;  %964 = vmatpush.msra.mxu0 %v4036_v47 }
 0x189   :  { %v654_v53 = vpop.f32.mrf.mxu2  ;;  %v674_v54 = vpop.f32.mrf.mxu3  ;;  %984 = vmatpush.msrb.mxu1 %v4038_v49 }
 0x18a   :  { %v655_v56 = vadd.f32 %v654_v53, %v3927_v18  ;;  %v675_v57 = vadd.f32 %v674_v54, %v3929_v20  ;;  %v4048_v53 = vld [vmem:[#allocation4 + $0x160] sm:$0xff]  ;;  %v4050_v54 = vld [vmem:[#allocation4 + $0x168] sm:$0xff] }
 0x18b   :  { %965 = vmatpush.msra.mxu0 %v4048_v53  ;;  %985 = vmatpush.msrb.mxu1 %v4050_v54 }
 0x18c   :  { %v689_v58 = vadd.f32 %v681_v52, %v655_v56  ;;  %v690_v61 = vadd.f32 %v682_v55, %v675_v57  ;;  %v4044_v52 = vld [vmem:[#allocation4 + $0x198] sm:$0xff]  ;;  %v4052_v55 = vld [vmem:[#allocation4 + $0x170] sm:$0xff]  ;;  %v4060_v57 = vld [vmem:[#allocation4 + $0x140] sm:$0xff] }
 0x18d   :  { %v3095_v60 = vpop.eup %3094  ;;  %1024 = vmatpush.msrb.mxu3 %v4044_v52  ;;  %v4056_v56 = vld [vmem:[#allocation4 + $0x178] sm:$0xff]  ;;  %966 = vmatpush.msra.mxu0 %v4060_v57 }
 0x18e   :  { %v3097_v62 = vpop.eup %3096  ;;  %3098 = vtanh.f32 %v689_v58  ;;  %v695_v22 = vadd.f32 1.0, %v3095_v60  ;;  %v4062_v58 = vld [vmem:[#allocation4 + $0x148] sm:$0xff]  ;;  %v4064_v60 = vld [vmem:[#allocation4 + $0x150] sm:$0xff] }
 0x18f   :  { %v697_v63 = vadd.f32 1.0, %v3097_v62  ;;  %3100 = vtanh.f32 %v690_v61  ;;  %1025 = vmatpush.msrb.mxu3 %v4056_v56  ;;  %986 = vmatpush.msrb.mxu1 %v4062_v58  ;;  %v4068_v61 = vld [vmem:[#allocation4 + $0x158] sm:$0xff]  ;;  %v4072_v62 = vld [vmem:[#allocation4 + $0x120] sm:$0xff] }
 0x190   :  { %v696_v0 = vmul.f32 0.5, %v695_v22  ;;  %v4074_v22 = vld [vmem:[#allocation4 + $0x128] sm:$0xff]  ;;  %967 = vmatpush.msra.mxu0 %v4072_v62 }
 0x191   :  { %v698_v17 = vmul.f32 0.5, %v697_v63  ;;  %1026 = vmatpush.msrb.mxu3 %v4068_v61  ;;  %v4076_v63 = vld [vmem:[#allocation4 + $0x130] sm:$0xff]  ;;  %987 = vmatpush.msrb.mxu1 %v4074_v22 }
 0x193   :  { %v701_v2 = vmul.f32 %v698_v17, %v522_v4  ;;  %v4004_v4 = vld [vmem:[#allocation4 + $0x1f0] sm:$0xff]  ;;  %v4080_v17 = vld [vmem:[#allocation4 + $0x138] sm:$0xff] }
 0x194   :  { %v3099_v1 = vpop.eup %3098  ;;  %1001 = vmatpush.msrb.mxu2 %v4004_v4  ;;  %1027 = vmatpush.msrb.mxu3 %v4080_v17 }
 0x195   :  { %v702_v3 = vmul.f32 %v3099_v1, %v696_v0  ;;  %v3101_v7 = vpop.eup %3100  ;;  %v4084_v0 = vld [vmem:[#allocation4 + $0x100] sm:$0xff]  ;;  %v4086_v1 = vld [vmem:[#allocation4 + $0x108] sm:$0xff] }
 0x196   :  { %v699_v18 = vadd.f32 1.0, %v3101_v7  ;;  %1002 = vmatpush.msrb.mxu2 %v4016_v14  ;;  %968 = vmatpush.msra.mxu0 %v4084_v0  ;;  %v4096_v7 = vld [vmem:[#allocation4 + $0xe8] sm:$0xff] }
 0x197   :  { %v3991_v8 = vadd.f32 %v702_v3, %v701_v2  ;;  %v4088_v2 = vld [vmem:[#allocation4 + $0x110] sm:$0xff]  ;;  %988 = vmatpush.msrb.mxu1 %v4086_v1  ;;  %1028 = vmatpush.msrb.mxu3 %v3651_v44  ;;  %v4094_v3 = vld [vmem:[#allocation4 + $0xe0] sm:$0xff] }
 0x198   :  { %v700_v20 = vmul.f32 0.5, %v699_v18  ;;  %1003 = vmatpush.msrb.mxu2 %v4028_v43  ;;  %v4098_v18 = vld [vmem:[#allocation4 + $0xf0] sm:$0xff]  ;;  %969 = vmatpush.msra.mxu0 %v4094_v3 }
 0x199   :  { %3102 = vtanh.f32 %v3991_v8  ;;  %989 = vmatpush.msrb.mxu1 %v4096_v7  ;;  %v4110_v44 = vld [vmem:[#allocation4 + $0xd0] sm:$0xff] }
 0x19a   :  { %1004 = vmatpush.msrb.mxu2 %v4040_v50 }
 0x19b   :  { %990 = vmatpush.msrb.mxu1 %v4108_v51 }
 0x19c   :  { %1005 = vmatpush.msrb.mxu2 %v4052_v55 }
 0x19d   :  { %991 = vmatpush.msrb.mxu1 %v4120_v12 }
 0x19e   :  { %1006 = vmatpush.msrb.mxu2 %v4064_v60 }
 0x19f   :  { %v3103_v9 = vpop.eup %3102  ;;  %992 = vmatpush.msrb.mxu1 %v4132_v39 }
 0x1a0   :  { %v3994_v19 = vmul.f32 %v3103_v9, %v700_v20  ;;  %1007 = vmatpush.msrb.mxu2 %v4076_v63  ;;  %v4102_v20 = vld [vmem:[#allocation4 + $0xf8] sm:$0xff]  ;;  %v4106_v9 = vld [vmem:[#allocation4 + $0xc0] sm:$0xff] }
 0x1a1   :  { %5648 = vst [vmem:[#allocation39_spill] sm:$0xff] %v4102_v20  ;;  %1029 = vmatpush.msrb.mxu3 %v4102_v20  ;;  %970 = vmatpush.msra.mxu0 %v4106_v9  ;;  %v862_v20 = vperm.slane %v859_v35, 1 }
 0x1a2   :  { %5647 = vst [vmem:[#allocation38_spill] sm:$0xff] %v3994_v19  ;;  %795 = vmatmul.f32.vlgmr.msrb.gmra.mxu0 %v3994_v19  ;;  %815 = vmatmul.f32.vlgmr.msra.gmra.mxu1 %v3994_v19 }
 0x1a3   :  { %835 = vmatmul.f32.vlgmr.msra.gmra.mxu2 %v3994_v19  ;;  %855 = vmatmul.f32.vlgmr.msra.gmra.mxu3 %v3994_v19  ;;  %v4122_v19 = vld [vmem:[#allocation4 + $0xb0] sm:$0xff] }
 0x1a4   :  { %1008 = vmatpush.msrb.mxu2 %v4088_v2  ;;  %1030 = vmatpush.msrb.mxu3 %v4114_v48  ;;  %5651 = vst [vmem:[#allocation42_spill] sm:$0xff] %v4122_v19  ;;  %v861_v48 = vperm.slane %v859_v35, 0 }
 0x1a5   :  { %971 = vmatpush.msra.mxu0 %v4118_v41  ;;  %993 = vmatpush.msrb.mxu1 %v4144_v36 }
 0x1a6   :  { %1009 = vmatpush.msrb.mxu2 %v4098_v18  ;;  %1031 = vmatpush.msrb.mxu3 %v4126_v13  ;;  %v4181_v13 = vld [vmem:[#allocation4 + $0x8] sm:$0xff] }
 0x1a7   :  { %972 = vmatpush.msra.mxu0 %v4130_v40  ;;  %994 = vmatpush.msrb.mxu1 %v4156_v31  ;;  %5670 = vst [vmem:[#allocation61_spill] sm:$0xff] %v4181_v13 }
 0x1a8   :  { %1010 = vmatpush.msrb.mxu2 %v4110_v44  ;;  %1032 = vmatpush.msrb.mxu3 %v4138_v11  ;;  %v4179_v11 = vld [vmem:[#allocation4] sm:$0xff] }
 0x1a9   :  { %973 = vmatpush.msra.mxu0 %v4142_v37  ;;  %995 = vmatpush.msrb.mxu1 %v4171_v25  ;;  %5669 = vst [vmem:[#allocation60_spill] sm:$0xff] %v4179_v11 }
 0x1aa   :  { %1011 = vmatpush.msrb.mxu2 %v4122_v19  ;;  %1033 = vmatpush.msrb.mxu3 %v4150_v10  ;;  %v4177_v10 = vld [vmem:[#allocation4 + $0x38] sm:$0xff] }
 0x1ab   :  { %974 = vmatpush.msra.mxu0 %v4154_v33  ;;  %5668 = vst [vmem:[#allocation59_spill] sm:$0xff] %v4177_v10  ;;  %996 = vmatpush.msrb.mxu1 %v4181_v13 }
 0x1ac   :  { %1012 = vmatpush.msrb.mxu2 %v4134_v38  ;;  %1034 = vmatpush.msrb.mxu3 %v4165_v28  ;;  %v4185_v28 = vld [vmem:[#allocation4 + $0x10] sm:$0xff] }
 0x1ad   :  { %975 = vmatpush.msra.mxu0 %v4169_v27  ;;  %5671 = vst [vmem:[#allocation62_spill] sm:$0xff] %v4185_v28  ;;  %1163 = vmatpush.msra.mxu1 %v4002_v45 }
 0x1ae   :  { %1013 = vmatpush.msrb.mxu2 %v4146_v34  ;;  %1035 = vmatpush.msrb.mxu3 %v4177_v10 }
 0x1af   :  { %976 = vmatpush.msra.mxu0 %v4179_v11  ;;  %1164 = vmatpush.msra.mxu1 %v4014_v59 }
 0x1b0   :  { %1014 = vmatpush.msrb.mxu2 %v4158_v29  ;;  %v4187_v29 = vld [vmem:[#allocation4 + $0x18] sm:$0xff] }
 0x1b1   :  { %1036 = vmatpush.msrb.mxu3 %v4187_v29  ;;  %1143 = vmatpush.msrb.mxu0 %v4000_v32 }
 0x1b2   :  { %1015 = vmatpush.msrb.mxu2 %v4173_v30  ;;  %1165 = vmatpush.msra.mxu1 %v4026_v42 }
 0x1b3   :  { %1203 = vmatpush.msra.mxu3 %v4008_v5  ;;  %1144 = vmatpush.msrb.mxu0 %v4012_v6 }
 0x1b4   :  { %1016 = vmatpush.msrb.mxu2 %v4185_v28  ;;  %1166 = vmatpush.msra.mxu1 %v4038_v49 }
 0x1b5   :  { %1204 = vmatpush.msra.mxu3 %v4020_v15  ;;  %1145 = vmatpush.msrb.mxu0 %v4024_v16 }
 0x1b6   :  { %1183 = vmatpush.msra.mxu2 %v4004_v4  ;;  %1167 = vmatpush.msra.mxu1 %v4050_v54 }
 0x1b7   :  { %1205 = vmatpush.msra.mxu3 %v4032_v46  ;;  %1146 = vmatpush.msrb.mxu0 %v4036_v47 }
 0x1b8   :  { %1184 = vmatpush.msra.mxu2 %v4016_v14  ;;  %1168 = vmatpush.msra.mxu1 %v4062_v58 }
 0x1b9   :  { %1206 = vmatpush.msra.mxu3 %v4044_v52  ;;  %1147 = vmatpush.msrb.mxu0 %v4048_v53 }
 0x1ba   :  { %1185 = vmatpush.msra.mxu2 %v4028_v43  ;;  %1169 = vmatpush.msra.mxu1 %v4074_v22 }
 0x1bb   :  { %1207 = vmatpush.msra.mxu3 %v4056_v56  ;;  %1148 = vmatpush.msrb.mxu0 %v4060_v57 }
 0x1bc   :  { %1186 = vmatpush.msra.mxu2 %v4040_v50  ;;  %1170 = vmatpush.msra.mxu1 %v4086_v1 }
 0x1bd   :  { %1208 = vmatpush.msra.mxu3 %v4068_v61  ;;  %1149 = vmatpush.msrb.mxu0 %v4072_v62 }
 0x1be   :  { %1187 = vmatpush.msra.mxu2 %v4052_v55  ;;  %1171 = vmatpush.msra.mxu1 %v4096_v7 }
 0x1bf   :  { %1209 = vmatpush.msra.mxu3 %v4080_v17  ;;  %1150 = vmatpush.msrb.mxu0 %v4084_v0 }
 0x1c0   :  { %1188 = vmatpush.msra.mxu2 %v4064_v60  ;;  %1172 = vmatpush.msra.mxu1 %v4108_v51 }
 0x1c1   :  { %1151 = vmatpush.msrb.mxu0 %v4094_v3 }
 0x1c2   :  { %1189 = vmatpush.msra.mxu2 %v4076_v63  ;;  %1173 = vmatpush.msra.mxu1 %v4120_v12 }
 0x1c3   :  { %1152 = vmatpush.msrb.mxu0 %v4106_v9 }
 0x1c4   :  { %1190 = vmatpush.msra.mxu2 %v4088_v2  ;;  %1174 = vmatpush.msra.mxu1 %v4132_v39 }
 0x1c5   :  { %1153 = vmatpush.msrb.mxu0 %v4118_v41 }
 0x1c6   :  { %1191 = vmatpush.msra.mxu2 %v4098_v18  ;;  %1175 = vmatpush.msra.mxu1 %v4144_v36 }
 0x1c7   :  { %1154 = vmatpush.msrb.mxu0 %v4130_v40 }
 0x1c8   :  { %1192 = vmatpush.msra.mxu2 %v4110_v44 }
 0x1c9   :  { %1155 = vmatpush.msrb.mxu0 %v4142_v37 }
 0x1ca   :  { %1193 = vmatpush.msra.mxu2 %v4122_v19 }
 0x1cc   :  { %1194 = vmatpush.msra.mxu2 %v4134_v38 }
 0x1ce   :  { %1195 = vmatpush.msra.mxu2 %v4146_v34 }
 0x21f   :  { %v796_v31 = vpop.f32.mrf.mxu0  ;;  %v816_v27 = vpop.f32.mrf.mxu1 }
 0x220   :  { %v797_v25 = vadd.f32 %v796_v31, %v3941_v26  ;;  %v817_v33 = vadd.f32 %v816_v27, %v3931_v21  ;;  %v863_v21 = vperm.slane %v859_v35, 2  ;;  %v864_v27 = vperm.slane %v859_v35, 3 }
 0x222   :  { %v869_v10 = vadd.f32 %v861_v48, %v797_v25  ;;  %v870_v30 = vadd.f32 %v862_v20, %v817_v33 }
 0x224   :  { %3104 = vtanh.f32 %v869_v10 }
 0x225   :  { %3106 = vtanh.f32 %v870_v30 }
 0x226   :  { %v836_v25 = vpop.f32.mrf.mxu2  ;;  %v856_v26 = vpop.f32.mrf.mxu3 }
 0x227   :  { %v837_v31 = vadd.f32 %v836_v25, %v3935_v23  ;;  %v857_v10 = vadd.f32 %v856_v26, %v3937_v24 }
 0x229   :  { %v871_v30 = vadd.f32 %v863_v21, %v837_v31  ;;  %v872_v35 = vadd.f32 %v864_v27, %v857_v10 }
 0x22a   :  { %v3105_v33 = vpop.eup %3104 }
 0x22b   :  { %v3107_v23 = vpop.eup %3106  ;;  %3108 = vtanh.f32 %v871_v30  ;;  %v877_v24 = vadd.f32 1.0, %v3105_v33  ;;  %v5672_v33 = vld [vmem:[#allocation52_spill] sm:$0xff] }
 0x22c   :  { %v879_v48 = vadd.f32 1.0, %v3107_v23  ;;  %3110 = vtanh.f32 %v872_v35  ;;  %1156 = vmatpush.msrb.mxu0 %v5672_v33  ;;  %v5673_v35 = vld [vmem:[#allocation53_spill] sm:$0xff] }
 0x22d   :  { %v878_v21 = vmul.f32 0.5, %v877_v24  ;;  %1176 = vmatpush.msra.mxu1 %v5673_v35  ;;  %v5674_v24 = vld [vmem:[#allocation54_spill] sm:$0xff] }
 0x22e   :  { %v880_v20 = vmul.f32 0.5, %v879_v48  ;;  %1196 = vmatpush.msra.mxu2 %v5674_v24 }
 0x230   :  { %v883_v26 = vmul.f32 %v880_v20, %v3991_v8  ;;  %v5676_v20 = vld [vmem:[#allocation56_spill] sm:$0xff] }
 0x231   :  { %v3109_v25 = vpop.eup %3108  ;;  %1157 = vmatpush.msrb.mxu0 %v5676_v20 }
 0x232   :  { %v884_v27 = vmul.f32 %v3109_v25, %v878_v21  ;;  %v3111_v31 = vpop.eup %3110  ;;  %v5677_v21 = vld [vmem:[#allocation57_spill] sm:$0xff]  ;;  %v5678_v25 = vld [vmem:[#allocation58_spill] sm:$0xff] }
 0x233   :  { %v881_v8 = vadd.f32 1.0, %v3111_v31  ;;  %1177 = vmatpush.msra.mxu1 %v5677_v21  ;;  %1197 = vmatpush.msra.mxu2 %v5678_v25  ;;  %v5680_v31 = vld [vmem:[#allocation40_spill] sm:$0xff] }
 0x234   :  { %v4234_v10 = vadd.f32 %v884_v27, %v883_v26  ;;  %1158 = vmatpush.msrb.mxu0 %v4179_v11  ;;  %v4310_v26 = vld [vmem:[#allocation4 + $0x118] sm:$0xff] }
 0x235   :  { %v882_v30 = vmul.f32 0.5, %v881_v8  ;;  %1178 = vmatpush.msra.mxu1 %v4181_v13  ;;  %1198 = vmatpush.msra.mxu2 %v4185_v28  ;;  %v5679_v27 = vld [vmem:[#allocation39_spill] sm:$0xff] }
 0x236   :  { %3112 = vtanh.f32 %v4234_v10  ;;  %1210 = vmatpush.msra.mxu3 %v4310_v26  ;;  %v5681_v8 = vld [vmem:[#allocation43_spill] sm:$0xff] }
 0x238   :  { %1211 = vmatpush.msra.mxu3 %v5679_v27 }
 0x23a   :  { %1212 = vmatpush.msra.mxu3 %v5680_v31 }
 0x23c   :  { %v3113_v23 = vpop.eup %3112  ;;  %1213 = vmatpush.msra.mxu3 %v5681_v8 }
 0x23d   :  { %v4250_v48 = vmul.f32 %v3113_v23, %v882_v30  ;;  %v5682_v30 = vld [vmem:[#allocation47_spill] sm:$0xff] }
 0x23e   :  { %1214 = vmatpush.msra.mxu3 %v5682_v30  ;;  %v5683_v23 = vld [vmem:[#allocation51_spill] sm:$0xff] }
 0x23f   :  { %5675 = vst [vmem:[#allocation63_spill] sm:$0xff] %v4250_v48  ;;  %977 = vmatmul.f32.vlgmr.msra.gmra.mxu0 %v4250_v48  ;;  %997 = vmatmul.f32.vlgmr.msrb.gmra.mxu1 %v4250_v48 }
 0x240   :  { %1017 = vmatmul.f32.vlgmr.msrb.gmra.mxu2 %v4250_v48  ;;  %1037 = vmatmul.f32.vlgmr.msrb.gmra.mxu3 %v4250_v48  ;;  %v1041_v48 = vld [vmem:[%s5450_s3] sm:$0xf] }
 0x241   :  { %1325 = vmatpush.msra.mxu0 %v4000_v32  ;;  %1345 = vmatpush.msrb.mxu1 %v4002_v45 }
 0x242   :  { %1365 = vmatpush.msrb.mxu2 %v4004_v4  ;;  %1215 = vmatpush.msra.mxu3 %v5683_v23 }
 0x243   :  { %1326 = vmatpush.msra.mxu0 %v4012_v6  ;;  %1346 = vmatpush.msrb.mxu1 %v4014_v59 }
 0x244   :  { %1366 = vmatpush.msrb.mxu2 %v4016_v14 }
 0x245   :  { %1327 = vmatpush.msra.mxu0 %v4024_v16  ;;  %1347 = vmatpush.msrb.mxu1 %v4026_v42 }
 0x246   :  { %1367 = vmatpush.msrb.mxu2 %v4028_v43 }
 0x247   :  { %1328 = vmatpush.msra.mxu0 %v4036_v47  ;;  %1348 = vmatpush.msrb.mxu1 %v4038_v49 }
 0x248   :  { %1368 = vmatpush.msrb.mxu2 %v4040_v50 }
 0x249   :  { %1329 = vmatpush.msra.mxu0 %v4048_v53  ;;  %1349 = vmatpush.msrb.mxu1 %v4050_v54 }
 0x24a   :  { %1369 = vmatpush.msrb.mxu2 %v4052_v55 }
 0x24b   :  { %1330 = vmatpush.msra.mxu0 %v4060_v57  ;;  %1350 = vmatpush.msrb.mxu1 %v4062_v58 }
 0x24c   :  { %1370 = vmatpush.msrb.mxu2 %v4064_v60 }
 0x24d   :  { %1331 = vmatpush.msra.mxu0 %v4072_v62  ;;  %1351 = vmatpush.msrb.mxu1 %v4074_v22 }
 0x24e   :  { %1371 = vmatpush.msrb.mxu2 %v4076_v63 }
 0x24f   :  { %1332 = vmatpush.msra.mxu0 %v4084_v0  ;;  %1352 = vmatpush.msrb.mxu1 %v4086_v1 }
 0x250   :  { %1372 = vmatpush.msrb.mxu2 %v4088_v2 }
 0x251   :  { %1333 = vmatpush.msra.mxu0 %v4094_v3  ;;  %1353 = vmatpush.msrb.mxu1 %v4096_v7 }
 0x252   :  { %1373 = vmatpush.msrb.mxu2 %v4098_v18 }
 0x253   :  { %1334 = vmatpush.msra.mxu0 %v4106_v9  ;;  %1354 = vmatpush.msrb.mxu1 %v4108_v51 }
 0x254   :  { %1374 = vmatpush.msrb.mxu2 %v4110_v44 }
 0x255   :  { %1335 = vmatpush.msra.mxu0 %v4118_v41  ;;  %1355 = vmatpush.msrb.mxu1 %v4120_v12  ;;  %v5688_v12 = vld [vmem:[#allocation21_spill] sm:$0xff] }
 0x256   :  { %1375 = vmatpush.msrb.mxu2 %v4122_v19  ;;  %v1046_v19 = vperm.slane %v1041_v48, 3 }
 0x257   :  { %1336 = vmatpush.msra.mxu0 %v4130_v40  ;;  %1356 = vmatpush.msrb.mxu1 %v4132_v39 }
 0x258   :  { %1376 = vmatpush.msrb.mxu2 %v4134_v38  ;;  %v1045_v38 = vperm.slane %v1041_v48, 2 }
 0x259   :  { %1337 = vmatpush.msra.mxu0 %v4142_v37  ;;  %1357 = vmatpush.msrb.mxu1 %v4144_v36 }
 0x25a   :  { %1377 = vmatpush.msrb.mxu2 %v4146_v34 }
 0x25b   :  { %1338 = vmatpush.msra.mxu0 %v5672_v33  ;;  %1358 = vmatpush.msrb.mxu1 %v5673_v35  ;;  %v5687_v33 = vld [vmem:[#allocation20_spill] sm:$0xff] }
 0x25c   :  { %1378 = vmatpush.msrb.mxu2 %v5674_v24  ;;  %v5686_v24 = vld [vmem:[#allocation24_spill] sm:$0xff] }
 0x25d   :  { %1339 = vmatpush.msra.mxu0 %v5676_v20  ;;  %1359 = vmatpush.msrb.mxu1 %v5677_v21 }
 0x25e   :  { %1379 = vmatpush.msrb.mxu2 %v5678_v25  ;;  %v1044_v25 = vperm.slane %v1041_v48, 1 }
 0x25f   :  { %1340 = vmatpush.msra.mxu0 %v4179_v11  ;;  %1360 = vmatpush.msrb.mxu1 %v4181_v13  ;;  %v5684_v13 = vld [vmem:[#allocation55_spill] sm:$0xff]  ;;  %v1043_v11 = vperm.slane %v1041_v48, 0 }
 0x260   :  { %1380 = vmatpush.msrb.mxu2 %v4185_v28  ;;  %1216 = vmatpush.msra.mxu3 %v5684_v13  ;;  %v5685_v28 = vld [vmem:[#allocation59_spill] sm:$0xff] }
 0x262   :  { %1217 = vmatpush.msra.mxu3 %v5685_v28 }
 0x264   :  { %1218 = vmatpush.msra.mxu3 %v4187_v29 }
 0x266   :  { %1385 = vmatpush.msrb.mxu3 %v4008_v5 }
 0x268   :  { %1386 = vmatpush.msrb.mxu3 %v4020_v15 }
 0x26a   :  { %1387 = vmatpush.msrb.mxu3 %v4032_v46 }
 0x26c   :  { %1388 = vmatpush.msrb.mxu3 %v4044_v52 }
 0x26e   :  { %1389 = vmatpush.msrb.mxu3 %v4056_v56 }
 0x270   :  { %1390 = vmatpush.msrb.mxu3 %v4068_v61 }
 0x272   :  { %1391 = vmatpush.msrb.mxu3 %v4080_v17 }
 0x274   :  { %1392 = vmatpush.msrb.mxu3 %v4310_v26 }
 0x276   :  { %1393 = vmatpush.msrb.mxu3 %v5679_v27 }
 0x278   :  { %1394 = vmatpush.msrb.mxu3 %v5680_v31 }
 0x27a   :  { %1395 = vmatpush.msrb.mxu3 %v5681_v8 }
 0x27c   :  { %1396 = vmatpush.msrb.mxu3 %v5682_v30 }
 0x27e   :  { %1397 = vmatpush.msrb.mxu3 %v5683_v23 }
 0x280   :  { %1398 = vmatpush.msrb.mxu3 %v5684_v13 }
 0x282   :  { %1399 = vmatpush.msrb.mxu3 %v5685_v28 }
 0x284   :  { %1400 = vmatpush.msrb.mxu3 %v4187_v29 }
 0x2bc   :  { %v978_v21 = vpop.f32.mrf.mxu0  ;;  %v998_v20 = vpop.f32.mrf.mxu1 }
 0x2bd   :  { %v979_v35 = vadd.f32 %v978_v21, %v5686_v24  ;;  %v999_v34 = vadd.f32 %v998_v20, %v5687_v33  ;;  %v5689_v21 = vld [vmem:[#allocation22_spill] sm:$0xff] }
 0x2bf   :  { %v1051_v36 = vadd.f32 %v1043_v11, %v979_v35  ;;  %v1052_v37 = vadd.f32 %v1044_v25, %v999_v34 }
 0x2c1   :  { %3114 = vtanh.f32 %v1051_v36 }
 0x2c2   :  { %3116 = vtanh.f32 %v1052_v37 }
 0x2c3   :  { %v1018_v39 = vpop.f32.mrf.mxu2  ;;  %v1038_v40 = vpop.f32.mrf.mxu3 }
 0x2c4   :  { %v1019_v24 = vadd.f32 %v1018_v39, %v5688_v12  ;;  %v1039_v33 = vadd.f32 %v1038_v40, %v5689_v21 }
 0x2c6   :  { %v1053_v11 = vadd.f32 %v1045_v38, %v1019_v24  ;;  %v1054_v35 = vadd.f32 %v1046_v19, %v1039_v33 }
 0x2c7   :  { %v3115_v34 = vpop.eup %3114 }
 0x2c8   :  { %v3117_v36 = vpop.eup %3116  ;;  %3118 = vtanh.f32 %v1053_v11  ;;  %v1059_v37 = vadd.f32 1.0, %v3115_v34 }
 0x2c9   :  { %v1061_v20 = vadd.f32 1.0, %v3117_v36  ;;  %3120 = vtanh.f32 %v1054_v35 }
 0x2ca   :  { %v1060_v12 = vmul.f32 0.5, %v1059_v37 }
 0x2cb   :  { %v1062_v48 = vmul.f32 0.5, %v1061_v20 }
 0x2cd   :  { %v1065_v38 = vmul.f32 %v1062_v48, %v4234_v10 }
 0x2ce   :  { %v3119_v39 = vpop.eup %3118 }
 0x2cf   :  { %v1066_v40 = vmul.f32 %v3119_v39, %v1060_v12  ;;  %v3121_v19 = vpop.eup %3120  ;;  %v1405_v12 = vld [vmem:[%s5450_s3] sm:$0xf] }
 0x2d0   :  { %v1063_v24 = vadd.f32 1.0, %v3121_v19  ;;  %v1407_v39 = vperm.slane %v1405_v12, 0 }
 0x2d1   :  { %v4339_v25 = vadd.f32 %v1066_v40, %v1065_v38  ;;  %v1408_v38 = vperm.slane %v1405_v12, 1 }
 0x2d2   :  { %v1064_v21 = vmul.f32 0.5, %v1063_v24 }
 0x2d3   :  { %3122 = vtanh.f32 %v4339_v25 }
 0x2d9   :  { %v3123_v33 = vpop.eup %3122 }
 0x2da   :  { %v4347_v10 = vmul.f32 %v3123_v33, %v1064_v21  ;;  %v5712_v21 = vld [vmem:[#allocation27_spill] sm:$0xff] }
 0x2dc   :  { %1159 = vmatmul.f32.vlgmr.msrb.gmra.mxu0 %v4347_v10  ;;  %1179 = vmatmul.f32.vlgmr.msra.gmra.mxu1 %v4347_v10 }
 0x2dd   :  { %1199 = vmatmul.f32.vlgmr.msra.gmra.mxu2 %v4347_v10  ;;  %1219 = vmatmul.f32.vlgmr.msra.gmra.mxu3 %v4347_v10 }
 0x2de   :  { %1507 = vmatpush.msrb.mxu0 %v4000_v32  ;;  %1527 = vmatpush.msra.mxu1 %v4002_v45  ;;  %v5690_v32 = vld [vmem:[#allocation41_spill] sm:$0xff]  ;;  %v5691_v45 = vld [vmem:[#allocation42_spill] sm:$0xff] }
 0x2df   :  { %1547 = vmatpush.msra.mxu2 %v4004_v4  ;;  %1567 = vmatpush.msra.mxu3 %v4008_v5  ;;  %v5692_v4 = vld [vmem:[#allocation44_spill] sm:$0xff]  ;;  %v5693_v5 = vld [vmem:[#allocation45_spill] sm:$0xff] }
 0x2e0   :  { %1508 = vmatpush.msrb.mxu0 %v4012_v6  ;;  %1528 = vmatpush.msra.mxu1 %v4014_v59  ;;  %v5694_v6 = vld [vmem:[#allocation46_spill] sm:$0xff]  ;;  %v5696_v59 = vld [vmem:[#allocation49_spill] sm:$0xff] }
 0x2e1   :  { %1548 = vmatpush.msra.mxu2 %v4016_v14  ;;  %1568 = vmatpush.msra.mxu3 %v4020_v15  ;;  %v5697_v14 = vld [vmem:[#allocation50_spill] sm:$0xff]  ;;  %v5699_v15 = vld [vmem:[#allocation53_spill] sm:$0xff] }
 0x2e2   :  { %1509 = vmatpush.msrb.mxu0 %v4024_v16  ;;  %1529 = vmatpush.msra.mxu1 %v4026_v42  ;;  %v5700_v16 = vld [vmem:[#allocation54_spill] sm:$0xff]  ;;  %v5701_v42 = vld [vmem:[#allocation56_spill] sm:$0xff] }
 0x2e3   :  { %1549 = vmatpush.msra.mxu2 %v4028_v43  ;;  %1569 = vmatpush.msra.mxu3 %v4032_v46  ;;  %v5702_v43 = vld [vmem:[#allocation57_spill] sm:$0xff]  ;;  %v5703_v46 = vld [vmem:[#allocation58_spill] sm:$0xff] }
 0x2e4   :  { %1510 = vmatpush.msrb.mxu0 %v4036_v47  ;;  %1530 = vmatpush.msra.mxu1 %v4038_v49  ;;  %v5704_v47 = vld [vmem:[#allocation60_spill] sm:$0xff]  ;;  %v5705_v49 = vld [vmem:[#allocation61_spill] sm:$0xff] }
 0x2e5   :  { %1550 = vmatpush.msra.mxu2 %v4040_v50  ;;  %1570 = vmatpush.msra.mxu3 %v4044_v52  ;;  %v5706_v50 = vld [vmem:[#allocation62_spill] sm:$0xff] }
 0x2e6   :  { %1511 = vmatpush.msrb.mxu0 %v4048_v53  ;;  %1531 = vmatpush.msra.mxu1 %v4050_v54 }
 0x2e7   :  { %1551 = vmatpush.msra.mxu2 %v4052_v55  ;;  %1571 = vmatpush.msra.mxu3 %v4056_v56  ;;  %v5707_v56 = vld [vmem:[#allocation28_spill] sm:$0xff] }
 0x2e8   :  { %1512 = vmatpush.msrb.mxu0 %v4060_v57  ;;  %1532 = vmatpush.msra.mxu1 %v4062_v58  ;;  %v5708_v58 = vld [vmem:[#allocation23_spill] sm:$0xff] }
 0x2e9   :  { %1552 = vmatpush.msra.mxu2 %v4064_v60  ;;  %1572 = vmatpush.msra.mxu3 %v4068_v61 }
 0x2ea   :  { %1513 = vmatpush.msrb.mxu0 %v4072_v62  ;;  %1533 = vmatpush.msra.mxu1 %v4074_v22 }
 0x2eb   :  { %1553 = vmatpush.msra.mxu2 %v4076_v63  ;;  %1573 = vmatpush.msra.mxu3 %v4080_v17  ;;  %v5709_v17 = vld [vmem:[#allocation25_spill] sm:$0xff] }
 0x2ec   :  { %1514 = vmatpush.msrb.mxu0 %v4084_v0  ;;  %1534 = vmatpush.msra.mxu1 %v4086_v1  ;;  %v5710_v1 = vld [vmem:[#allocation26_spill] sm:$0xff] }
 0x2ed   :  { %1554 = vmatpush.msra.mxu2 %v4088_v2  ;;  %1574 = vmatpush.msra.mxu3 %v4310_v26 }
 0x2ee   :  { %1515 = vmatpush.msrb.mxu0 %v4094_v3  ;;  %1535 = vmatpush.msra.mxu1 %v4096_v7 }
 0x2ef   :  { %1555 = vmatpush.msra.mxu2 %v4098_v18  ;;  %1575 = vmatpush.msra.mxu3 %v5679_v27 }
 0x2f0   :  { %1516 = vmatpush.msrb.mxu0 %v4106_v9  ;;  %1536 = vmatpush.msra.mxu1 %v4108_v51  ;;  %v5695_v51 = vld [vmem:[#allocation48_spill] sm:$0xff] }
 0x2f1   :  { %1556 = vmatpush.msra.mxu2 %v4110_v44  ;;  %1576 = vmatpush.msra.mxu3 %v5680_v31 }
 0x2f2   :  { %1517 = vmatpush.msrb.mxu0 %v4118_v41  ;;  %1537 = vmatpush.msra.mxu1 %v5690_v32  ;;  %v5698_v41 = vld [vmem:[#allocation52_spill] sm:$0xff] }
 0x2f3   :  { %1557 = vmatpush.msra.mxu2 %v5691_v45  ;;  %1577 = vmatpush.msra.mxu3 %v5681_v8  ;;  %v1678_v32 = vld [vmem:[#allocation4 + $0x1e0] sm:$0xff]  ;;  %v1679_v45 = vld [vmem:[#allocation4 + $0x1e8] sm:$0xff] }
 0x2f4   :  { %1518 = vmatpush.msrb.mxu0 %v5692_v4  ;;  %1538 = vmatpush.msra.mxu1 %v5693_v5  ;;  %v1680_v4 = vld [vmem:[#allocation4 + $0x1f0] sm:$0xff]  ;;  %v1681_v5 = vld [vmem:[#allocation4 + $0x1f8] sm:$0xff] }
 0x2f5   :  { %1558 = vmatpush.msra.mxu2 %v5694_v6  ;;  %1578 = vmatpush.msra.mxu3 %v5682_v30  ;;  %v1674_v6 = vld [vmem:[#allocation4 + $0x1c0] sm:$0xff] }
 0x2f6   :  { %1519 = vmatpush.msrb.mxu0 %v5695_v51  ;;  %1539 = vmatpush.msra.mxu1 %v5696_v59  ;;  %v1675_v51 = vld [vmem:[#allocation4 + $0x1c8] sm:$0xff] }
 0x2f7   :  { %1559 = vmatpush.msra.mxu2 %v5697_v14  ;;  %1579 = vmatpush.msra.mxu3 %v5683_v23 }
 0x2f8   :  { %1520 = vmatpush.msrb.mxu0 %v5698_v41  ;;  %1540 = vmatpush.msra.mxu1 %v5699_v15  ;;  %v1676_v41 = vld [vmem:[#allocation4 + $0x1d0] sm:$0xff]  ;;  %v1677_v15 = vld [vmem:[#allocation4 + $0x1d8] sm:$0xff] }
 0x2f9   :  { %1560 = vmatpush.msra.mxu2 %v5700_v16  ;;  %1580 = vmatpush.msra.mxu3 %v5684_v13  ;;  %v1223_v13 = vld [vmem:[%s5450_s3] sm:$0xf]  ;;  %v1670_v16 = vld [vmem:[#allocation4 + $0x1a0] sm:$0xff] }
 0x2fa   :  { %1521 = vmatpush.msrb.mxu0 %v5701_v42  ;;  %1541 = vmatpush.msra.mxu1 %v5702_v43  ;;  %v1225_v52 = vperm.slane %v1223_v13, 0  ;;  %v1226_v53 = vperm.slane %v1223_v13, 1  ;;  %v1227_v62 = vperm.slane %v1223_v13, 2  ;;  %v1671_v42 = vld [vmem:[#allocation4 + $0x1a8] sm:$0xff]  ;;  %v1672_v43 = vld [vmem:[#allocation4 + $0x1b0] sm:$0xff] }
 0x2fb   :  { %1561 = vmatpush.msra.mxu2 %v5703_v46  ;;  %1581 = vmatpush.msra.mxu3 %v5685_v28  ;;  %v1673_v46 = vld [vmem:[#allocation4 + $0x1b8] sm:$0xff] }
 0x2fc   :  { %1522 = vmatpush.msrb.mxu0 %v5704_v47  ;;  %1542 = vmatpush.msra.mxu1 %v5705_v49  ;;  %v1666_v47 = vld [vmem:[#allocation4 + $0x180] sm:$0xff]  ;;  %v1667_v49 = vld [vmem:[#allocation4 + $0x188] sm:$0xff] }
 0x2fd   :  { %1562 = vmatpush.msra.mxu2 %v5706_v50  ;;  %1582 = vmatpush.msra.mxu3 %v4187_v29  ;;  %v1228_v29 = vperm.slane %v1223_v13, 3  ;;  %v1409_v50 = vperm.slane %v1405_v12, 2  ;;  %v1668_v13 = vld [vmem:[#allocation4 + $0x190] sm:$0xff] }
 0x359   :  { %v1160_v54 = vpop.f32.mrf.mxu0  ;;  %v1180_v55 = vpop.f32.mrf.mxu1 }
 0x35a   :  { %v1161_v57 = vadd.f32 %v1160_v54, %v5707_v56  ;;  %v1181_v28 = vadd.f32 %v1180_v55, %v5708_v58  ;;  %v1410_v55 = vperm.slane %v1405_v12, 3  ;;  %v1662_v56 = vld [vmem:[#allocation4 + $0x160] sm:$0xff]  ;;  %v5713_v58 = vld [vmem:[#allocation29_spill] sm:$0xff]  ;;  %v1649_v12 = vld [vmem:[#allocation4 + $0xf8] sm:$0xff] }
 0x35c   :  { %v1233_v60 = vadd.f32 %v1225_v52, %v1161_v57  ;;  %v1234_v61 = vadd.f32 %v1226_v53, %v1181_v28  ;;  %v1669_v52 = vld [vmem:[#allocation4 + $0x198] sm:$0xff]  ;;  %v1663_v57 = vld [vmem:[#allocation4 + $0x168] sm:$0xff] }
 0x35e   :  { %3124 = vtanh.f32 %v1233_v60  ;;  %v5714_v60 = vld [vmem:[#allocation30_spill] sm:$0xff] }
 0x35f   :  { %3126 = vtanh.f32 %v1234_v61 }
 0x360   :  { %v1200_v22 = vpop.f32.mrf.mxu2  ;;  %v1220_v63 = vpop.f32.mrf.mxu3 }
 0x361   :  { %v1201_v0 = vadd.f32 %v1200_v22, %v5709_v17  ;;  %v1221_v2 = vadd.f32 %v1220_v63, %v5710_v1  ;;  %v1665_v22 = vld [vmem:[#allocation4 + $0x178] sm:$0xff]  ;;  %v1658_v63 = vld [vmem:[#allocation4 + $0x140] sm:$0xff] }
 0x362   :  { %v1661_v1 = vld [vmem:[#allocation4 + $0x158] sm:$0xff] }
 0x363   :  { %v1235_v3 = vadd.f32 %v1227_v62, %v1201_v0  ;;  %v1236_v18 = vadd.f32 %v1228_v29, %v1221_v2  ;;  %v1664_v62 = vld [vmem:[#allocation4 + $0x170] sm:$0xff]  ;;  %v1659_v29 = vld [vmem:[#allocation4 + $0x148] sm:$0xff] }
 0x364   :  { %v3125_v7 = vpop.eup %3124  ;;  %v1660_v0 = vld [vmem:[#allocation4 + $0x150] sm:$0xff] }
 0x365   :  { %v3127_v9 = vpop.eup %3126  ;;  %3128 = vtanh.f32 %v1235_v3  ;;  %v1241_v44 = vadd.f32 1.0, %v3125_v7  ;;  %v1654_v7 = vld [vmem:[#allocation4 + $0x120] sm:$0xff] }
 0x366   :  { %v1243_v27 = vadd.f32 1.0, %v3127_v9  ;;  %3130 = vtanh.f32 %v1236_v18  ;;  %v1655_v18 = vld [vmem:[#allocation4 + $0x128] sm:$0xff] }
 0x367   :  { %v1242_v8 = vmul.f32 0.5, %v1241_v44  ;;  %v1656_v44 = vld [vmem:[#allocation4 + $0x130] sm:$0xff] }
 0x368   :  { %v1244_v31 = vmul.f32 0.5, %v1243_v27  ;;  %v1657_v27 = vld [vmem:[#allocation4 + $0x138] sm:$0xff] }
 0x36a   :  { %v1247_v23 = vmul.f32 %v1244_v31, %v4339_v25  ;;  %v5711_v25 = vld [vmem:[#allocation17_spill] sm:$0xff] }
 0x36b   :  { %v3129_v30 = vpop.eup %3128 }
 0x36c   :  { %v1248_v11 = vmul.f32 %v3129_v30, %v1242_v8  ;;  %v3131_v34 = vpop.eup %3130  ;;  %v1650_v30 = vld [vmem:[#allocation4 + $0x100] sm:$0xff] }
 0x36d   :  { %v1245_v36 = vadd.f32 1.0, %v3131_v34 }
 0x36e   :  { %v4426_v35 = vadd.f32 %v1248_v11, %v1247_v23  ;;  %v1651_v23 = vld [vmem:[#allocation4 + $0x108] sm:$0xff]  ;;  %v1652_v11 = vld [vmem:[#allocation4 + $0x110] sm:$0xff] }
 0x36f   :  { %v1246_v37 = vmul.f32 0.5, %v1245_v36  ;;  %v1646_v36 = vld [vmem:[#allocation4 + $0xe0] sm:$0xff] }
 0x370   :  { %3132 = vtanh.f32 %v4426_v35 }
 0x376   :  { %v3133_v20 = vpop.eup %3132 }
 0x377   :  { %v4429_v48 = vmul.f32 %v3133_v20, %v1246_v37  ;;  %v1647_v37 = vld [vmem:[#allocation4 + $0xe8] sm:$0xff]  ;;  %v1648_v20 = vld [vmem:[#allocation4 + $0xf0] sm:$0xff] }
 0x379   :  { %1341 = vmatmul.f32.vlgmr.msra.gmra.mxu0 %v4429_v48  ;;  %1361 = vmatmul.f32.vlgmr.msrb.gmra.mxu1 %v4429_v48 }
 0x37a   :  { %1381 = vmatmul.f32.vlgmr.msrb.gmra.mxu2 %v4429_v48  ;;  %1401 = vmatmul.f32.vlgmr.msrb.gmra.mxu3 %v4429_v48 }
 0x37b   :  { %1689 = vmatpush.msra.mxu0 %v1678_v32  ;;  %1709 = vmatpush.msrb.mxu1 %v1679_v45  ;;  %v1638_v32 = vld [vmem:[#allocation4 + $0xa0] sm:$0xff]  ;;  %v1639_v45 = vld [vmem:[#allocation4 + $0xa8] sm:$0xff] }
 0x37c   :  { %1729 = vmatpush.msrb.mxu2 %v1680_v4  ;;  %1749 = vmatpush.msrb.mxu3 %v1681_v5  ;;  %v1640_v4 = vld [vmem:[#allocation4 + $0xb0] sm:$0xff]  ;;  %v1641_v5 = vld [vmem:[#allocation4 + $0xb8] sm:$0xff] }
 0x37d   :  { %1690 = vmatpush.msra.mxu0 %v1674_v6  ;;  %1710 = vmatpush.msrb.mxu1 %v1675_v51  ;;  %v1634_v51 = vld [vmem:[#allocation4 + $0x80] sm:$0xff] }
 0x37e   :  { %1730 = vmatpush.msrb.mxu2 %v1676_v41  ;;  %1750 = vmatpush.msrb.mxu3 %v1677_v15 }
 0x37f   :  { %1691 = vmatpush.msra.mxu0 %v1670_v16  ;;  %1711 = vmatpush.msrb.mxu1 %v1671_v42 }
 0x380   :  { %1731 = vmatpush.msrb.mxu2 %v1672_v43  ;;  %1751 = vmatpush.msrb.mxu3 %v1673_v46  ;;  %v1630_v43 = vld [vmem:[#allocation4 + $0x60] sm:$0xff]  ;;  %v1631_v46 = vld [vmem:[#allocation4 + $0x68] sm:$0xff] }
 0x381   :  { %1692 = vmatpush.msra.mxu0 %v1666_v47  ;;  %1712 = vmatpush.msrb.mxu1 %v1667_v49  ;;  %v1632_v47 = vld [vmem:[#allocation4 + $0x70] sm:$0xff]  ;;  %v1633_v49 = vld [vmem:[#allocation4 + $0x78] sm:$0xff] }
 0x382   :  { %1732 = vmatpush.msrb.mxu2 %v1668_v13  ;;  %1752 = vmatpush.msrb.mxu3 %v1669_v52  ;;  %v1627_v13 = vld [vmem:[#allocation4 + $0x48] sm:$0xff]  ;;  %v1628_v52 = vld [vmem:[#allocation4 + $0x50] sm:$0xff] }
 0x383   :  { %1693 = vmatpush.msra.mxu0 %v1662_v56  ;;  %1713 = vmatpush.msrb.mxu1 %v1663_v57  ;;  %v1624_v56 = vld [vmem:[#allocation4 + $0x30] sm:$0xff]  ;;  %v1625_v57 = vld [vmem:[#allocation4 + $0x38] sm:$0xff] }
 0x384   :  { %1733 = vmatpush.msrb.mxu2 %v1664_v62  ;;  %1753 = vmatpush.msrb.mxu3 %v1665_v22  ;;  %v1868_v62 = vld [vmem:[#allocation7 + $0x1e0] sm:$0xff]  ;;  %v1869_v22 = vld [vmem:[#allocation7 + $0x1e8] sm:$0xff] }
 0x385   :  { %1694 = vmatpush.msra.mxu0 %v1658_v63  ;;  %1714 = vmatpush.msrb.mxu1 %v1659_v29  ;;  %v1870_v63 = vld [vmem:[#allocation7 + $0x1f0] sm:$0xff]  ;;  %v1871_v29 = vld [vmem:[#allocation7 + $0x1f8] sm:$0xff] }
 0x386   :  { %1734 = vmatpush.msrb.mxu2 %v1660_v0  ;;  %1754 = vmatpush.msrb.mxu3 %v1661_v1  ;;  %v1865_v0 = vld [vmem:[#allocation7 + $0x1c8] sm:$0xff]  ;;  %v1866_v1 = vld [vmem:[#allocation7 + $0x1d0] sm:$0xff] }
 0x387   :  { %1695 = vmatpush.msra.mxu0 %v1654_v7  ;;  %1715 = vmatpush.msrb.mxu1 %v1655_v18  ;;  %v1861_v7 = vld [vmem:[#allocation7 + $0x1a8] sm:$0xff]  ;;  %v1862_v18 = vld [vmem:[#allocation7 + $0x1b0] sm:$0xff] }
 0x388   :  { %1735 = vmatpush.msrb.mxu2 %v1656_v44  ;;  %1755 = vmatpush.msrb.mxu3 %v1657_v27  ;;  %v1856_v44 = vld [vmem:[#allocation7 + $0x180] sm:$0xff]  ;;  %v1857_v27 = vld [vmem:[#allocation7 + $0x188] sm:$0xff] }
 0x389   :  { %1696 = vmatpush.msra.mxu0 %v1650_v30  ;;  %1716 = vmatpush.msrb.mxu1 %v1651_v23  ;;  %v1852_v30 = vld [vmem:[#allocation7 + $0x160] sm:$0xff]  ;;  %v1853_v23 = vld [vmem:[#allocation7 + $0x168] sm:$0xff] }
 0x38a   :  { %1736 = vmatpush.msrb.mxu2 %v1652_v11  ;;  %1756 = vmatpush.msrb.mxu3 %v4310_v26  ;;  %v1854_v11 = vld [vmem:[#allocation7 + $0x170] sm:$0xff] }
 0x38b   :  { %1697 = vmatpush.msra.mxu0 %v1646_v36  ;;  %1717 = vmatpush.msrb.mxu1 %v1647_v37  ;;  %v1848_v36 = vld [vmem:[#allocation7 + $0x140] sm:$0xff]  ;;  %v1849_v37 = vld [vmem:[#allocation7 + $0x148] sm:$0xff] }
 0x38c   :  { %1737 = vmatpush.msrb.mxu2 %v1648_v20  ;;  %1757 = vmatpush.msrb.mxu3 %v1649_v12  ;;  %v1850_v20 = vld [vmem:[#allocation7 + $0x150] sm:$0xff]  ;;  %v1851_v12 = vld [vmem:[#allocation7 + $0x158] sm:$0xff] }
 0x3f6   :  { %v1342_v40 = vpop.f32.mrf.mxu0  ;;  %v1362_v19 = vpop.f32.mrf.mxu1 }
 0x3f7   :  { %v1343_v24 = vadd.f32 %v1342_v40, %v5711_v25  ;;  %v1363_v33 = vadd.f32 %v1362_v19, %v5712_v21  ;;  %v1643_v40 = vld [vmem:[#allocation4 + $0xc8] sm:$0xff]  ;;  %v1644_v25 = vld [vmem:[#allocation4 + $0xd0] sm:$0xff] }
 0x3f8   :  { %1718 = vmatpush.msrb.mxu1 %v1643_v40  ;;  %1738 = vmatpush.msrb.mxu2 %v1644_v25  ;;  %v1846_v40 = vld [vmem:[#allocation7 + $0x130] sm:$0xff]  ;;  %v1840_v25 = vld [vmem:[#allocation7 + $0x100] sm:$0xff] }
 0x3f9   :  { %v1415_v59 = vadd.f32 %v1407_v39, %v1343_v24  ;;  %v1416_v14 = vadd.f32 %v1408_v38, %v1363_v33  ;;  %v1642_v38 = vld [vmem:[#allocation4 + $0xc0] sm:$0xff]  ;;  %v1645_v24 = vld [vmem:[#allocation4 + $0xd8] sm:$0xff] }
 0x3fa   :  { %1698 = vmatpush.msra.mxu0 %v1642_v38  ;;  %1758 = vmatpush.msrb.mxu3 %v1645_v24  ;;  %v1845_v38 = vld [vmem:[#allocation7 + $0x128] sm:$0xff] }
 0x3fb   :  { %3134 = vtanh.f32 %v1415_v59  ;;  %v1635_v59 = vld [vmem:[#allocation4 + $0x88] sm:$0xff]  ;;  %1719 = vmatpush.msrb.mxu1 %v1639_v45  ;;  %1739 = vmatpush.msrb.mxu2 %v1640_v4  ;;  %v1838_v4 = vld [vmem:[#allocation7 + $0xf0] sm:$0xff] }
 0x3fc   :  { %3136 = vtanh.f32 %v1416_v14  ;;  %1699 = vmatpush.msra.mxu0 %v1638_v32  ;;  %v1636_v14 = vld [vmem:[#allocation4 + $0x90] sm:$0xff]  ;;  %1759 = vmatpush.msrb.mxu3 %v1641_v5  ;;  %v1841_v24 = vld [vmem:[#allocation7 + $0x108] sm:$0xff]  ;;  %v1836_v32 = vld [vmem:[#allocation7 + $0xe0] sm:$0xff] }
 0x3fd   :  { %v1382_v53 = vpop.f32.mrf.mxu2  ;;  %v1402_v54 = vpop.f32.mrf.mxu3  ;;  %1720 = vmatpush.msrb.mxu1 %v1635_v59  ;;  %1740 = vmatpush.msrb.mxu2 %v1636_v14  ;;  %v1837_v45 = vld [vmem:[#allocation7 + $0xe8] sm:$0xff]  ;;  %v1839_v5 = vld [vmem:[#allocation7 + $0xf8] sm:$0xff]  ;;  %v1834_v59 = vld [vmem:[#allocation7 + $0xd0] sm:$0xff] }
 0x3fe   :  { %v1383_v28 = vadd.f32 %v1382_v53, %v5713_v58  ;;  %v1403_v61 = vadd.f32 %v1402_v54, %v5714_v60  ;;  %1700 = vmatpush.msra.mxu0 %v1634_v51  ;;  %v1629_v53 = vld [vmem:[#allocation4 + $0x58] sm:$0xff]  ;;  %v1622_v54 = vld [vmem:[#allocation4 + $0x20] sm:$0xff]  ;;  %v1620_v60 = vld [vmem:[#allocation4 + $0x10] sm:$0xff] }
 0x3ff   :  { %1721 = vmatpush.msrb.mxu1 %v1631_v46  ;;  %1741 = vmatpush.msrb.mxu2 %v1632_v47  ;;  %v1618_v58 = vld [vmem:[#allocation4] sm:$0xff]  ;;  %v1833_v51 = vld [vmem:[#allocation7 + $0xc8] sm:$0xff]  ;;  %v4456_v14 = vld [vmem:[%s5450_s3] sm:$0xf] }
 0x400   :  { %v1417_v17 = vadd.f32 %v1409_v50, %v1383_v28  ;;  %v1418_v3 = vadd.f32 %v1410_v55, %v1403_v61  ;;  %1701 = vmatpush.msra.mxu0 %v1630_v43  ;;  %v1626_v50 = vld [vmem:[#allocation4 + $0x40] sm:$0xff]  ;;  %v1623_v55 = vld [vmem:[#allocation4 + $0x28] sm:$0xff]  ;;  %v1621_v61 = vld [vmem:[#allocation4 + $0x18] sm:$0xff] }
 0x401   :  { %v3135_v2 = vpop.eup %3134  ;;  %1722 = vmatpush.msrb.mxu1 %v1627_v13  ;;  %1742 = vmatpush.msrb.mxu2 %v1628_v52  ;;  %v1619_v28 = vld [vmem:[#allocation4 + $0x8] sm:$0xff]  ;;  %v1831_v43 = vld [vmem:[#allocation7 + $0xb8] sm:$0xff]  ;;  %v1824_v46 = vld [vmem:[#allocation7 + $0x80] sm:$0xff] }
 0x402   :  { %v3137_v9 = vpop.eup %3136  ;;  %3138 = vtanh.f32 %v1417_v17  ;;  %v1423_v31 = vadd.f32 1.0, %v3135_v2  ;;  %1702 = vmatpush.msra.mxu0 %v1626_v50  ;;  %v1864_v17 = vld [vmem:[#allocation7 + $0x1c0] sm:$0xff]  ;;  %v1867_v2 = vld [vmem:[#allocation7 + $0x1d8] sm:$0xff]  ;;  %v1825_v47 = vld [vmem:[#allocation7 + $0x88] sm:$0xff]  ;;  %v1590_v50 = vperm.slane %v4456_v14, 1 }
 0x403   :  { %v1425_v8 = vadd.f32 1.0, %v3137_v9  ;;  %3140 = vtanh.f32 %v1418_v3  ;;  %1723 = vmatpush.msrb.mxu1 %v1623_v55  ;;  %1743 = vmatpush.msrb.mxu2 %v1624_v56  ;;  %v1860_v3 = vld [vmem:[#allocation7 + $0x1a0] sm:$0xff]  ;;  %v1863_v9 = vld [vmem:[#allocation7 + $0x1b8] sm:$0xff]  ;;  %v1826_v13 = vld [vmem:[#allocation7 + $0x90] sm:$0xff] }
 0x404   :  { %v1424_v39 = vmul.f32 0.5, %v1423_v31  ;;  %1703 = vmatpush.msra.mxu0 %v1622_v54  ;;  %v1858_v31 = vld [vmem:[#allocation7 + $0x190] sm:$0xff]  ;;  %v1827_v52 = vld [vmem:[#allocation7 + $0x98] sm:$0xff] }
 0x405   :  { %v1426_v34 = vmul.f32 0.5, %v1425_v8  ;;  %1724 = vmatpush.msrb.mxu1 %v1619_v28  ;;  %1744 = vmatpush.msrb.mxu2 %v1620_v60  ;;  %v1859_v8 = vld [vmem:[#allocation7 + $0x198] sm:$0xff]  ;;  %v5715_v55 = vld [vmem:[#allocation18_spill] sm:$0xff]  ;;  %v1820_v28 = vld [vmem:[#allocation7 + $0x60] sm:$0xff] }
 0x406   :  { %1704 = vmatpush.msra.mxu0 %v1618_v58  ;;  %v1821_v60 = vld [vmem:[#allocation7 + $0x68] sm:$0xff] }
 0x407   :  { %v1429_v21 = vmul.f32 %v1426_v34, %v4426_v35  ;;  %v1637_v35 = vld [vmem:[#allocation4 + $0x98] sm:$0xff] }
 0x408   :  { %v3139_v19 = vpop.eup %3138  ;;  %1760 = vmatpush.msrb.mxu3 %v1637_v35  ;;  %v1855_v34 = vld [vmem:[#allocation7 + $0x178] sm:$0xff] }
 0x409   :  { %v1430_v33 = vmul.f32 %v3139_v19, %v1424_v39  ;;  %v3141_v6 = vpop.eup %3140  ;;  %v1844_v39 = vld [vmem:[#allocation7 + $0x120] sm:$0xff]  ;;  %v1847_v19 = vld [vmem:[#allocation7 + $0x138] sm:$0xff] }
 0x40a   :  { %v1427_v41 = vadd.f32 1.0, %v3141_v6  ;;  %1761 = vmatpush.msrb.mxu3 %v1633_v49  ;;  %v1832_v6 = vld [vmem:[#allocation7 + $0xc0] sm:$0xff]  ;;  %v1835_v35 = vld [vmem:[#allocation7 + $0xd8] sm:$0xff]  ;;  %v1589_v49 = vperm.slane %v4456_v14, 0 }
 0x40b   :  { %v4444_v26 = vadd.f32 %v1430_v33, %v1429_v21  ;;  %v1842_v21 = vld [vmem:[#allocation7 + $0x110] sm:$0xff]  ;;  %v1843_v33 = vld [vmem:[#allocation7 + $0x118] sm:$0xff] }
 0x40c   :  { %v1428_v15 = vmul.f32 0.5, %v1427_v41  ;;  %1762 = vmatpush.msrb.mxu3 %v1629_v53  ;;  %v1828_v41 = vld [vmem:[#allocation7 + $0xa0] sm:$0xff] }
 0x40d   :  { %3142 = vtanh.f32 %v4444_v26 }
 0x40e   :  { %1763 = vmatpush.msrb.mxu3 %v1625_v57  ;;  %v5716_v57 = vld [vmem:[#allocation31_spill] sm:$0xff] }
 0x410   :  { %1764 = vmatpush.msrb.mxu3 %v1621_v61  ;;  %v1822_v61 = vld [vmem:[#allocation7 + $0x70] sm:$0xff] }
 0x413   :  { %v3143_v16 = vpop.eup %3142 }
 0x414   :  { %v4447_v42 = vmul.f32 %v3143_v16, %v1428_v15  ;;  %v1829_v15 = vld [vmem:[#allocation7 + $0xa8] sm:$0xff]  ;;  %v1830_v16 = vld [vmem:[#allocation7 + $0xb0] sm:$0xff] }
 0x416   :  { %1523 = vmatmul.f32.vlgmr.msrb.gmra.mxu0 %v4447_v42  ;;  %1543 = vmatmul.f32.vlgmr.msra.gmra.mxu1 %v4447_v42 }
 0x417   :  { %1563 = vmatmul.f32.vlgmr.msra.gmra.mxu2 %v4447_v42  ;;  %1583 = vmatmul.f32.vlgmr.msra.gmra.mxu3 %v4447_v42 }
 0x418   :  { %1872 = vmatpush.msrb.mxu0 %v1868_v62  ;;  %1913 = vmatpush.msra.mxu1 %v1869_v22  ;;  %v1823_v62 = vld [vmem:[#allocation7 + $0x78] sm:$0xff]  ;;  %v1816_v22 = vld [vmem:[#allocation7 + $0x40] sm:$0xff] }
 0x419   :  { %1954 = vmatpush.msra.mxu2 %v1870_v63  ;;  %1995 = vmatpush.msra.mxu3 %v1871_v29  ;;  %v1817_v63 = vld [vmem:[#allocation7 + $0x48] sm:$0xff] }
 0x41a   :  { %1873 = vmatpush.msrb.mxu0 %v1864_v17  ;;  %1914 = vmatpush.msra.mxu1 %v1865_v0  ;;  %v1818_v0 = vld [vmem:[#allocation7 + $0x50] sm:$0xff] }
 0x41b   :  { %1955 = vmatpush.msra.mxu2 %v1866_v1  ;;  %1996 = vmatpush.msra.mxu3 %v1867_v2  ;;  %v1819_v1 = vld [vmem:[#allocation7 + $0x58] sm:$0xff]  ;;  %v1812_v2 = vld [vmem:[#allocation7 + $0x20] sm:$0xff] }
 0x41c   :  { %1874 = vmatpush.msrb.mxu0 %v1860_v3  ;;  %1915 = vmatpush.msra.mxu1 %v1861_v7  ;;  %v1813_v3 = vld [vmem:[#allocation7 + $0x28] sm:$0xff]  ;;  %v1814_v7 = vld [vmem:[#allocation7 + $0x30] sm:$0xff] }
 0x41d   :  { %1956 = vmatpush.msra.mxu2 %v1862_v18  ;;  %1997 = vmatpush.msra.mxu3 %v1863_v9  ;;  %v1815_v18 = vld [vmem:[#allocation7 + $0x38] sm:$0xff]  ;;  %v1591_v9 = vperm.slane %v4456_v14, 2 }
 0x41e   :  { %1875 = vmatpush.msrb.mxu0 %v1856_v44  ;;  %1916 = vmatpush.msra.mxu1 %v1857_v27  ;;  %v1808_v44 = vld [vmem:[#allocation7] sm:$0xff]  ;;  %v1809_v27 = vld [vmem:[#allocation7 + $0x8] sm:$0xff] }
 0x41f   :  { %1957 = vmatpush.msra.mxu2 %v1858_v31  ;;  %1998 = vmatpush.msra.mxu3 %v1859_v8 }
 0x420   :  { %1876 = vmatpush.msrb.mxu0 %v1852_v30  ;;  %1917 = vmatpush.msra.mxu1 %v1853_v23  ;;  %v1592_v30 = vperm.slane %v4456_v14, 3  ;;  %v1810_v23 = vld [vmem:[#allocation7 + $0x10] sm:$0xff] }
 0x421   :  { %1958 = vmatpush.msra.mxu2 %v1854_v11  ;;  %1999 = vmatpush.msra.mxu3 %v1855_v34  ;;  %v1811_v11 = vld [vmem:[#allocation7 + $0x18] sm:$0xff]  ;;  %v5717_v34 = vld [vmem:[#allocation32_spill] sm:$0xff] }
 0x422   :  { %1877 = vmatpush.msrb.mxu0 %v1848_v36  ;;  %1918 = vmatpush.msra.mxu1 %v1849_v37  ;;  %v5718_v37 = vld [vmem:[#allocation33_spill] sm:$0xff] }
 0x423   :  { %1959 = vmatpush.msra.mxu2 %v1850_v20  ;;  %2000 = vmatpush.msra.mxu3 %v1851_v12 }
 0x424   :  { %1878 = vmatpush.msrb.mxu0 %v1844_v39  ;;  %1919 = vmatpush.msra.mxu1 %v1845_v38 }
 0x425   :  { %1960 = vmatpush.msra.mxu2 %v1846_v40  ;;  %2001 = vmatpush.msra.mxu3 %v1847_v19 }
 0x426   :  { %1879 = vmatpush.msrb.mxu0 %v1840_v25  ;;  %1920 = vmatpush.msra.mxu1 %v1841_v24 }
 0x427   :  { %1961 = vmatpush.msra.mxu2 %v1842_v21  ;;  %2002 = vmatpush.msra.mxu3 %v1843_v33 }
 0x428   :  { %1880 = vmatpush.msrb.mxu0 %v1836_v32  ;;  %1921 = vmatpush.msra.mxu1 %v1837_v45 }
 0x429   :  { %1962 = vmatpush.msra.mxu2 %v1838_v4  ;;  %2003 = vmatpush.msra.mxu3 %v1839_v5 }
 0x42a   :  { %1881 = vmatpush.msrb.mxu0 %v1832_v6  ;;  %1922 = vmatpush.msra.mxu1 %v1833_v51 }
 0x42b   :  { %1963 = vmatpush.msra.mxu2 %v1834_v59  ;;  %2004 = vmatpush.msra.mxu3 %v1835_v35  ;;  %v5720_v35 = vld [vmem:[#allocation38_spill] sm:$0xff] }
 0x42c   :  { %1882 = vmatpush.msrb.mxu0 %v1828_v41  ;;  %1923 = vmatpush.msra.mxu1 %v1829_v15  ;;  %v5721_v41 = vld [vmem:[#allocation63_spill] sm:$0xff]  ;;  %v4488_v15 = vld [vmem:[#allocation9 + $0x1f0] sm:$0xff] }
 0x42d   :  { %1964 = vmatpush.msra.mxu2 %v1830_v16  ;;  %2005 = vmatpush.msra.mxu3 %v1831_v43  ;;  %v4490_v16 = vld [vmem:[#allocation9 + $0x1e0] sm:$0xff]  ;;  %v4492_v43 = vld [vmem:[#allocation9 + $0x1e8] sm:$0xff] }
 0x42e   :  { %1883 = vmatpush.msrb.mxu0 %v1824_v46  ;;  %1924 = vmatpush.msra.mxu1 %v1825_v47  ;;  %v4496_v46 = vld [vmem:[#allocation9 + $0x1d0] sm:$0xff]  ;;  %v4498_v47 = vld [vmem:[#allocation9 + $0x1c0] sm:$0xff] }
 0x42f   :  { %1965 = vmatpush.msra.mxu2 %v1826_v13  ;;  %2006 = vmatpush.msra.mxu3 %v1827_v52  ;;  %v4505_v13 = vld [vmem:[#allocation9 + $0x1b0] sm:$0xff]  ;;  %v4507_v52 = vld [vmem:[#allocation9 + $0x1a0] sm:$0xff] }
 0x430   :  { %1884 = vmatpush.msrb.mxu0 %v1820_v28  ;;  %1925 = vmatpush.msra.mxu1 %v1821_v60  ;;  %v4533_v28 = vld [vmem:[#allocation9 + $0x170] sm:$0xff]  ;;  %v4535_v60 = vld [vmem:[#allocation9 + $0x160] sm:$0xff] }
 0x431   :  { %1966 = vmatpush.msra.mxu2 %v1822_v61  ;;  %2007 = vmatpush.msra.mxu3 %v1823_v62  ;;  %v4539_v61 = vld [vmem:[#allocation9 + $0x168] sm:$0xff]  ;;  %v4541_v62 = vld [vmem:[#allocation9 + $0x198] sm:$0xff] }
 0x432   :  { %1885 = vmatpush.msrb.mxu0 %v1816_v22  ;;  %1926 = vmatpush.msra.mxu1 %v1817_v63  ;;  %v4545_v22 = vld [vmem:[#allocation9 + $0x150] sm:$0xff]  ;;  %v4547_v63 = vld [vmem:[#allocation9 + $0x140] sm:$0xff] }
 0x433   :  { %1967 = vmatpush.msra.mxu2 %v1818_v0  ;;  %2008 = vmatpush.msra.mxu3 %v1819_v1  ;;  %v4576_v0 = vld [vmem:[#allocation9 + $0x120] sm:$0xff]  ;;  %v4580_v1 = vld [vmem:[#allocation9 + $0x158] sm:$0xff] }
 0x434   :  { %1886 = vmatpush.msrb.mxu0 %v1812_v2  ;;  %1927 = vmatpush.msra.mxu1 %v1813_v3  ;;  %v4584_v2 = vld [vmem:[#allocation9 + $0x110] sm:$0xff]  ;;  %v4588_v3 = vld [vmem:[#allocation9 + $0x108] sm:$0xff] }
 0x435   :  { %1968 = vmatpush.msra.mxu2 %v1814_v7  ;;  %2009 = vmatpush.msra.mxu3 %v1815_v18  ;;  %v4594_v7 = vld [vmem:[#allocation9 + $0x138] sm:$0xff] }
 0x436   :  { %1887 = vmatpush.msrb.mxu0 %v1808_v44  ;;  %1928 = vmatpush.msra.mxu1 %v1809_v27  ;;  %v4597_v18 = vld [vmem:[#allocation9 + $0x118] sm:$0xff]  ;;  %v4602_v44 = vld [vmem:[#allocation9 + $0xe0] sm:$0xff]  ;;  %v4604_v27 = vld [vmem:[#allocation9 + $0xe8] sm:$0xff] }
 0x437   :  { %1969 = vmatpush.msra.mxu2 %v1810_v23  ;;  %2010 = vmatpush.msra.mxu3 %v1811_v11  ;;  %v4615_v23 = vld [vmem:[#allocation9 + $0xc8] sm:$0xff]  ;;  %v4621_v11 = vld [vmem:[%s5450_s3] sm:$0xf] }
 0x493   :  { %v1524_v53 = vpop.f32.mrf.mxu0  ;;  %v1544_v54 = vpop.f32.mrf.mxu1 }
 0x494   :  { %v1525_v56 = vadd.f32 %v1524_v53, %v5715_v55  ;;  %v1545_v58 = vadd.f32 %v1544_v54, %v5716_v57  ;;  %v4511_v53 = vld [vmem:[#allocation9 + $0x1a8] sm:$0xff]  ;;  %v4513_v54 = vld [vmem:[#allocation9 + $0x1d8] sm:$0xff]  ;;  %v4521_v55 = vld [vmem:[#allocation9 + $0x190] sm:$0xff] }
 0x495   :  { %v4527_v57 = vld [vmem:[#allocation9 + $0x188] sm:$0xff] }
 0x496   :  { %v1597_v29 = vadd.f32 %v1589_v49, %v1525_v56  ;;  %v1598_v17 = vadd.f32 %v1590_v50, %v1545_v58  ;;  %v4500_v49 = vld [vmem:[#allocation9 + $0x1c8] sm:$0xff]  ;;  %v4503_v50 = vld [vmem:[#allocation9 + $0x1f8] sm:$0xff]  ;;  %v4523_v56 = vld [vmem:[#allocation9 + $0x180] sm:$0xff] }
 0x497   :  { %v4529_v58 = vld [vmem:[#allocation9 + $0x1b8] sm:$0xff] }
 0x498   :  { %3144 = vtanh.f32 %v1597_v29  ;;  %v4553_v29 = vld [vmem:[#allocation9 + $0x178] sm:$0xff] }
 0x499   :  { %3146 = vtanh.f32 %v1598_v17  ;;  %v4561_v17 = vld [vmem:[#allocation9 + $0x130] sm:$0xff] }
 0x49a   :  { %v1564_v31 = vpop.f32.mrf.mxu2  ;;  %v1584_v8 = vpop.f32.mrf.mxu3 }
 0x49b   :  { %v1565_v36 = vadd.f32 %v1564_v31, %v5717_v34  ;;  %v1585_v20 = vadd.f32 %v1584_v8, %v5718_v37  ;;  %v4608_v31 = vld [vmem:[#allocation9 + $0xf8] sm:$0xff]  ;;  %v4611_v8 = vld [vmem:[#allocation9 + $0xd0] sm:$0xff]  ;;  %v4630_v37 = vld [vmem:[#allocation9 + $0xa0] sm:$0xff] }
 0x49c   :  { %v4625_v34 = vld [vmem:[#allocation9 + $0xd8] sm:$0xff] }
 0x49d   :  { %v1599_v12 = vadd.f32 %v1591_v9, %v1565_v36  ;;  %v1600_v38 = vadd.f32 %v1592_v30, %v1585_v20  ;;  %v4600_v9 = vld [vmem:[#allocation9 + $0xf0] sm:$0xff]  ;;  %v4613_v30 = vld [vmem:[#allocation9 + $0xc0] sm:$0xff]  ;;  %v4632_v20 = vld [vmem:[#allocation9 + $0xa8] sm:$0xff] }
 0x49e   :  { %v3145_v39 = vpop.eup %3144  ;;  %v4628_v36 = vld [vmem:[#allocation9 + $0xb0] sm:$0xff] }
 0x49f   :  { %v3147_v40 = vpop.eup %3146  ;;  %3148 = vtanh.f32 %v1599_v12  ;;  %v1605_v19 = vadd.f32 1.0, %v3145_v39  ;;  %5722 = vst [vmem:[#allocation39_spill] sm:$0xff] %v4628_v36  ;;  %v4637_v12 = vld [vmem:[#allocation9 + $0x90] sm:$0xff]  ;;  %v4639_v39 = vld [vmem:[#allocation9 + $0x80] sm:$0xff] }
 0x4a0   :  { %v1607_v25 = vadd.f32 1.0, %v3147_v40  ;;  %3150 = vtanh.f32 %v1600_v38  ;;  %5723 = vst [vmem:[#allocation40_spill] sm:$0xff] %v4637_v12  ;;  %v4641_v38 = vld [vmem:[#allocation9 + $0x88] sm:$0xff]  ;;  %v1771_v40 = vperm.slane %v4621_v11, 0 }
 0x4a1   :  { %v1606_v21 = vmul.f32 0.5, %v1605_v19  ;;  %5724 = vst [vmem:[#allocation43_spill] sm:$0xff] %v4639_v39  ;;  %v1772_v19 = vperm.slane %v4621_v11, 1 }
 0x4a2   :  { %v1608_v24 = vmul.f32 0.5, %v1607_v25  ;;  %5725 = vst [vmem:[#allocation47_spill] sm:$0xff] %v4641_v38  ;;  %v4646_v25 = vld [vmem:[#allocation9 + $0xb8] sm:$0xff] }
 0x4a3   :  { %5726 = vst [vmem:[#allocation51_spill] sm:$0xff] %v4646_v25 }
 0x4a4   :  { %v1611_v32 = vmul.f32 %v1608_v24, %v4444_v26  ;;  %v5719_v26 = vld [vmem:[#allocation37_spill] sm:$0xff]  ;;  %v4648_v24 = vld [vmem:[#allocation9 + $0x70] sm:$0xff] }
 0x4a5   :  { %v3149_v33 = vpop.eup %3148  ;;  %5727 = vst [vmem:[#allocation55_spill] sm:$0xff] %v4648_v24 }
 0x4a6   :  { %v1612_v45 = vmul.f32 %v3149_v33, %v1606_v21  ;;  %v3151_v4 = vpop.eup %3150  ;;  %v4650_v21 = vld [vmem:[#allocation9 + $0x60] sm:$0xff] }
 0x4a7   :  { %v1609_v6 = vadd.f32 1.0, %v3151_v4  ;;  %5728 = vst [vmem:[#allocation59_spill] sm:$0xff] %v4650_v21  ;;  %v4656_v4 = vld [vmem:[#allocation9 + $0x98] sm:$0xff] }
 0x4a8   :  { %v4467_v5 = vadd.f32 %v1612_v45, %v1611_v32  ;;  %v4654_v45 = vld [vmem:[#allocation9 + $0x68] sm:$0xff]  ;;  %5730 = vst [vmem:[#allocation20_spill] sm:$0xff] %v4656_v4 }
 0x4a9   :  { %v1610_v51 = vmul.f32 0.5, %v1609_v6  ;;  %5729 = vst [vmem:[#allocation24_spill] sm:$0xff] %v4654_v45  ;;  %v5731_v6 = vld [vmem:[#allocation19_spill] sm:$0xff] }
 0x4aa   :  { %3152 = vtanh.f32 %v4467_v5 }
 0x4b0   :  { %v3153_v59 = vpop.eup %3152 }
 0x4b1   :  { %v4470_v14 = vmul.f32 %v3153_v59, %v1610_v51  ;;  %v5732_v59 = vld [vmem:[#allocation34_spill] sm:$0xff] }
 0x4b3   :  { %1705 = vmatmul.f32.vlgmr.msra.gmra.mxu0 %v4470_v14  ;;  %1725 = vmatmul.f32.vlgmr.msrb.gmra.mxu1 %v4470_v14 }
 0x4b4   :  { %1745 = vmatmul.f32.vlgmr.msrb.gmra.mxu2 %v4470_v14  ;;  %1765 = vmatmul.f32.vlgmr.msrb.gmra.mxu3 %v4470_v14 }
 0x4b5   :  { %2176 = vmatpush.msrb.mxu2 %v4488_v15  ;;  %2136 = vmatpush.msra.mxu0 %v4490_v16 }
 0x4b6   :  { %2156 = vmatpush.msrb.mxu1 %v4492_v43  ;;  %2196 = vmatpush.msrb.mxu3 %v4503_v50 }
 0x4b7   :  { %2177 = vmatpush.msrb.mxu2 %v4496_v46  ;;  %2137 = vmatpush.msra.mxu0 %v4498_v47 }
 0x4b8   :  { %2157 = vmatpush.msrb.mxu1 %v4500_v49  ;;  %2197 = vmatpush.msrb.mxu3 %v4513_v54 }
 0x4b9   :  { %2178 = vmatpush.msrb.mxu2 %v4505_v13  ;;  %2138 = vmatpush.msra.mxu0 %v4507_v52 }
 0x4ba   :  { %2158 = vmatpush.msrb.mxu1 %v4511_v53  ;;  %2198 = vmatpush.msrb.mxu3 %v4529_v58 }
 0x4bb   :  { %1888 = vmatmul.f32.vlgmr.msrb.gmra.mxu0 %v5719_v26  ;;  %1929 = vmatmul.f32.vlgmr.msra.gmra.mxu1 %v5719_v26 }
 0x4bc   :  { %1970 = vmatmul.f32.vlgmr.msra.gmra.mxu2 %v5719_v26  ;;  %2011 = vmatmul.f32.vlgmr.msra.gmra.mxu3 %v5719_v26  ;;  %v4662_v26 = vld [vmem:[#allocation9 + $0x50] sm:$0xff] }
 0x4bd   :  { %2179 = vmatpush.msrb.mxu2 %v4521_v55  ;;  %2139 = vmatpush.msra.mxu0 %v4523_v56  ;;  %5733 = vst [vmem:[#allocation21_spill] sm:$0xff] %v4662_v26 }
 0x4be   :  { %2159 = vmatpush.msrb.mxu1 %v4527_v57  ;;  %2199 = vmatpush.msrb.mxu3 %v4541_v62 }
 0x4bf   :  { %2180 = vmatpush.msrb.mxu2 %v4533_v28  ;;  %2140 = vmatpush.msra.mxu0 %v4535_v60 }
 0x4c0   :  { %2160 = vmatpush.msrb.mxu1 %v4539_v61  ;;  %2200 = vmatpush.msrb.mxu3 %v4553_v29 }
 0x4c1   :  { %2181 = vmatpush.msrb.mxu2 %v4545_v22  ;;  %2141 = vmatpush.msra.mxu0 %v4547_v63 }
 0x4c2   :  { %2201 = vmatpush.msrb.mxu3 %v4580_v1 }
 0x4c3   :  { %1891 = vmatmul.f32.gmra.mxu0 %v5720_v35  ;;  %1932 = vmatmul.f32.gmra.mxu1 %v5720_v35 }
 0x4c4   :  { %1973 = vmatmul.f32.gmra.mxu2 %v5720_v35  ;;  %2014 = vmatmul.f32.gmra.mxu3 %v5720_v35  ;;  %v4664_v35 = vld [vmem:[#allocation9 + $0x40] sm:$0xff] }
 0x4c5   :  { %2182 = vmatpush.msrb.mxu2 %v4561_v17  ;;  %2142 = vmatpush.msra.mxu0 %v4576_v0  ;;  %5734 = vst [vmem:[#allocation22_spill] sm:$0xff] %v4664_v35 }
 0x4c6   :  { %2202 = vmatpush.msrb.mxu3 %v4594_v7 }
 0x4c7   :  { %2183 = vmatpush.msrb.mxu2 %v4584_v2 }
 0x4c8   :  { %2203 = vmatpush.msrb.mxu3 %v4597_v18 }
 0x4c9   :  { %2184 = vmatpush.msrb.mxu2 %v4600_v9 }
 0x4ca   :  { %2204 = vmatpush.msrb.mxu3 %v4608_v31 }
 0x4cb   :  { %1894 = vmatmul.f32.gmra.mxu0 %v5721_v41  ;;  %1935 = vmatmul.f32.gmra.mxu1 %v5721_v41 }
 0x4cc   :  { %1976 = vmatmul.f32.gmra.mxu2 %v5721_v41  ;;  %2017 = vmatmul.f32.gmra.mxu3 %v5721_v41  ;;  %v4668_v41 = vld [vmem:[#allocation9 + $0x48] sm:$0xff] }
 0x4cd   :  { %2185 = vmatpush.msrb.mxu2 %v4611_v8  ;;  %2205 = vmatpush.msrb.mxu3 %v4625_v34  ;;  %5735 = vst [vmem:[#allocation41_spill] sm:$0xff] %v4668_v41 }
 0x4cf   :  { %2186 = vmatpush.msrb.mxu2 %v4628_v36  ;;  %2206 = vmatpush.msrb.mxu3 %v4646_v25 }
 0x4d1   :  { %2187 = vmatpush.msrb.mxu2 %v4637_v12  ;;  %v4670_v12 = vld [vmem:[#allocation9 + $0x78] sm:$0xff]  ;;  %2207 = vmatpush.msrb.mxu3 %v4656_v4 }
 0x4d2   :  { %5736 = vst [vmem:[#allocation42_spill] sm:$0xff] %v4670_v12 }
 0x4d3   :  { %1897 = vmatmul.f32.gmra.mxu0 %v4347_v10  ;;  %1938 = vmatmul.f32.gmra.mxu1 %v4347_v10 }
 0x4d4   :  { %1979 = vmatmul.f32.gmra.mxu2 %v4347_v10  ;;  %2020 = vmatmul.f32.gmra.mxu3 %v4347_v10  ;;  %v4551_v10 = vld [vmem:[#allocation9 + $0x148] sm:$0xff] }
 0x4d5   :  { %2161 = vmatpush.msrb.mxu1 %v4551_v10  ;;  %2188 = vmatpush.msrb.mxu2 %v4648_v24  ;;  %v4682_v24 = vld [vmem:[#allocation9 + $0x58] sm:$0xff] }
 0x4d6   :  { %5740 = vst [vmem:[#allocation48_spill] sm:$0xff] %v4682_v24  ;;  %2208 = vmatpush.msrb.mxu3 %v4670_v12  ;;  %v5745_v12 = vld [vmem:[#allocation35_spill] sm:$0xff] }
 0x4d7   :  { %2189 = vmatpush.msrb.mxu2 %v4662_v26  ;;  %v4695_v26 = vld [vmem:[#allocation9 + $0x8] sm:$0xff] }
 0x4d8   :  { %5744 = vst [vmem:[#allocation53_spill] sm:$0xff] %v4695_v26  ;;  %2209 = vmatpush.msrb.mxu3 %v4682_v24 }
 0x4db   :  { %1900 = vmatmul.f32.gmra.mxu0 %v4429_v48  ;;  %1941 = vmatmul.f32.gmra.mxu1 %v4429_v48 }
 0x4dc   :  { %1982 = vmatmul.f32.gmra.mxu2 %v4429_v48  ;;  %2023 = vmatmul.f32.gmra.mxu3 %v4429_v48  ;;  %v4578_v48 = vld [vmem:[#allocation9 + $0x128] sm:$0xff] }
 0x4dd   :  { %2162 = vmatpush.msrb.mxu1 %v4578_v48 }
 0x4df   :  { %2163 = vmatpush.msrb.mxu1 %v4588_v3 }
 0x4e1   :  { %2164 = vmatpush.msrb.mxu1 %v4604_v27 }
 0x4e3   :  { %1903 = vmatmul.f32.gmra.mxu0 %v4447_v42  ;;  %1944 = vmatmul.f32.gmra.mxu1 %v4447_v42 }
 0x4e4   :  { %1985 = vmatmul.f32.gmra.mxu2 %v4447_v42  ;;  %2026 = vmatmul.f32.gmra.mxu3 %v4447_v42  ;;  %v4586_v42 = vld [vmem:[#allocation9 + $0x100] sm:$0xff] }
 0x4e5   :  { %2143 = vmatpush.msra.mxu0 %v4586_v42  ;;  %2165 = vmatpush.msrb.mxu1 %v4615_v23 }
 0x4e7   :  { %2144 = vmatpush.msra.mxu0 %v4602_v44  ;;  %2166 = vmatpush.msrb.mxu1 %v4632_v20 }
 0x4e9   :  { %2145 = vmatpush.msra.mxu0 %v4613_v30  ;;  %2167 = vmatpush.msrb.mxu1 %v4641_v38 }
 0x4eb   :  { %1906 = vmatmul.f32.gmra.mxu0 %v4470_v14  ;;  %1947 = vmatmul.f32.gmra.mxu1 %v4470_v14 }
 0x4ec   :  { %1988 = vmatmul.f32.gmra.mxu2 %v4470_v14  ;;  %2029 = vmatmul.f32.gmra.mxu3 %v4470_v14 }
 0x4ed   :  { %2146 = vmatpush.msra.mxu0 %v4630_v37  ;;  %2168 = vmatpush.msrb.mxu1 %v4654_v45  ;;  %v5746_v45 = vld [vmem:[#allocation36_spill] sm:$0xff] }
 0x4ef   :  { %2147 = vmatpush.msra.mxu0 %v4639_v39  ;;  %2169 = vmatpush.msrb.mxu1 %v4668_v41  ;;  %v1774_v41 = vperm.slane %v4621_v11, 3 }
 0x4f1   :  { %2148 = vmatpush.msra.mxu0 %v4650_v21 }
 0x4f3   :  { %2149 = vmatpush.msra.mxu0 %v4664_v35 }
 0x530   :  { %v1706_v33 = vpop.f32.mrf.mxu0  ;;  %v1726_v32 = vpop.f32.mrf.mxu1 }
 0x531   :  { %v1707_v51 = vadd.f32 %v1706_v33, %v5731_v6  ;;  %v1727_v14 = vadd.f32 %v1726_v32, %v5732_v59  ;;  %v4674_v32 = vld [vmem:[#allocation9 + $0x30] sm:$0xff]  ;;  %v4676_v6 = vld [vmem:[#allocation9 + $0x20] sm:$0xff]  ;;  %v4680_v59 = vld [vmem:[#allocation9 + $0x28] sm:$0xff] }
 0x532   :  { %5737 = vst [vmem:[#allocation44_spill] sm:$0xff] %v4674_v32  ;;  %2190 = vmatpush.msrb.mxu2 %v4674_v32  ;;  %2150 = vmatpush.msra.mxu0 %v4676_v6  ;;  %v4704_v32 = vld [vmem:[#allocation9 + $0x18] sm:$0xff] }
 0x533   :  { %v1779_v39 = vadd.f32 %v1771_v40, %v1707_v51  ;;  %v1780_v33 = vadd.f32 %v1772_v19, %v1727_v14  ;;  %5738 = vst [vmem:[#allocation45_spill] sm:$0xff] %v4676_v6  ;;  %v4686_v40 = vld [vmem:[#allocation9 + $0x10] sm:$0xff]  ;;  %v4688_v19 = vld [vmem:[#allocation9] sm:$0xff]  ;;  %v1773_v51 = vperm.slane %v4621_v11, 2  ;;  %v4693_v14 = vld [vmem:[#allocation9 + $0x38] sm:$0xff]  ;;  %2170 = vmatpush.msrb.mxu1 %v4680_v59 }
 0x534   :  { %5739 = vst [vmem:[#allocation46_spill] sm:$0xff] %v4680_v59  ;;  %2191 = vmatpush.msrb.mxu2 %v4686_v40  ;;  %2151 = vmatpush.msra.mxu0 %v4688_v19 }
 0x535   :  { %3154 = vtanh.f32 %v1779_v39  ;;  %5741 = vst [vmem:[#allocation49_spill] sm:$0xff] %v4686_v40  ;;  %2210 = vmatpush.msrb.mxu3 %v4693_v14  ;;  %2171 = vmatpush.msrb.mxu1 %v4695_v26 }
 0x536   :  { %5742 = vst [vmem:[#allocation50_spill] sm:$0xff] %v4688_v19  ;;  %3156 = vtanh.f32 %v1780_v33  ;;  %2249 = vmatpush.msrb.mxu0 %v4490_v16  ;;  %2289 = vmatpush.msra.mxu2 %v4488_v15 }
 0x537   :  { %5743 = vst [vmem:[#allocation52_spill] sm:$0xff] %v4693_v14  ;;  %v1746_v39 = vpop.f32.mrf.mxu2  ;;  %v1766_v35 = vpop.f32.mrf.mxu3  ;;  %2269 = vmatpush.msra.mxu1 %v4492_v43  ;;  %2211 = vmatpush.msrb.mxu3 %v4704_v32 }
 0x538   :  { %v1747_v33 = vadd.f32 %v1746_v39, %v5745_v12  ;;  %v1767_v21 = vadd.f32 %v1766_v35, %v5746_v45  ;;  %5747 = vst [vmem:[#allocation54_spill] sm:$0xff] %v4704_v32  ;;  %2250 = vmatpush.msrb.mxu0 %v4498_v47  ;;  %2290 = vmatpush.msra.mxu2 %v4496_v46 }
 0x539   :  { %2309 = vmatpush.msra.mxu3 %v4503_v50  ;;  %2270 = vmatpush.msra.mxu1 %v4500_v49 }
 0x53a   :  { %v1781_v6 = vadd.f32 %v1773_v51, %v1747_v33  ;;  %v1782_v59 = vadd.f32 %v1774_v41, %v1767_v21  ;;  %2251 = vmatpush.msrb.mxu0 %v4507_v52  ;;  %2291 = vmatpush.msra.mxu2 %v4505_v13 }
 0x53b   :  { %v3155_v11 = vpop.eup %3154  ;;  %2310 = vmatpush.msra.mxu3 %v4513_v54  ;;  %2271 = vmatpush.msra.mxu1 %v4511_v53 }
 0x53c   :  { %v3157_v12 = vpop.eup %3156  ;;  %3158 = vtanh.f32 %v1781_v6  ;;  %v1787_v45 = vadd.f32 1.0, %v3155_v11  ;;  %2252 = vmatpush.msrb.mxu0 %v4523_v56  ;;  %2292 = vmatpush.msra.mxu2 %v4521_v55 }
 0x53d   :  { %v1789_v35 = vadd.f32 1.0, %v3157_v12  ;;  %3160 = vtanh.f32 %v1782_v59  ;;  %2311 = vmatpush.msra.mxu3 %v4529_v58  ;;  %2272 = vmatpush.msra.mxu1 %v4527_v57 }
 0x53e   :  { %v1788_v41 = vmul.f32 0.5, %v1787_v45  ;;  %2253 = vmatpush.msrb.mxu0 %v4535_v60  ;;  %2293 = vmatpush.msra.mxu2 %v4533_v28 }
 0x53f   :  { %v1790_v21 = vmul.f32 0.5, %v1789_v35  ;;  %2312 = vmatpush.msra.mxu3 %v4541_v62  ;;  %2273 = vmatpush.msra.mxu1 %v4539_v61  ;;  %v5748_v35 = vld [vmem:[#allocation43_spill] sm:$0xff] }
 0x540   :  { %2254 = vmatpush.msrb.mxu0 %v4547_v63  ;;  %2294 = vmatpush.msra.mxu2 %v4545_v22 }
 0x541   :  { %v1793_v59 = vmul.f32 %v1790_v21, %v4467_v5  ;;  %2313 = vmatpush.msra.mxu3 %v4553_v29  ;;  %2274 = vmatpush.msra.mxu1 %v4551_v10  ;;  %v5749_v21 = vld [vmem:[#allocation40_spill] sm:$0xff] }
 0x542   :  { %v3159_v6 = vpop.eup %3158  ;;  %2255 = vmatpush.msrb.mxu0 %v4576_v0  ;;  %2295 = vmatpush.msra.mxu2 %v4561_v17 }
 0x543   :  { %v1794_v51 = vmul.f32 %v3159_v6, %v1788_v41  ;;  %v3161_v39 = vpop.eup %3160  ;;  %2314 = vmatpush.msra.mxu3 %v4580_v1  ;;  %2275 = vmatpush.msra.mxu1 %v4578_v48  ;;  %v5750_v41 = vld [vmem:[#allocation59_spill] sm:$0xff]  ;;  %v5751_v6 = vld [vmem:[#allocation24_spill] sm:$0xff] }
 0x544   :  { %v1791_v5 = vadd.f32 1.0, %v3161_v39  ;;  %2256 = vmatpush.msrb.mxu0 %v4586_v42  ;;  %2296 = vmatpush.msra.mxu2 %v4584_v2  ;;  %v5754_v39 = vld [vmem:[#allocation22_spill] sm:$0xff] }
 0x545   :  { %v1795_v33 = vadd.f32 %v1794_v51, %v1793_v59  ;;  %2315 = vmatpush.msra.mxu3 %v4594_v7  ;;  %2276 = vmatpush.msra.mxu1 %v4588_v3  ;;  %v5752_v59 = vld [vmem:[#allocation55_spill] sm:$0xff]  ;;  %v5753_v51 = vld [vmem:[#allocation42_spill] sm:$0xff] }
 0x546   :  { %2257 = vmatpush.msrb.mxu0 %v4602_v44  ;;  %2297 = vmatpush.msra.mxu2 %v4600_v9  ;;  %v1792_v11 = vmul.f32 0.5, %v1791_v5  ;;  %v5756_v5 = vld [vmem:[#allocation21_spill] sm:$0xff] }
 0x547   :  { %3162 = vtanh.f32 %v1795_v33  ;;  %2316 = vmatpush.msra.mxu3 %v4597_v18  ;;  %2277 = vmatpush.msra.mxu1 %v4604_v27  ;;  %v5755_v33 = vld [vmem:[#allocation41_spill] sm:$0xff] }
 0x548   :  { %2258 = vmatpush.msrb.mxu0 %v4613_v30  ;;  %2298 = vmatpush.msra.mxu2 %v4611_v8 }
 0x549   :  { %2317 = vmatpush.msra.mxu3 %v4608_v31  ;;  %2278 = vmatpush.msra.mxu1 %v4615_v23 }
 0x54a   :  { %2259 = vmatpush.msrb.mxu0 %v4630_v37  ;;  %2299 = vmatpush.msra.mxu2 %v4628_v36 }
 0x54b   :  { %2318 = vmatpush.msra.mxu3 %v4625_v34  ;;  %2279 = vmatpush.msra.mxu1 %v4632_v20 }
 0x54c   :  { %2260 = vmatpush.msrb.mxu0 %v5748_v35  ;;  %2300 = vmatpush.msra.mxu2 %v5749_v21 }
 0x54d   :  { %v3163_v12 = vpop.eup %3162  ;;  %2319 = vmatpush.msra.mxu3 %v4646_v25  ;;  %2280 = vmatpush.msra.mxu1 %v4641_v38 }
 0x54e   :  { %v1797_v45 = vmul.f32 %v3163_v12, %v1792_v11  ;;  %2261 = vmatpush.msrb.mxu0 %v5750_v41  ;;  %2301 = vmatpush.msra.mxu2 %v5752_v59  ;;  %v5757_v11 = vmov 0.0   ;;  %v5758_v12 = vld [vmem:[#allocation45_spill] sm:$0xff] }
 0x54f   :  { %2320 = vmatpush.msra.mxu3 %v4656_v4  ;;  %2281 = vmatpush.msra.mxu1 %v5751_v6 }
 0x550   :  { %1909 = vmatmul.f32.gmra.mxu0 %v1797_v45  ;;  %1950 = vmatmul.f32.gmra.mxu1 %v1797_v45 }
 0x551   :  { %1991 = vmatmul.f32.gmra.mxu2 %v1797_v45  ;;  %2032 = vmatmul.f32.gmra.mxu3 %v1797_v45  ;;  %v5759_v45 = vld [vmem:[#allocation46_spill] sm:$0xff] }
 0x552   :  { %2321 = vmatpush.msra.mxu3 %v5753_v51  ;;  %2262 = vmatpush.msrb.mxu0 %v5754_v39  ;;  %v5760_v51 = vld [vmem:[#allocation44_spill] sm:$0xff] }
 0x553   :  { %2282 = vmatpush.msra.mxu1 %v5755_v33  ;;  %2302 = vmatpush.msra.mxu2 %v5756_v5 }
 0x554   :  { %2322 = vmatpush.msra.mxu3 %v4682_v24  ;;  %2263 = vmatpush.msrb.mxu0 %v5758_v12 }
 0x555   :  { %2283 = vmatpush.msra.mxu1 %v5759_v45  ;;  %2303 = vmatpush.msra.mxu2 %v5760_v51 }
 0x556   :  { %2323 = vmatpush.msra.mxu3 %v4693_v14  ;;  %2264 = vmatpush.msrb.mxu0 %v4688_v19 }
 0x557   :  { %2284 = vmatpush.msra.mxu1 %v4695_v26  ;;  %2304 = vmatpush.msra.mxu2 %v4686_v40 }
 0x558   :  { %2152 = vmatmul.f32.vlgmr.msra.gmra.mxu0 %v5757_v11  ;;  %2172 = vmatmul.f32.vlgmr.msrb.gmra.mxu1 %v5757_v11 }
 0x559   :  { %2192 = vmatmul.f32.vlgmr.msrb.gmra.mxu2 %v5757_v11  ;;  %2212 = vmatmul.f32.vlgmr.msrb.gmra.mxu3 %v5757_v11  ;;  %v5761_v11 = vld [vmem:[#allocation42_spill] sm:$0xff] }
 0x55a   :  { %2324 = vmatpush.msra.mxu3 %v4704_v32  ;;  %2352 = vmatpush.msra.mxu0 %v4490_v16 }
 0x55b   :  { %2372 = vmatpush.msrb.mxu1 %v4492_v43  ;;  %2392 = vmatpush.msrb.mxu2 %v4488_v15 }
 0x55c   :  { %2412 = vmatpush.msrb.mxu3 %v4503_v50  ;;  %2353 = vmatpush.msra.mxu0 %v4498_v47 }
 0x55d   :  { %2373 = vmatpush.msrb.mxu1 %v4500_v49  ;;  %2393 = vmatpush.msrb.mxu2 %v4496_v46 }
 0x55e   :  { %2413 = vmatpush.msrb.mxu3 %v4513_v54  ;;  %2354 = vmatpush.msra.mxu0 %v4507_v52 }
 0x55f   :  { %2374 = vmatpush.msrb.mxu1 %v4511_v53  ;;  %2394 = vmatpush.msrb.mxu2 %v4505_v13 }
 0x560   :  { %2414 = vmatpush.msrb.mxu3 %v4529_v58  ;;  %2355 = vmatpush.msra.mxu0 %v4523_v56 }
 0x561   :  { %2375 = vmatpush.msrb.mxu1 %v4527_v57  ;;  %2395 = vmatpush.msrb.mxu2 %v4521_v55 }
 0x562   :  { %2415 = vmatpush.msrb.mxu3 %v4541_v62  ;;  %2356 = vmatpush.msra.mxu0 %v4535_v60 }
 0x563   :  { %2376 = vmatpush.msrb.mxu1 %v4539_v61  ;;  %2396 = vmatpush.msrb.mxu2 %v4533_v28 }
 0x564   :  { %2416 = vmatpush.msrb.mxu3 %v4553_v29  ;;  %2357 = vmatpush.msra.mxu0 %v4547_v63 }
 0x565   :  { %2377 = vmatpush.msrb.mxu1 %v4551_v10  ;;  %2397 = vmatpush.msrb.mxu2 %v4545_v22 }
 0x566   :  { %2417 = vmatpush.msrb.mxu3 %v4580_v1  ;;  %2358 = vmatpush.msra.mxu0 %v4576_v0 }
 0x567   :  { %2378 = vmatpush.msrb.mxu1 %v4578_v48  ;;  %2398 = vmatpush.msrb.mxu2 %v4561_v17 }
 0x568   :  { %2418 = vmatpush.msrb.mxu3 %v4594_v7  ;;  %2359 = vmatpush.msra.mxu0 %v4586_v42 }
 0x569   :  { %2379 = vmatpush.msrb.mxu1 %v4588_v3  ;;  %2399 = vmatpush.msrb.mxu2 %v4584_v2 }
 0x56a   :  { %2419 = vmatpush.msrb.mxu3 %v4597_v18  ;;  %2360 = vmatpush.msra.mxu0 %v4602_v44 }
 0x56b   :  { %2380 = vmatpush.msrb.mxu1 %v4604_v27  ;;  %2400 = vmatpush.msrb.mxu2 %v4600_v9 }
 0x56c   :  { %2420 = vmatpush.msrb.mxu3 %v4608_v31  ;;  %2361 = vmatpush.msra.mxu0 %v4613_v30 }
 0x56d   :  { %2381 = vmatpush.msrb.mxu1 %v4615_v23  ;;  %2401 = vmatpush.msrb.mxu2 %v4611_v8 }
 0x56e   :  { %2421 = vmatpush.msrb.mxu3 %v4625_v34  ;;  %2362 = vmatpush.msra.mxu0 %v4630_v37 }
 0x56f   :  { %2382 = vmatpush.msrb.mxu1 %v4632_v20  ;;  %2402 = vmatpush.msrb.mxu2 %v4628_v36 }
 0x570   :  { %2422 = vmatpush.msrb.mxu3 %v4646_v25  ;;  %2363 = vmatpush.msra.mxu0 %v5748_v35 }
 0x571   :  { %2383 = vmatpush.msrb.mxu1 %v4641_v38  ;;  %2403 = vmatpush.msrb.mxu2 %v5749_v21 }
 0x572   :  { %2423 = vmatpush.msrb.mxu3 %v4656_v4  ;;  %2364 = vmatpush.msra.mxu0 %v5750_v41 }
 0x573   :  { %2384 = vmatpush.msrb.mxu1 %v5751_v6  ;;  %2404 = vmatpush.msrb.mxu2 %v5752_v59 }
 0x574   :  { %2424 = vmatpush.msrb.mxu3 %v5761_v11  ;;  %2365 = vmatpush.msra.mxu0 %v5754_v39  ;;  %v1971_v39 = vpop.f32.mrf.mxu2 }
 0x575   :  { %2385 = vmatpush.msrb.mxu1 %v5755_v33  ;;  %2405 = vmatpush.msrb.mxu2 %v5756_v5  ;;  %v1889_v33 = vpop.f32.mrf.mxu0  ;;  %v1930_v5 = vpop.f32.mrf.mxu1 }
 0x576   :  { %2425 = vmatpush.msrb.mxu3 %v4682_v24  ;;  %2366 = vmatpush.msra.mxu0 %v5758_v12  ;;  %v2012_v24 = vpop.f32.mrf.mxu3 }
 0x577   :  { %2386 = vmatpush.msrb.mxu1 %v5759_v45  ;;  %2406 = vmatpush.msrb.mxu2 %v5760_v51 }
 0x578   :  { %2426 = vmatpush.msrb.mxu3 %v4693_v14  ;;  %2367 = vmatpush.msra.mxu0 %v4688_v19 }
 0x579   :  { %2387 = vmatpush.msrb.mxu1 %v4695_v26  ;;  %2407 = vmatpush.msrb.mxu2 %v4686_v40 }
 0x57a   :  { %2427 = vmatpush.msrb.mxu3 %v4704_v32 }
 0x57c   :  { %v4846_v45 = vpop.f32.mrf.mxu2 }
 0x57d   :  { %v4842_v11 = vpop.f32.mrf.mxu0  ;;  %v4844_v12 = vpop.f32.mrf.mxu1  ;;  %5764 = vst [vmem:[#allocation58_spill] sm:$0xff] %v4846_v45 }
 0x57e   :  { %5762 = vst [vmem:[#allocation56_spill] sm:$0xff] %v4842_v11  ;;  %v4848_v51 = vpop.f32.mrf.mxu3 }
 0x57f   :  { %5763 = vst [vmem:[#allocation57_spill] sm:$0xff] %v4844_v12 }
 0x580   :  { %5765 = vst [vmem:[#allocation60_spill] sm:$0xff] %v4848_v51 }
 0x584   :  { %v4854_v26 = vpop.f32.mrf.mxu2 }
 0x585   :  { %v4850_v14 = vpop.f32.mrf.mxu0  ;;  %v4852_v19 = vpop.f32.mrf.mxu1  ;;  %5768 = vst [vmem:[#allocation28_spill] sm:$0xff] %v4854_v26 }
 0x586   :  { %5766 = vst [vmem:[#allocation61_spill] sm:$0xff] %v4850_v14  ;;  %v4856_v40 = vpop.f32.mrf.mxu3 }
 0x587   :  { %5767 = vst [vmem:[#allocation62_spill] sm:$0xff] %v4852_v19 }
 0x588   :  { %5769 = vst [vmem:[#allocation23_spill] sm:$0xff] %v4856_v40 }
 0x58c   :  { %v4862_v6 = vpop.f32.mrf.mxu2 }
 0x58d   :  { %v4858_v32 = vpop.f32.mrf.mxu0  ;;  %v4860_v59 = vpop.f32.mrf.mxu1  ;;  %5772 = vst [vmem:[#allocation17_spill] sm:$0xff] %v4862_v6 }
 0x58e   :  { %5770 = vst [vmem:[#allocation25_spill] sm:$0xff] %v4858_v32  ;;  %v4864_v11 = vpop.f32.mrf.mxu3 }
 0x58f   :  { %5771 = vst [vmem:[#allocation26_spill] sm:$0xff] %v4860_v59 }
 0x590   :  { %5773 = vst [vmem:[#allocation27_spill] sm:$0xff] %v4864_v11 }
 0x594   :  { %v4870_v51 = vpop.f32.mrf.mxu2 }
 0x595   :  { %v4866_v12 = vpop.f32.mrf.mxu0  ;;  %v4868_v45 = vpop.f32.mrf.mxu1  ;;  %5776 = vst [vmem:[#allocation18_spill] sm:$0xff] %v4870_v51 }
 0x596   :  { %5774 = vst [vmem:[#allocation29_spill] sm:$0xff] %v4866_v12  ;;  %v4872_v14 = vpop.f32.mrf.mxu3 }
 0x597   :  { %5775 = vst [vmem:[#allocation30_spill] sm:$0xff] %v4868_v45 }
 0x598   :  { %5777 = vst [vmem:[#allocation31_spill] sm:$0xff] %v4872_v14 }
 0x59c   :  { %v4878_v40 = vpop.f32.mrf.mxu2 }
 0x59d   :  { %v4874_v19 = vpop.f32.mrf.mxu0  ;;  %v4876_v26 = vpop.f32.mrf.mxu1  ;;  %5780 = vst [vmem:[#allocation37_spill] sm:$0xff] %v4878_v40 }
 0x59e   :  { %5778 = vst [vmem:[#allocation32_spill] sm:$0xff] %v4874_v19  ;;  %v4880_v32 = vpop.f32.mrf.mxu3 }
 0x59f   :  { %5779 = vst [vmem:[#allocation33_spill] sm:$0xff] %v4876_v26  ;;  %v2216_v26 = vld [vmem:[%s5453_s6] sm:$0xf] }
 0x5a0   :  { %5781 = vst [vmem:[#allocation38_spill] sm:$0xff] %v4880_v32  ;;  %v4901_v32 = vperm.slane %v2216_v26, 0  ;;  %v4907_v41 = vperm.slane %v2216_v26, 2  ;;  %v4909_v21 = vperm.slane %v2216_v26, 3 }
 0x5a2   :  { %5790 = vst [vmem:[#allocation67_spill] sm:$0xff] %v4901_v32 }
 0x5a4   :  { %v4886_v11 = vpop.f32.mrf.mxu2 }
 0x5a5   :  { %v4882_v59 = vpop.f32.mrf.mxu0  ;;  %v4884_v6 = vpop.f32.mrf.mxu1  ;;  %5784 = vst [vmem:[#allocation34_spill] sm:$0xff] %v4886_v11 }
 0x5a6   :  { %5782 = vst [vmem:[#allocation63_spill] sm:$0xff] %v4882_v59  ;;  %v4888_v12 = vpop.f32.mrf.mxu3  ;;  %v4903_v59 = vperm.slane %v2216_v26, 1 }
 0x5a7   :  { %5783 = vst [vmem:[#allocation19_spill] sm:$0xff] %v4884_v6 }
 0x5a8   :  { %5785 = vst [vmem:[#allocation35_spill] sm:$0xff] %v4888_v12 }
 0x5a9   :  { %5791 = vst [vmem:[#allocation68_spill] sm:$0xff] %v4903_v59 }
 0x5cd   :  { %v4890_v45 = vpop.f32.mrf.mxu0  ;;  %v4892_v51 = vpop.f32.mrf.mxu1 }
 0x5ce   :  { %5786 = vst [vmem:[#allocation36_spill] sm:$0xff] %v4890_v45 }
 0x5cf   :  { %5787 = vst [vmem:[#allocation64_spill] sm:$0xff] %v4892_v51 }
 0x5d4   :  { %v4897_v19 = vpop.f32.mrf.mxu2  ;;  %v4899_v40 = vpop.f32.mrf.mxu3 }
 0x5d5   :  { %5788 = vst [vmem:[#allocation65_spill] sm:$0xff] %v4897_v19  ;;  %v2153_v6 = vpop.f32.mrf.mxu0  ;;  %v2173_v11 = vpop.f32.mrf.mxu1 }
 0x5d6   :  { %5789 = vst [vmem:[#allocation66_spill] sm:$0xff] %v4899_v40  ;;  %v2154_v14 = vadd.f32 %v2153_v6, %v1889_v33  ;;  %v2174_v12 = vadd.f32 %v2173_v11, %v1930_v5 }
 0x5d8   :  { %v2226_v45 = vadd.f32 %v4901_v32, %v2154_v14  ;;  %v2227_v51 = vadd.f32 %v4903_v59, %v2174_v12 }
 0x5da   :  { %3164 = vtanh.f32 %v2226_v45 }
 0x5db   :  { %3166 = vtanh.f32 %v2227_v51 }
 0x5dc   :  { %v2193_v4 = vpop.f32.mrf.mxu2  ;;  %v2213_v19 = vpop.f32.mrf.mxu3 }
 0x5dd   :  { %v2194_v40 = vadd.f32 %v2193_v4, %v1971_v39  ;;  %v2214_v38 = vadd.f32 %v2213_v19, %v2012_v24  ;;  %v5797_v39 = vld [vmem:[#allocation59_spill] sm:$0xff] }
 0x5df   :  { %v2228_v35 = vadd.f32 %v4907_v41, %v2194_v40  ;;  %v2229_v6 = vadd.f32 %v4909_v21, %v2214_v38  ;;  %v5792_v38 = vld [vmem:[#allocation51_spill] sm:$0xff] }
 0x5e0   :  { %v3165_v25 = vpop.eup %3164 }
 0x5e1   :  { %v3167_v33 = vpop.eup %3166  ;;  %3168 = vtanh.f32 %v2228_v35  ;;  %v2234_v14 = vadd.f32 1.0, %v3165_v25  ;;  %v5793_v25 = vld [vmem:[#allocation43_spill] sm:$0xff]  ;;  %v5795_v35 = vld [vmem:[#allocation40_spill] sm:$0xff] }
 0x5e2   :  { %v2236_v5 = vadd.f32 1.0, %v3167_v33  ;;  %3170 = vtanh.f32 %v2229_v6  ;;  %v5798_v6 = vld [vmem:[#allocation24_spill] sm:$0xff]  ;;  %v5799_v33 = vld [vmem:[#allocation55_spill] sm:$0xff] }
 0x5e3   :  { %v2235_v51 = vmul.f32 0.5, %v2234_v14  ;;  %v5800_v14 = vld [vmem:[#allocation42_spill] sm:$0xff] }
 0x5e4   :  { %v2237_v12 = vmul.f32 0.5, %v2236_v5  ;;  %v5801_v5 = vld [vmem:[#allocation22_spill] sm:$0xff] }
 0x5e6   :  { %v2240_v11 = vmul.f32 0.0, %v2237_v12  ;;  %v5802_v12 = vld [vmem:[#allocation41_spill] sm:$0xff] }
 0x5e7   :  { %v3169_v45 = vpop.eup %3168 }
 0x5e8   :  { %v2241_v59 = vmul.f32 %v3169_v45, %v2235_v51  ;;  %v3171_v32 = vpop.eup %3170  ;;  %v5803_v51 = vld [vmem:[#allocation21_spill] sm:$0xff]  ;;  %v5804_v45 = vld [vmem:[#allocation48_spill] sm:$0xff] }
 0x5e9   :  { %v2238_v24 = vadd.f32 1.0, %v3171_v32  ;;  %v5794_v32 = vld [vmem:[#allocation47_spill] sm:$0xff] }
 0x5ea   :  { %v4913_v26 = vadd.f32 %v2241_v59, %v2240_v11  ;;  %v5796_v59 = vld [vmem:[#allocation20_spill] sm:$0xff]  ;;  %v5805_v11 = vld [vmem:[#allocation45_spill] sm:$0xff] }
 0x5eb   :  { %v2239_v4 = vmul.f32 0.5, %v2238_v24  ;;  %v5806_v24 = vld [vmem:[#allocation46_spill] sm:$0xff] }
 0x5ec   :  { %3172 = vtanh.f32 %v4913_v26 }
 0x5f2   :  { %v3173_v40 = vpop.eup %3172 }
 0x5f3   :  { %v2244_v19 = vmul.f32 %v3173_v40, %v2239_v4  ;;  %v5807_v4 = vld [vmem:[#allocation44_spill] sm:$0xff] }
 0x5f4   :  { %v5808_v40 = vld [vmem:[#allocation52_spill] sm:$0xff] }
 0x5f5   :  { %2265 = vmatmul.f32.vlgmr.msrb.gmra.mxu0 %v2244_v19  ;;  %2285 = vmatmul.f32.vlgmr.msra.gmra.mxu1 %v2244_v19 }
 0x5f6   :  { %2305 = vmatmul.f32.vlgmr.msra.gmra.mxu2 %v2244_v19  ;;  %2325 = vmatmul.f32.vlgmr.msra.gmra.mxu3 %v2244_v19  ;;  %v5809_v19 = vld [vmem:[#allocation50_spill] sm:$0xff] }
 0x5f7   :  { %2455 = vmatpush.msrb.mxu0 %v4490_v16  ;;  %2475 = vmatpush.msra.mxu1 %v4492_v43 }
 0x5f8   :  { %2495 = vmatpush.msra.mxu2 %v4488_v15  ;;  %2515 = vmatpush.msra.mxu3 %v4503_v50 }
 0x5f9   :  { %2456 = vmatpush.msrb.mxu0 %v4498_v47  ;;  %2476 = vmatpush.msra.mxu1 %v4500_v49 }
 0x5fa   :  { %2496 = vmatpush.msra.mxu2 %v4496_v46  ;;  %2516 = vmatpush.msra.mxu3 %v4513_v54 }
 0x5fb   :  { %2457 = vmatpush.msrb.mxu0 %v4507_v52  ;;  %2477 = vmatpush.msra.mxu1 %v4511_v53 }
 0x5fc   :  { %2497 = vmatpush.msra.mxu2 %v4505_v13  ;;  %2517 = vmatpush.msra.mxu3 %v4529_v58 }
 0x5fd   :  { %2458 = vmatpush.msrb.mxu0 %v4523_v56  ;;  %2478 = vmatpush.msra.mxu1 %v4527_v57 }
 0x5fe   :  { %2498 = vmatpush.msra.mxu2 %v4521_v55  ;;  %2518 = vmatpush.msra.mxu3 %v4541_v62 }
 0x5ff   :  { %2459 = vmatpush.msrb.mxu0 %v4535_v60  ;;  %2479 = vmatpush.msra.mxu1 %v4539_v61 }
 0x600   :  { %2499 = vmatpush.msra.mxu2 %v4533_v28  ;;  %2519 = vmatpush.msra.mxu3 %v4553_v29 }
 0x601   :  { %2460 = vmatpush.msrb.mxu0 %v4547_v63  ;;  %2480 = vmatpush.msra.mxu1 %v4551_v10 }
 0x602   :  { %2500 = vmatpush.msra.mxu2 %v4545_v22  ;;  %2520 = vmatpush.msra.mxu3 %v4580_v1 }
 0x603   :  { %2461 = vmatpush.msrb.mxu0 %v4576_v0  ;;  %2481 = vmatpush.msra.mxu1 %v4578_v48 }
 0x604   :  { %2501 = vmatpush.msra.mxu2 %v4561_v17  ;;  %2521 = vmatpush.msra.mxu3 %v4594_v7 }
 0x605   :  { %2462 = vmatpush.msrb.mxu0 %v4586_v42  ;;  %2482 = vmatpush.msra.mxu1 %v4588_v3 }
 0x606   :  { %2502 = vmatpush.msra.mxu2 %v4584_v2  ;;  %2522 = vmatpush.msra.mxu3 %v4597_v18 }
 0x607   :  { %2463 = vmatpush.msrb.mxu0 %v4602_v44  ;;  %2483 = vmatpush.msra.mxu1 %v4604_v27 }
 0x608   :  { %2503 = vmatpush.msra.mxu2 %v4600_v9  ;;  %2523 = vmatpush.msra.mxu3 %v4608_v31 }
 0x609   :  { %2464 = vmatpush.msrb.mxu0 %v4613_v30  ;;  %2484 = vmatpush.msra.mxu1 %v4615_v23 }
 0x60a   :  { %2504 = vmatpush.msra.mxu2 %v4611_v8  ;;  %2524 = vmatpush.msra.mxu3 %v4625_v34 }
 0x60b   :  { %2465 = vmatpush.msrb.mxu0 %v4630_v37  ;;  %2485 = vmatpush.msra.mxu1 %v4632_v20 }
 0x60c   :  { %2505 = vmatpush.msra.mxu2 %v4628_v36  ;;  %2525 = vmatpush.msra.mxu3 %v5792_v38 }
 0x60d   :  { %2466 = vmatpush.msrb.mxu0 %v5793_v25  ;;  %2486 = vmatpush.msra.mxu1 %v5794_v32  ;;  %v5817_v32 = vld [vmem:[#allocation58_spill] sm:$0xff]  ;;  %v5818_v25 = vld [vmem:[#allocation60_spill] sm:$0xff] }
 0x60e   :  { %2506 = vmatpush.msra.mxu2 %v5795_v35  ;;  %2526 = vmatpush.msra.mxu3 %v5796_v59  ;;  %v5815_v59 = vld [vmem:[#allocation67_spill] sm:$0xff]  ;;  %v5816_v35 = vld [vmem:[#allocation68_spill] sm:$0xff] }
 0x60f   :  { %2467 = vmatpush.msrb.mxu0 %v5797_v39  ;;  %2487 = vmatpush.msra.mxu1 %v5798_v6  ;;  %v5813_v6 = vld [vmem:[#allocation56_spill] sm:$0xff]  ;;  %v5814_v39 = vld [vmem:[#allocation57_spill] sm:$0xff] }
 0x610   :  { %2507 = vmatpush.msra.mxu2 %v5799_v33  ;;  %2527 = vmatpush.msra.mxu3 %v5800_v14  ;;  %v5810_v33 = vld [vmem:[#allocation53_spill] sm:$0xff] }
 0x611   :  { %2468 = vmatpush.msrb.mxu0 %v5801_v5  ;;  %2488 = vmatpush.msra.mxu1 %v5802_v12  ;;  %v5811_v14 = vld [vmem:[#allocation49_spill] sm:$0xff]  ;;  %v5812_v5 = vld [vmem:[#allocation54_spill] sm:$0xff] }
 0x612   :  { %2508 = vmatpush.msra.mxu2 %v5803_v51  ;;  %2528 = vmatpush.msra.mxu3 %v5804_v45 }
 0x613   :  { %2469 = vmatpush.msrb.mxu0 %v5805_v11  ;;  %2489 = vmatpush.msra.mxu1 %v5806_v24 }
 0x614   :  { %2509 = vmatpush.msra.mxu2 %v5807_v4  ;;  %2529 = vmatpush.msra.mxu3 %v5808_v40 }
 0x615   :  { %2470 = vmatpush.msrb.mxu0 %v5809_v19  ;;  %2490 = vmatpush.msra.mxu1 %v5810_v33 }
 0x616   :  { %2510 = vmatpush.msra.mxu2 %v5811_v14  ;;  %2530 = vmatpush.msra.mxu3 %v5812_v5 }
 0x672   :  { %v2266_v12 = vpop.f32.mrf.mxu0  ;;  %v2286_v51 = vpop.f32.mrf.mxu1 }
 0x673   :  { %v2267_v45 = vadd.f32 %v2266_v12, %v5813_v6  ;;  %v2287_v11 = vadd.f32 %v2286_v51, %v5814_v39 }
 0x675   :  { %v2329_v24 = vadd.f32 %v2267_v45, %v5815_v59  ;;  %v2330_v4 = vadd.f32 %v2287_v11, %v5816_v35 }
 0x677   :  { %3174 = vtanh.f32 %v2329_v24 }
 0x678   :  { %3176 = vtanh.f32 %v2330_v4 }
 0x679   :  { %v2306_v40 = vpop.f32.mrf.mxu2  ;;  %v2326_v19 = vpop.f32.mrf.mxu3 }
 0x67a   :  { %v2307_v33 = vadd.f32 %v2306_v40, %v5817_v32  ;;  %v2327_v14 = vadd.f32 %v2326_v19, %v5818_v25 }
 0x67c   :  { %v2331_v5 = vadd.f32 %v2307_v33, %v4907_v41  ;;  %v2332_v36 = vadd.f32 %v2327_v14, %v4909_v21 }
 0x67d   :  { %v3175_v38 = vpop.eup %3174 }
 0x67e   :  { %v3177_v6 = vpop.eup %3176  ;;  %3178 = vtanh.f32 %v2331_v5  ;;  %v2337_v39 = vadd.f32 1.0, %v3175_v38 }
 0x67f   :  { %v2339_v12 = vadd.f32 1.0, %v3177_v6  ;;  %3180 = vtanh.f32 %v2332_v36 }
 0x680   :  { %v2338_v45 = vmul.f32 0.5, %v2337_v39 }
 0x681   :  { %v2340_v51 = vmul.f32 0.5, %v2339_v12 }
 0x683   :  { %v2343_v24 = vmul.f32 %v2340_v51, %v4913_v26 }
 0x684   :  { %v3179_v11 = vpop.eup %3178 }
 0x685   :  { %v2344_v4 = vmul.f32 %v3179_v11, %v2338_v45  ;;  %v3181_v35 = vpop.eup %3180 }
 0x686   :  { %v2341_v25 = vadd.f32 1.0, %v3181_v35 }
 0x687   :  { %v4989_v32 = vadd.f32 %v2344_v4, %v2343_v24  ;;  %v5068_v24 = vld [vmem:[#allocation9 + $0x1e0] sm:$0xff]  ;;  %v5071_v4 = vld [vmem:[#allocation9 + $0x1e8] sm:$0xff] }
 0x688   :  { %v2342_v33 = vmul.f32 0.5, %v2341_v25  ;;  %v5077_v25 = vld [vmem:[#allocation9 + $0x1f8] sm:$0xff] }
 0x689   :  { %3182 = vtanh.f32 %v4989_v32 }
 0x68f   :  { %v3183_v40 = vpop.eup %3182 }
 0x690   :  { %v2347_v14 = vmul.f32 %v3183_v40, %v2342_v33  ;;  %v5080_v33 = vld [vmem:[#allocation9 + $0x1c0] sm:$0xff]  ;;  %v5083_v40 = vld [vmem:[#allocation9 + $0x1c8] sm:$0xff] }
 0x692   :  { %2368 = vmatmul.f32.vlgmr.msra.gmra.mxu0 %v2347_v14  ;;  %2388 = vmatmul.f32.vlgmr.msrb.gmra.mxu1 %v2347_v14 }
 0x693   :  { %2408 = vmatmul.f32.vlgmr.msrb.gmra.mxu2 %v2347_v14  ;;  %2428 = vmatmul.f32.vlgmr.msrb.gmra.mxu3 %v2347_v14  ;;  %v5086_v14 = vld [vmem:[#allocation9 + $0x1d0] sm:$0xff] }
 0x694   :  { %2558 = vmatpush.msra.mxu0 %v4490_v16  ;;  %2578 = vmatpush.msrb.mxu1 %v4492_v43  ;;  %v5820_v16 = vld [vmem:[#allocation51_spill] sm:$0xff] }
 0x695   :  { %2598 = vmatpush.msrb.mxu2 %v4488_v15  ;;  %2618 = vmatpush.msrb.mxu3 %v4503_v50  ;;  %v5819_v15 = vld [vmem:[#allocation39_spill] sm:$0xff] }
 0x696   :  { %2559 = vmatpush.msra.mxu0 %v4498_v47  ;;  %2579 = vmatpush.msrb.mxu1 %v4500_v49  ;;  %v5821_v43 = vld [vmem:[#allocation43_spill] sm:$0xff]  ;;  %v5823_v47 = vld [vmem:[#allocation40_spill] sm:$0xff] }
 0x697   :  { %2599 = vmatpush.msrb.mxu2 %v4496_v46  ;;  %2619 = vmatpush.msrb.mxu3 %v4513_v54  ;;  %v5822_v46 = vld [vmem:[#allocation47_spill] sm:$0xff]  ;;  %v5824_v49 = vld [vmem:[#allocation20_spill] sm:$0xff]  ;;  %v5829_v54 = vld [vmem:[#allocation22_spill] sm:$0xff] }
 0x698   :  { %2560 = vmatpush.msra.mxu0 %v4507_v52  ;;  %2580 = vmatpush.msrb.mxu1 %v4511_v53  ;;  %v5825_v50 = vld [vmem:[#allocation59_spill] sm:$0xff]  ;;  %v5828_v53 = vld [vmem:[#allocation42_spill] sm:$0xff] }
 0x699   :  { %2600 = vmatpush.msrb.mxu2 %v4505_v13  ;;  %2620 = vmatpush.msrb.mxu3 %v4529_v58  ;;  %v5826_v13 = vld [vmem:[#allocation24_spill] sm:$0xff]  ;;  %v5827_v52 = vld [vmem:[#allocation55_spill] sm:$0xff]  ;;  %v5833_v58 = vld [vmem:[#allocation45_spill] sm:$0xff] }
 0x69a   :  { %2561 = vmatpush.msra.mxu0 %v4523_v56  ;;  %2581 = vmatpush.msrb.mxu1 %v4527_v57  ;;  %v5831_v56 = vld [vmem:[#allocation21_spill] sm:$0xff]  ;;  %v5832_v57 = vld [vmem:[#allocation48_spill] sm:$0xff] }
 0x69b   :  { %2601 = vmatpush.msrb.mxu2 %v4521_v55  ;;  %2621 = vmatpush.msrb.mxu3 %v4541_v62  ;;  %v5830_v55 = vld [vmem:[#allocation41_spill] sm:$0xff]  ;;  %v5837_v62 = vld [vmem:[#allocation50_spill] sm:$0xff] }
 0x69c   :  { %2562 = vmatpush.msra.mxu0 %v4535_v60  ;;  %2582 = vmatpush.msrb.mxu1 %v4539_v61  ;;  %v5835_v60 = vld [vmem:[#allocation44_spill] sm:$0xff] }
 0x69d   :  { %2602 = vmatpush.msrb.mxu2 %v4533_v28  ;;  %2622 = vmatpush.msrb.mxu3 %v4553_v29  ;;  %v5834_v28 = vld [vmem:[#allocation46_spill] sm:$0xff]  ;;  %v5836_v61 = vld [vmem:[#allocation52_spill] sm:$0xff] }
 0x69e   :  { %2563 = vmatpush.msra.mxu0 %v4547_v63  ;;  %2583 = vmatpush.msrb.mxu1 %v4551_v10  ;;  %v5839_v63 = vld [vmem:[#allocation49_spill] sm:$0xff]  ;;  %v5840_v10 = vld [vmem:[#allocation54_spill] sm:$0xff] }
 0x69f   :  { %2603 = vmatpush.msrb.mxu2 %v4545_v22  ;;  %2623 = vmatpush.msrb.mxu3 %v4580_v1  ;;  %v5838_v22 = vld [vmem:[#allocation53_spill] sm:$0xff]  ;;  %v5842_v1 = vld [vmem:[#allocation62_spill] sm:$0xff] }
 0x6a0   :  { %2564 = vmatpush.msra.mxu0 %v4576_v0  ;;  %2584 = vmatpush.msrb.mxu1 %v4578_v48  ;;  %v5841_v0 = vld [vmem:[#allocation61_spill] sm:$0xff] }
 0x6a1   :  { %2604 = vmatpush.msrb.mxu2 %v4561_v17  ;;  %2624 = vmatpush.msrb.mxu3 %v4594_v7 }
 0x6a2   :  { %2565 = vmatpush.msra.mxu0 %v4586_v42  ;;  %2585 = vmatpush.msrb.mxu1 %v4588_v3  ;;  %v5843_v3 = vld [vmem:[#allocation68_spill] sm:$0xff] }
 0x6a3   :  { %2605 = vmatpush.msrb.mxu2 %v4584_v2  ;;  %2625 = vmatpush.msrb.mxu3 %v4597_v18 }
 0x6a4   :  { %2566 = vmatpush.msra.mxu0 %v4602_v44  ;;  %2586 = vmatpush.msrb.mxu1 %v4604_v27  ;;  %v5844_v44 = vld [vmem:[#allocation28_spill] sm:$0xff] }
 0x6a5   :  { %2606 = vmatpush.msrb.mxu2 %v4600_v9  ;;  %2626 = vmatpush.msrb.mxu3 %v4608_v31  ;;  %v5845_v31 = vld [vmem:[#allocation23_spill] sm:$0xff] }
 0x6a6   :  { %2567 = vmatpush.msra.mxu0 %v4613_v30  ;;  %2587 = vmatpush.msrb.mxu1 %v4615_v23 }
 0x6a7   :  { %2607 = vmatpush.msrb.mxu2 %v4611_v8  ;;  %2627 = vmatpush.msrb.mxu3 %v4625_v34 }
 0x6a8   :  { %2568 = vmatpush.msra.mxu0 %v4630_v37  ;;  %2588 = vmatpush.msrb.mxu1 %v4632_v20 }
 0x6a9   :  { %2608 = vmatpush.msrb.mxu2 %v5819_v15  ;;  %2628 = vmatpush.msrb.mxu3 %v5820_v16  ;;  %v5089_v15 = vld [vmem:[#allocation9 + $0x1d8] sm:$0xff]  ;;  %v5092_v16 = vld [vmem:[#allocation9 + $0x1a0] sm:$0xff] }
 0x6aa   :  { %2569 = vmatpush.msra.mxu0 %v5821_v43  ;;  %2589 = vmatpush.msrb.mxu1 %v5822_v46  ;;  %v5095_v43 = vld [vmem:[#allocation9 + $0x1a8] sm:$0xff]  ;;  %v5098_v46 = vld [vmem:[#allocation9 + $0x1b0] sm:$0xff] }
 0x6ab   :  { %2609 = vmatpush.msrb.mxu2 %v5823_v47  ;;  %2629 = vmatpush.msrb.mxu3 %v5824_v49  ;;  %v5101_v47 = vld [vmem:[#allocation9 + $0x1b8] sm:$0xff]  ;;  %v5104_v49 = vld [vmem:[#allocation9 + $0x180] sm:$0xff] }
 0x6ac   :  { %2570 = vmatpush.msra.mxu0 %v5825_v50  ;;  %2590 = vmatpush.msrb.mxu1 %v5826_v13  ;;  %v5107_v50 = vld [vmem:[#allocation9 + $0x188] sm:$0xff]  ;;  %v5110_v13 = vld [vmem:[#allocation9 + $0x190] sm:$0xff] }
 0x6ad   :  { %2610 = vmatpush.msrb.mxu2 %v5827_v52  ;;  %2630 = vmatpush.msrb.mxu3 %v5828_v53  ;;  %v5113_v52 = vld [vmem:[#allocation9 + $0x198] sm:$0xff]  ;;  %v5116_v53 = vld [vmem:[#allocation9 + $0x160] sm:$0xff] }
 0x6ae   :  { %2571 = vmatpush.msra.mxu0 %v5829_v54  ;;  %2591 = vmatpush.msrb.mxu1 %v5830_v55  ;;  %v5119_v54 = vld [vmem:[#allocation9 + $0x168] sm:$0xff]  ;;  %v5122_v55 = vld [vmem:[#allocation9 + $0x170] sm:$0xff] }
 0x6af   :  { %2611 = vmatpush.msrb.mxu2 %v5831_v56  ;;  %2631 = vmatpush.msrb.mxu3 %v5832_v57  ;;  %v5125_v56 = vld [vmem:[#allocation9 + $0x178] sm:$0xff] }
 0x6b0   :  { %2572 = vmatpush.msra.mxu0 %v5833_v58  ;;  %2592 = vmatpush.msrb.mxu1 %v5834_v28  ;;  %v5128_v58 = vld [vmem:[#allocation9 + $0x140] sm:$0xff]  ;;  %v5131_v28 = vld [vmem:[#allocation9 + $0x148] sm:$0xff] }
 0x6b1   :  { %2612 = vmatpush.msrb.mxu2 %v5835_v60  ;;  %2632 = vmatpush.msrb.mxu3 %v5836_v61  ;;  %v5134_v60 = vld [vmem:[#allocation9 + $0x150] sm:$0xff] }
 0x6b2   :  { %2573 = vmatpush.msra.mxu0 %v5837_v62  ;;  %2593 = vmatpush.msrb.mxu1 %v5838_v22 }
 0x6b3   :  { %2613 = vmatpush.msrb.mxu2 %v5839_v63  ;;  %2633 = vmatpush.msrb.mxu3 %v5840_v10  ;;  %v5137_v63 = vld [vmem:[#allocation9 + $0x158] sm:$0xff] }
 0x70f   :  { %v2369_v29 = vpop.f32.mrf.mxu0  ;;  %v2389_v17 = vpop.f32.mrf.mxu1 }
 0x710   :  { %v2370_v48 = vadd.f32 %v2369_v29, %v5841_v0  ;;  %v2390_v2 = vadd.f32 %v2389_v17, %v5842_v1  ;;  %v5140_v29 = vld [vmem:[#allocation9 + $0x120] sm:$0xff]  ;;  %v5143_v17 = vld [vmem:[#allocation9 + $0x128] sm:$0xff]  ;;  %v5146_v0 = vld [vmem:[#allocation9 + $0x130] sm:$0xff] }
 0x711   :  { %v5152_v1 = vld [vmem:[#allocation9 + $0x100] sm:$0xff] }
 0x712   :  { %v2432_v42 = vadd.f32 %v2370_v48, %v5815_v59  ;;  %v2433_v7 = vadd.f32 %v2390_v2, %v5843_v3  ;;  %v5149_v48 = vld [vmem:[#allocation9 + $0x138] sm:$0xff]  ;;  %v5155_v2 = vld [vmem:[#allocation9 + $0x108] sm:$0xff] }
 0x714   :  { %3184 = vtanh.f32 %v2432_v42  ;;  %v5158_v42 = vld [vmem:[#allocation9 + $0x110] sm:$0xff] }
 0x715   :  { %3186 = vtanh.f32 %v2433_v7  ;;  %v5161_v7 = vld [vmem:[#allocation9 + $0x118] sm:$0xff] }
 0x716   :  { %v2409_v18 = vpop.f32.mrf.mxu2  ;;  %v2429_v9 = vpop.f32.mrf.mxu3 }
 0x717   :  { %v2410_v27 = vadd.f32 %v2409_v18, %v5844_v44  ;;  %v2430_v8 = vadd.f32 %v2429_v9, %v5845_v31  ;;  %v5164_v18 = vld [vmem:[#allocation9 + $0xe0] sm:$0xff]  ;;  %v5167_v9 = vld [vmem:[#allocation9 + $0xe8] sm:$0xff]  ;;  %v5170_v44 = vld [vmem:[#allocation9 + $0xf0] sm:$0xff] }
 0x718   :  { %v5176_v31 = vld [vmem:[#allocation9 + $0xc0] sm:$0xff] }
 0x719   :  { %v2434_v30 = vadd.f32 %v2410_v27, %v4907_v41  ;;  %v2435_v34 = vadd.f32 %v2430_v8, %v4909_v21  ;;  %v5173_v27 = vld [vmem:[#allocation9 + $0xf8] sm:$0xff]  ;;  %v5179_v8 = vld [vmem:[#allocation9 + $0xc8] sm:$0xff] }
 0x71a   :  { %v3185_v23 = vpop.eup %3184 }
 0x71b   :  { %v3187_v36 = vpop.eup %3186  ;;  %3188 = vtanh.f32 %v2434_v30  ;;  %v2440_v37 = vadd.f32 1.0, %v3185_v23  ;;  %v5182_v30 = vld [vmem:[#allocation9 + $0xd0] sm:$0xff]  ;;  %v5185_v23 = vld [vmem:[#allocation9 + $0xd8] sm:$0xff] }
 0x71c   :  { %v2442_v20 = vadd.f32 1.0, %v3187_v36  ;;  %3190 = vtanh.f32 %v2435_v34  ;;  %v5188_v34 = vld [vmem:[#allocation9 + $0xa0] sm:$0xff]  ;;  %v5191_v36 = vld [vmem:[#allocation9 + $0xa8] sm:$0xff] }
 0x71d   :  { %v2441_v38 = vmul.f32 0.5, %v2440_v37  ;;  %v5194_v37 = vld [vmem:[#allocation9 + $0xb0] sm:$0xff] }
 0x71e   :  { %v2443_v26 = vmul.f32 0.5, %v2442_v20  ;;  %5846 = vst [vmem:[#allocation56_spill] sm:$0xff] %v5194_v37  ;;  %v5197_v20 = vld [vmem:[#allocation9 + $0xb8] sm:$0xff] }
 0x71f   :  { %5847 = vst [vmem:[#allocation57_spill] sm:$0xff] %v5197_v20 }
 0x720   :  { %v2446_v5 = vmul.f32 %v2443_v26, %v4989_v32  ;;  %v5074_v32 = vld [vmem:[#allocation9 + $0x1f0] sm:$0xff]  ;;  %v5200_v26 = vld [vmem:[#allocation9 + $0x80] sm:$0xff] }
 0x721   :  { %v3189_v35 = vpop.eup %3188  ;;  %5848 = vst [vmem:[#allocation67_spill] sm:$0xff] %v5200_v26 }
 0x722   :  { %v2447_v19 = vmul.f32 %v3189_v35, %v2441_v38  ;;  %v3191_v6 = vpop.eup %3190  ;;  %v5203_v38 = vld [vmem:[#allocation9 + $0x88] sm:$0xff]  ;;  %v5206_v35 = vld [vmem:[#allocation9 + $0x90] sm:$0xff] }
 0x723   :  { %v2444_v12 = vadd.f32 1.0, %v3191_v6  ;;  %5849 = vst [vmem:[#allocation58_spill] sm:$0xff] %v5203_v38  ;;  %v5215_v6 = vld [vmem:[#allocation9 + $0x68] sm:$0xff] }
 0x724   :  { %v5065_v39 = vadd.f32 %v2447_v19, %v2446_v5  ;;  %5850 = vst [vmem:[#allocation60_spill] sm:$0xff] %v5206_v35  ;;  %v5209_v5 = vld [vmem:[#allocation9 + $0x98] sm:$0xff]  ;;  %v5212_v19 = vld [vmem:[#allocation9 + $0x60] sm:$0xff] }
 0x725   :  { %v2445_v51 = vmul.f32 0.5, %v2444_v12  ;;  %5851 = vst [vmem:[#allocation39_spill] sm:$0xff] %v5209_v5  ;;  %v5218_v12 = vld [vmem:[#allocation9 + $0x70] sm:$0xff] }
 0x726   :  { %3192 = vtanh.f32 %v5065_v39  ;;  %5852 = vst [vmem:[#allocation51_spill] sm:$0xff] %v5212_v19 }
 0x727   :  { %5853 = vst [vmem:[#allocation43_spill] sm:$0xff] %v5215_v6 }
 0x728   :  { %5854 = vst [vmem:[#allocation47_spill] sm:$0xff] %v5218_v12 }
 0x72c   :  { %v3193_v45 = vpop.eup %3192 }
 0x72d   :  { %v2450_v11 = vmul.f32 %v3193_v45, %v2445_v51  ;;  %v5221_v51 = vld [vmem:[#allocation9 + $0x78] sm:$0xff]  ;;  %v5224_v45 = vld [vmem:[#allocation9 + $0x40] sm:$0xff] }
 0x72e   :  { %5855 = vst [vmem:[#allocation40_spill] sm:$0xff] %v5221_v51 }
 0x72f   :  { %2471 = vmatmul.f32.vlgmr.msrb.gmra.mxu0 %v2450_v11  ;;  %2491 = vmatmul.f32.vlgmr.msra.gmra.mxu1 %v2450_v11  ;;  %5856 = vst [vmem:[#allocation20_spill] sm:$0xff] %v5224_v45 }
 0x730   :  { %2511 = vmatmul.f32.vlgmr.msra.gmra.mxu2 %v2450_v11  ;;  %2531 = vmatmul.f32.vlgmr.msra.gmra.mxu3 %v2450_v11  ;;  %v5227_v11 = vld [vmem:[#allocation9 + $0x48] sm:$0xff] }
 0x731   :  { %2661 = vmatpush.msrb.mxu0 %v5068_v24  ;;  %2681 = vmatpush.msra.mxu1 %v5071_v4  ;;  %5857 = vst [vmem:[#allocation59_spill] sm:$0xff] %v5227_v11 }
 0x732   :  { %2701 = vmatpush.msra.mxu2 %v5074_v32  ;;  %2721 = vmatpush.msra.mxu3 %v5077_v25 }
 0x733   :  { %2662 = vmatpush.msrb.mxu0 %v5080_v33  ;;  %2682 = vmatpush.msra.mxu1 %v5083_v40 }
 0x734   :  { %2702 = vmatpush.msra.mxu2 %v5086_v14  ;;  %2722 = vmatpush.msra.mxu3 %v5089_v15 }
 0x735   :  { %2663 = vmatpush.msrb.mxu0 %v5092_v16  ;;  %2683 = vmatpush.msra.mxu1 %v5095_v43 }
 0x736   :  { %2703 = vmatpush.msra.mxu2 %v5098_v46  ;;  %2723 = vmatpush.msra.mxu3 %v5101_v47 }
 0x737   :  { %2664 = vmatpush.msrb.mxu0 %v5104_v49  ;;  %2684 = vmatpush.msra.mxu1 %v5107_v50 }
 0x738   :  { %2704 = vmatpush.msra.mxu2 %v5110_v13  ;;  %2724 = vmatpush.msra.mxu3 %v5113_v52 }
 0x739   :  { %2665 = vmatpush.msrb.mxu0 %v5116_v53  ;;  %2685 = vmatpush.msra.mxu1 %v5119_v54 }
 0x73a   :  { %2705 = vmatpush.msra.mxu2 %v5122_v55  ;;  %2725 = vmatpush.msra.mxu3 %v5125_v56 }
 0x73b   :  { %2666 = vmatpush.msrb.mxu0 %v5128_v58  ;;  %2686 = vmatpush.msra.mxu1 %v5131_v28 }
 0x73c   :  { %2706 = vmatpush.msra.mxu2 %v5134_v60  ;;  %2726 = vmatpush.msra.mxu3 %v5137_v63 }
 0x73d   :  { %2667 = vmatpush.msrb.mxu0 %v5140_v29  ;;  %2687 = vmatpush.msra.mxu1 %v5143_v17 }
 0x73e   :  { %2707 = vmatpush.msra.mxu2 %v5146_v0  ;;  %2727 = vmatpush.msra.mxu3 %v5149_v48 }
 0x73f   :  { %2668 = vmatpush.msrb.mxu0 %v5152_v1  ;;  %2688 = vmatpush.msra.mxu1 %v5155_v2 }
 0x740   :  { %2708 = vmatpush.msra.mxu2 %v5158_v42  ;;  %2728 = vmatpush.msra.mxu3 %v5161_v7 }
 0x741   :  { %2669 = vmatpush.msrb.mxu0 %v5164_v18  ;;  %2689 = vmatpush.msra.mxu1 %v5167_v9 }
 0x742   :  { %2709 = vmatpush.msra.mxu2 %v5170_v44  ;;  %2729 = vmatpush.msra.mxu3 %v5173_v27 }
 0x743   :  { %2670 = vmatpush.msrb.mxu0 %v5176_v31  ;;  %2690 = vmatpush.msra.mxu1 %v5179_v8 }
 0x744   :  { %2710 = vmatpush.msra.mxu2 %v5182_v30  ;;  %2730 = vmatpush.msra.mxu3 %v5185_v23 }
 0x745   :  { %2671 = vmatpush.msrb.mxu0 %v5188_v34  ;;  %2691 = vmatpush.msra.mxu1 %v5191_v36 }
 0x746   :  { %2711 = vmatpush.msra.mxu2 %v5194_v37  ;;  %2731 = vmatpush.msra.mxu3 %v5197_v20 }
 0x747   :  { %2672 = vmatpush.msrb.mxu0 %v5200_v26  ;;  %2692 = vmatpush.msra.mxu1 %v5203_v38  ;;  %v5866_v26 = vld [vmem:[#allocation27_spill] sm:$0xff] }
 0x748   :  { %2712 = vmatpush.msra.mxu2 %v5206_v35  ;;  %2732 = vmatpush.msra.mxu3 %v5209_v5  ;;  %v5865_v35 = vld [vmem:[#allocation17_spill] sm:$0xff] }
 0x749   :  { %2673 = vmatpush.msrb.mxu0 %v5212_v19  ;;  %2693 = vmatpush.msra.mxu1 %v5215_v6  ;;  %v5230_v19 = vld [vmem:[#allocation9 + $0x50] sm:$0xff]  ;;  %v5234_v6 = vld [vmem:[#allocation9 + $0x20] sm:$0xff] }
 0x74a   :  { %2713 = vmatpush.msra.mxu2 %v5218_v12  ;;  %2733 = vmatpush.msra.mxu3 %v5221_v51  ;;  %5858 = vst [vmem:[#allocation24_spill] sm:$0xff] %v5230_v19  ;;  %v5237_v12 = vld [vmem:[#allocation9 + $0x28] sm:$0xff]  ;;  %v5240_v51 = vld [vmem:[#allocation9 + $0x30] sm:$0xff] }
 0x74b   :  { %2674 = vmatpush.msrb.mxu0 %v5224_v45  ;;  %2694 = vmatpush.msra.mxu1 %v5227_v11  ;;  %5859 = vst [vmem:[#allocation55_spill] sm:$0xff] %v5234_v6  ;;  %v5863_v11 = vld [vmem:[#allocation25_spill] sm:$0xff]  ;;  %v5864_v45 = vld [vmem:[#allocation26_spill] sm:$0xff] }
 0x74c   :  { %2714 = vmatpush.msra.mxu2 %v5230_v19  ;;  %2734 = vmatpush.msra.mxu3 %v5832_v57  ;;  %5860 = vst [vmem:[#allocation42_spill] sm:$0xff] %v5237_v12  ;;  %v5246_v19 = vld [vmem:[#allocation9 + $0x10] sm:$0xff] }
 0x74d   :  { %2675 = vmatpush.msrb.mxu0 %v5234_v6  ;;  %2695 = vmatpush.msra.mxu1 %v5237_v12  ;;  %5861 = vst [vmem:[#allocation22_spill] sm:$0xff] %v5240_v51 }
 0x74e   :  { %2715 = vmatpush.msra.mxu2 %v5240_v51  ;;  %2735 = vmatpush.msra.mxu3 %v5836_v61  ;;  %5862 = vst [vmem:[#allocation41_spill] sm:$0xff] %v5246_v19 }
 0x74f   :  { %2676 = vmatpush.msrb.mxu0 %v5837_v62  ;;  %2696 = vmatpush.msra.mxu1 %v5838_v22 }
 0x750   :  { %2716 = vmatpush.msra.mxu2 %v5246_v19  ;;  %2736 = vmatpush.msra.mxu3 %v5840_v10 }
 0x7ac   :  { %v2472_v57 = vpop.f32.mrf.mxu0  ;;  %v2492_v6 = vpop.f32.mrf.mxu1 }
 0x7ad   :  { %v2473_v12 = vadd.f32 %v2472_v57, %v5863_v11  ;;  %v2493_v5 = vadd.f32 %v2492_v6, %v5864_v45 }
 0x7af   :  { %v2535_v51 = vadd.f32 %v2473_v12, %v5815_v59  ;;  %v2536_v61 = vadd.f32 %v2493_v5, %v5843_v3 }
 0x7b1   :  { %3194 = vtanh.f32 %v2535_v51 }
 0x7b2   :  { %3196 = vtanh.f32 %v2536_v61 }
 0x7b3   :  { %v2512_v62 = vpop.f32.mrf.mxu2  ;;  %v2532_v22 = vpop.f32.mrf.mxu3 }
 0x7b4   :  { %v2513_v38 = vadd.f32 %v2512_v62, %v5865_v35  ;;  %v2533_v19 = vadd.f32 %v2532_v22, %v5866_v26  ;;  %v5871_v22 = vld [vmem:[#allocation60_spill] sm:$0xff] }
 0x7b6   :  { %v2537_v10 = vadd.f32 %v2513_v38, %v4907_v41  ;;  %v2538_v37 = vadd.f32 %v2533_v19, %v4909_v21 }
 0x7b7   :  { %v3195_v20 = vpop.eup %3194 }
 0x7b8   :  { %v3197_v11 = vpop.eup %3196  ;;  %3198 = vtanh.f32 %v2537_v10  ;;  %v2543_v6 = vadd.f32 1.0, %v3195_v20  ;;  %v5870_v20 = vld [vmem:[#allocation58_spill] sm:$0xff]  ;;  %v5872_v10 = vld [vmem:[#allocation39_spill] sm:$0xff] }
 0x7b9   :  { %v2545_v45 = vadd.f32 1.0, %v3197_v11  ;;  %3200 = vtanh.f32 %v2538_v37  ;;  %v5869_v37 = vld [vmem:[#allocation67_spill] sm:$0xff] }
 0x7ba   :  { %v2544_v5 = vmul.f32 0.5, %v2543_v6  ;;  %v5873_v11 = vld [vmem:[#allocation51_spill] sm:$0xff] }
 0x7bb   :  { %v2546_v12 = vmul.f32 0.5, %v2545_v45  ;;  %v5874_v6 = vld [vmem:[#allocation43_spill] sm:$0xff] }
 0x7bc   :  { %v5875_v45 = vld [vmem:[#allocation47_spill] sm:$0xff] }
 0x7bd   :  { %v2549_v57 = vmul.f32 %v2546_v12, %v5065_v39  ;;  %v5868_v39 = vld [vmem:[#allocation57_spill] sm:$0xff]  ;;  %v5876_v12 = vld [vmem:[#allocation40_spill] sm:$0xff] }
 0x7be   :  { %v3199_v51 = vpop.eup %3198 }
 0x7bf   :  { %v2550_v61 = vmul.f32 %v3199_v51, %v2544_v5  ;;  %v3201_v3 = vpop.eup %3200  ;;  %v5877_v5 = vld [vmem:[#allocation20_spill] sm:$0xff]  ;;  %v5878_v51 = vld [vmem:[#allocation59_spill] sm:$0xff] }
 0x7c0   :  { %v2547_v26 = vadd.f32 1.0, %v3201_v3  ;;  %v5867_v3 = vld [vmem:[#allocation56_spill] sm:$0xff] }
 0x7c1   :  { %v5259_v35 = vadd.f32 %v2550_v61, %v2549_v57  ;;  %v5879_v57 = vld [vmem:[#allocation24_spill] sm:$0xff]  ;;  %v5317_v61 = vld [vmem:[#allocation9 + $0x58] sm:$0xff] }
 0x7c2   :  { %v2548_v38 = vmul.f32 0.5, %v2547_v26  ;;  %5880 = vst [vmem:[#allocation21_spill] sm:$0xff] %v5317_v61  ;;  %v5881_v26 = vld [vmem:[#allocation55_spill] sm:$0xff] }
 0x7c3   :  { %3202 = vtanh.f32 %v5259_v35 }
 0x7c9   :  { %v3203_v62 = vpop.eup %3202 }
 0x7ca   :  { %v2553_v19 = vmul.f32 %v3203_v62, %v2548_v38  ;;  %v5882_v38 = vld [vmem:[#allocation42_spill] sm:$0xff] }
 0x7cb   :  { %v5883_v62 = vld [vmem:[#allocation22_spill] sm:$0xff] }
 0x7cc   :  { %2574 = vmatmul.f32.vlgmr.msra.gmra.mxu0 %v2553_v19  ;;  %2594 = vmatmul.f32.vlgmr.msrb.gmra.mxu1 %v2553_v19 }
 0x7cd   :  { %2614 = vmatmul.f32.vlgmr.msrb.gmra.mxu2 %v2553_v19  ;;  %2634 = vmatmul.f32.vlgmr.msrb.gmra.mxu3 %v2553_v19  ;;  %v5323_v19 = vld [vmem:[#allocation9 + $0x38] sm:$0xff] }
 0x7ce   :  { %2764 = vmatpush.msra.mxu0 %v5068_v24  ;;  %2784 = vmatpush.msrb.mxu1 %v5071_v4  ;;  %5884 = vst [vmem:[#allocation48_spill] sm:$0xff] %v5323_v19 }
 0x7cf   :  { %2804 = vmatpush.msrb.mxu2 %v5074_v32  ;;  %2824 = vmatpush.msrb.mxu3 %v5077_v25 }
 0x7d0   :  { %2765 = vmatpush.msra.mxu0 %v5080_v33  ;;  %2785 = vmatpush.msrb.mxu1 %v5083_v40 }
 0x7d1   :  { %2805 = vmatpush.msrb.mxu2 %v5086_v14  ;;  %2825 = vmatpush.msrb.mxu3 %v5089_v15 }
 0x7d2   :  { %2766 = vmatpush.msra.mxu0 %v5092_v16  ;;  %2786 = vmatpush.msrb.mxu1 %v5095_v43 }
 0x7d3   :  { %2806 = vmatpush.msrb.mxu2 %v5098_v46  ;;  %2826 = vmatpush.msrb.mxu3 %v5101_v47 }
 0x7d4   :  { %2767 = vmatpush.msra.mxu0 %v5104_v49  ;;  %2787 = vmatpush.msrb.mxu1 %v5107_v50 }
 0x7d5   :  { %2807 = vmatpush.msrb.mxu2 %v5110_v13  ;;  %2827 = vmatpush.msrb.mxu3 %v5113_v52 }
 0x7d6   :  { %2768 = vmatpush.msra.mxu0 %v5116_v53  ;;  %2788 = vmatpush.msrb.mxu1 %v5119_v54 }
 0x7d7   :  { %2808 = vmatpush.msrb.mxu2 %v5122_v55  ;;  %2828 = vmatpush.msrb.mxu3 %v5125_v56 }
 0x7d8   :  { %2769 = vmatpush.msra.mxu0 %v5128_v58  ;;  %2789 = vmatpush.msrb.mxu1 %v5131_v28 }
 0x7d9   :  { %2809 = vmatpush.msrb.mxu2 %v5134_v60  ;;  %2829 = vmatpush.msrb.mxu3 %v5137_v63 }
 0x7da   :  { %2770 = vmatpush.msra.mxu0 %v5140_v29  ;;  %2790 = vmatpush.msrb.mxu1 %v5143_v17 }
 0x7db   :  { %2810 = vmatpush.msrb.mxu2 %v5146_v0  ;;  %2830 = vmatpush.msrb.mxu3 %v5149_v48 }
 0x7dc   :  { %2771 = vmatpush.msra.mxu0 %v5152_v1  ;;  %2791 = vmatpush.msrb.mxu1 %v5155_v2 }
 0x7dd   :  { %2811 = vmatpush.msrb.mxu2 %v5158_v42  ;;  %2831 = vmatpush.msrb.mxu3 %v5161_v7 }
 0x7de   :  { %2772 = vmatpush.msra.mxu0 %v5164_v18  ;;  %2792 = vmatpush.msrb.mxu1 %v5167_v9 }
 0x7df   :  { %2812 = vmatpush.msrb.mxu2 %v5170_v44  ;;  %2832 = vmatpush.msrb.mxu3 %v5173_v27 }
 0x7e0   :  { %2773 = vmatpush.msra.mxu0 %v5176_v31  ;;  %2793 = vmatpush.msrb.mxu1 %v5179_v8 }
 0x7e1   :  { %2813 = vmatpush.msrb.mxu2 %v5182_v30  ;;  %2833 = vmatpush.msrb.mxu3 %v5185_v23 }
 0x7e2   :  { %2774 = vmatpush.msra.mxu0 %v5188_v34  ;;  %2794 = vmatpush.msrb.mxu1 %v5191_v36 }
 0x7e3   :  { %2814 = vmatpush.msrb.mxu2 %v5867_v3  ;;  %2834 = vmatpush.msrb.mxu3 %v5868_v39 }
 0x7e4   :  { %2775 = vmatpush.msra.mxu0 %v5869_v37  ;;  %2795 = vmatpush.msrb.mxu1 %v5870_v20  ;;  %v5893_v20 = vld [vmem:[#allocation31_spill] sm:$0xff] }
 0x7e5   :  { %2815 = vmatpush.msrb.mxu2 %v5871_v22  ;;  %2835 = vmatpush.msrb.mxu3 %v5872_v10  ;;  %v5892_v22 = vld [vmem:[#allocation18_spill] sm:$0xff] }
 0x7e6   :  { %2776 = vmatpush.msra.mxu0 %v5873_v11  ;;  %2796 = vmatpush.msrb.mxu1 %v5874_v6  ;;  %v5891_v11 = vld [vmem:[#allocation68_spill] sm:$0xff] }
 0x7e7   :  { %2816 = vmatpush.msrb.mxu2 %v5875_v45  ;;  %2836 = vmatpush.msrb.mxu3 %v5876_v12  ;;  %v5326_v12 = vld [vmem:[#allocation9] sm:$0xff]  ;;  %v5890_v45 = vld [vmem:[#allocation30_spill] sm:$0xff] }
 0x7e8   :  { %2777 = vmatpush.msra.mxu0 %v5877_v5  ;;  %2797 = vmatpush.msrb.mxu1 %v5878_v51  ;;  %5885 = vst [vmem:[#allocation45_spill] sm:$0xff] %v5326_v12  ;;  %v5329_v51 = vld [vmem:[#allocation9 + $0x8] sm:$0xff] }
 0x7e9   :  { %2817 = vmatpush.msrb.mxu2 %v5879_v57  ;;  %2837 = vmatpush.msrb.mxu3 %v5317_v61  ;;  %5886 = vst [vmem:[#allocation46_spill] sm:$0xff] %v5329_v51  ;;  %v5887_v57 = vld [vmem:[#allocation41_spill] sm:$0xff]  ;;  %v5333_v61 = vld [vmem:[#allocation9 + $0x18] sm:$0xff] }
 0x7ea   :  { %2778 = vmatpush.msra.mxu0 %v5881_v26  ;;  %2798 = vmatpush.msrb.mxu1 %v5882_v38  ;;  %5888 = vst [vmem:[#allocation44_spill] sm:$0xff] %v5333_v61  ;;  %v5889_v26 = vld [vmem:[#allocation29_spill] sm:$0xff] }
 0x7eb   :  { %2818 = vmatpush.msrb.mxu2 %v5883_v62  ;;  %2838 = vmatpush.msrb.mxu3 %v5323_v19 }
 0x7ec   :  { %2779 = vmatpush.msra.mxu0 %v5326_v12  ;;  %2799 = vmatpush.msrb.mxu1 %v5329_v51 }
 0x7ed   :  { %2819 = vmatpush.msrb.mxu2 %v5887_v57  ;;  %2839 = vmatpush.msrb.mxu3 %v5333_v61 }
 0x849   :  { %v2575_v38 = vpop.f32.mrf.mxu0  ;;  %v2595_v62 = vpop.f32.mrf.mxu1 }
 0x84a   :  { %v2576_v5 = vadd.f32 %v2575_v38, %v5889_v26  ;;  %v2596_v19 = vadd.f32 %v2595_v62, %v5890_v45 }
 0x84c   :  { %v2638_v6 = vadd.f32 %v2576_v5, %v5815_v59  ;;  %v2639_v12 = vadd.f32 %v2596_v19, %v5891_v11 }
 0x84e   :  { %3204 = vtanh.f32 %v2638_v6 }
 0x84f   :  { %3206 = vtanh.f32 %v2639_v12 }
 0x850   :  { %v2615_v10 = vpop.f32.mrf.mxu2  ;;  %v2635_v51 = vpop.f32.mrf.mxu3 }
 0x851   :  { %v2616_v57 = vadd.f32 %v2615_v10, %v5892_v22  ;;  %v2636_v37 = vadd.f32 %v2635_v51, %v5893_v20 }
 0x853   :  { %v2640_v61 = vadd.f32 %v2616_v57, %v4907_v41  ;;  %v2641_v3 = vadd.f32 %v2636_v37, %v4909_v21 }
 0x854   :  { %v3205_v39 = vpop.eup %3204 }
 0x855   :  { %v3207_v26 = vpop.eup %3206  ;;  %3208 = vtanh.f32 %v2640_v61  ;;  %v2646_v45 = vadd.f32 1.0, %v3205_v39 }
 0x856   :  { %v2648_v38 = vadd.f32 1.0, %v3207_v26  ;;  %3210 = vtanh.f32 %v2641_v3 }
 0x857   :  { %v2647_v62 = vmul.f32 0.5, %v2646_v45 }
 0x858   :  { %v2649_v5 = vmul.f32 0.5, %v2648_v38 }
 0x85a   :  { %v2652_v12 = vmul.f32 %v2649_v5, %v5259_v35 }
 0x85b   :  { %v3209_v6 = vpop.eup %3208 }
 0x85c   :  { %v2653_v19 = vmul.f32 %v3209_v6, %v2647_v62  ;;  %v3211_v11 = vpop.eup %3210 }
 0x85d   :  { %v2650_v20 = vadd.f32 1.0, %v3211_v11 }
 0x85e   :  { %v5345_v22 = vadd.f32 %v2653_v19, %v2652_v12 }
 0x85f   :  { %v2651_v10 = vmul.f32 0.5, %v2650_v20  ;;  %v5921_v20 = vld [vmem:[#allocation63_spill] sm:$0xff] }
 0x860   :  { %3212 = vtanh.f32 %v5345_v22 }
 0x866   :  { %v3213_v51 = vpop.eup %3212 }
 0x867   :  { %v2656_v37 = vmul.f32 %v3213_v51, %v2651_v10  ;;  %v5922_v51 = vld [vmem:[#allocation19_spill] sm:$0xff] }
 0x869   :  { %2677 = vmatmul.f32.vlgmr.msrb.gmra.mxu0 %v2656_v37  ;;  %2697 = vmatmul.f32.vlgmr.msra.gmra.mxu1 %v2656_v37 }
 0x86a   :  { %2717 = vmatmul.f32.vlgmr.msra.gmra.mxu2 %v2656_v37  ;;  %2737 = vmatmul.f32.vlgmr.msra.gmra.mxu3 %v2656_v37 }
 0x86b   :  { %2867 = vmatpush.msrb.mxu0 %v5068_v24  ;;  %2887 = vmatpush.msra.mxu1 %v5071_v4  ;;  %v5894_v24 = vld [vmem:[#allocation56_spill] sm:$0xff]  ;;  %v5895_v4 = vld [vmem:[#allocation57_spill] sm:$0xff] }
 0x86c   :  { %2907 = vmatpush.msra.mxu2 %v5074_v32  ;;  %2927 = vmatpush.msra.mxu3 %v5077_v25  ;;  %v5896_v32 = vld [vmem:[#allocation67_spill] sm:$0xff]  ;;  %v5897_v25 = vld [vmem:[#allocation58_spill] sm:$0xff] }
 0x86d   :  { %2868 = vmatpush.msrb.mxu0 %v5080_v33  ;;  %2888 = vmatpush.msra.mxu1 %v5083_v40  ;;  %v5898_v33 = vld [vmem:[#allocation60_spill] sm:$0xff]  ;;  %v5899_v40 = vld [vmem:[#allocation39_spill] sm:$0xff] }
 0x86e   :  { %2908 = vmatpush.msra.mxu2 %v5086_v14  ;;  %2928 = vmatpush.msra.mxu3 %v5089_v15  ;;  %v5900_v14 = vld [vmem:[#allocation51_spill] sm:$0xff] }
 0x86f   :  { %2869 = vmatpush.msrb.mxu0 %v5092_v16  ;;  %2889 = vmatpush.msra.mxu1 %v5095_v43  ;;  %v5901_v15 = vld [vmem:[#allocation43_spill] sm:$0xff]  ;;  %v5903_v43 = vld [vmem:[#allocation40_spill] sm:$0xff] }
 0x870   :  { %2909 = vmatpush.msra.mxu2 %v5098_v46  ;;  %2929 = vmatpush.msra.mxu3 %v5101_v47  ;;  %v5902_v16 = vld [vmem:[#allocation47_spill] sm:$0xff]  ;;  %v5904_v46 = vld [vmem:[#allocation20_spill] sm:$0xff] }
 0x871   :  { %2870 = vmatpush.msrb.mxu0 %v5104_v49  ;;  %2890 = vmatpush.msra.mxu1 %v5107_v50  ;;  %v5905_v47 = vld [vmem:[#allocation59_spill] sm:$0xff]  ;;  %v5906_v49 = vld [vmem:[#allocation24_spill] sm:$0xff]  ;;  %v5907_v50 = vld [vmem:[#allocation21_spill] sm:$0xff] }
 0x872   :  { %2910 = vmatpush.msra.mxu2 %v5110_v13  ;;  %2930 = vmatpush.msra.mxu3 %v5113_v52  ;;  %v5908_v13 = vld [vmem:[#allocation55_spill] sm:$0xff]  ;;  %v5909_v52 = vld [vmem:[#allocation42_spill] sm:$0xff] }
 0x873   :  { %2871 = vmatpush.msrb.mxu0 %v5116_v53  ;;  %2891 = vmatpush.msra.mxu1 %v5119_v54  ;;  %v5910_v53 = vld [vmem:[#allocation22_spill] sm:$0xff]  ;;  %v5911_v54 = vld [vmem:[#allocation48_spill] sm:$0xff] }
 0x874   :  { %2911 = vmatpush.msra.mxu2 %v5122_v55  ;;  %2931 = vmatpush.msra.mxu3 %v5125_v56  ;;  %v5912_v55 = vld [vmem:[#allocation45_spill] sm:$0xff]  ;;  %v5913_v56 = vld [vmem:[#allocation46_spill] sm:$0xff] }
 0x875   :  { %2872 = vmatpush.msrb.mxu0 %v5128_v58  ;;  %2892 = vmatpush.msra.mxu1 %v5131_v28  ;;  %v5914_v58 = vld [vmem:[#allocation41_spill] sm:$0xff]  ;;  %v5915_v28 = vld [vmem:[#allocation44_spill] sm:$0xff] }
 0x876   :  { %2912 = vmatpush.msra.mxu2 %v5134_v60  ;;  %2932 = vmatpush.msra.mxu3 %v5137_v63 }
 0x877   :  { %2873 = vmatpush.msrb.mxu0 %v5140_v29  ;;  %2893 = vmatpush.msra.mxu1 %v5143_v17  ;;  %v5916_v29 = vld [vmem:[#allocation32_spill] sm:$0xff] }
 0x878   :  { %2913 = vmatpush.msra.mxu2 %v5146_v0  ;;  %2933 = vmatpush.msra.mxu3 %v5149_v48  ;;  %v5917_v0 = vld [vmem:[#allocation33_spill] sm:$0xff] }
 0x879   :  { %2874 = vmatpush.msrb.mxu0 %v5152_v1  ;;  %2894 = vmatpush.msra.mxu1 %v5155_v2  ;;  %v5918_v2 = vld [vmem:[#allocation68_spill] sm:$0xff] }
 0x87a   :  { %2914 = vmatpush.msra.mxu2 %v5158_v42  ;;  %2934 = vmatpush.msra.mxu3 %v5161_v7 }
 0x87b   :  { %2875 = vmatpush.msrb.mxu0 %v5164_v18  ;;  %2895 = vmatpush.msra.mxu1 %v5167_v9  ;;  %v5919_v9 = vld [vmem:[#allocation37_spill] sm:$0xff] }
 0x87c   :  { %2915 = vmatpush.msra.mxu2 %v5170_v44  ;;  %2935 = vmatpush.msra.mxu3 %v5173_v27  ;;  %v5920_v27 = vld [vmem:[#allocation38_spill] sm:$0xff] }
 0x87d   :  { %2876 = vmatpush.msrb.mxu0 %v5176_v31  ;;  %2896 = vmatpush.msra.mxu1 %v5179_v8 }
 0x87e   :  { %2916 = vmatpush.msra.mxu2 %v5182_v30  ;;  %2936 = vmatpush.msra.mxu3 %v5185_v23 }
 0x87f   :  { %2877 = vmatpush.msrb.mxu0 %v5188_v34  ;;  %2897 = vmatpush.msra.mxu1 %v5191_v36 }
 0x880   :  { %2917 = vmatpush.msra.mxu2 %v5894_v24  ;;  %2937 = vmatpush.msra.mxu3 %v5895_v4 }
 0x881   :  { %2878 = vmatpush.msrb.mxu0 %v5896_v32  ;;  %2898 = vmatpush.msra.mxu1 %v5897_v25  ;;  %v5923_v25 = vld [vmem:[#allocation34_spill] sm:$0xff] }
 0x882   :  { %2918 = vmatpush.msra.mxu2 %v5898_v33  ;;  %2938 = vmatpush.msra.mxu3 %v5899_v40  ;;  %v5924_v40 = vld [vmem:[#allocation35_spill] sm:$0xff] }
 0x883   :  { %2879 = vmatpush.msrb.mxu0 %v5900_v14  ;;  %2899 = vmatpush.msra.mxu1 %v5901_v15 }
 0x884   :  { %2919 = vmatpush.msra.mxu2 %v5902_v16  ;;  %2939 = vmatpush.msra.mxu3 %v5903_v43 }
 0x885   :  { %2880 = vmatpush.msrb.mxu0 %v5904_v46  ;;  %2900 = vmatpush.msra.mxu1 %v5905_v47 }
 0x886   :  { %2920 = vmatpush.msra.mxu2 %v5906_v49  ;;  %2940 = vmatpush.msra.mxu3 %v5907_v50 }
 0x887   :  { %2881 = vmatpush.msrb.mxu0 %v5908_v13  ;;  %2901 = vmatpush.msra.mxu1 %v5909_v52 }
 0x888   :  { %2921 = vmatpush.msra.mxu2 %v5910_v53  ;;  %2941 = vmatpush.msra.mxu3 %v5911_v54 }
 0x889   :  { %2882 = vmatpush.msrb.mxu0 %v5912_v55  ;;  %2902 = vmatpush.msra.mxu1 %v5913_v56 }
 0x88a   :  { %2922 = vmatpush.msra.mxu2 %v5914_v58  ;;  %2942 = vmatpush.msra.mxu3 %v5915_v28 }
 0x8e6   :  { %v2678_v60 = vpop.f32.mrf.mxu0  ;;  %v2698_v63 = vpop.f32.mrf.mxu1 }
 0x8e7   :  { %v2679_v17 = vadd.f32 %v2678_v60, %v5916_v29  ;;  %v2699_v48 = vadd.f32 %v2698_v63, %v5917_v0  ;;  %v2981_v29 = vld [vmem:[#allocation10 + $0x78] sm:$0xff]  ;;  %v2979_v0 = vld [vmem:[#allocation10 + $0x68] sm:$0xff] }
 0x8e9   :  { %v2741_v1 = vadd.f32 %v2679_v17, %v5815_v59  ;;  %v2742_v42 = vadd.f32 %v2699_v48, %v5918_v2  ;;  %v2980_v17 = vld [vmem:[#allocation10 + $0x70] sm:$0xff]  ;;  %v2978_v48 = vld [vmem:[#allocation10 + $0x60] sm:$0xff] }
 0x8eb   :  { %3214 = vtanh.f32 %v2741_v1  ;;  %v2977_v1 = vld [vmem:[#allocation10 + $0x58] sm:$0xff] }
 0x8ec   :  { %3216 = vtanh.f32 %v2742_v42  ;;  %v2976_v42 = vld [vmem:[#allocation10 + $0x50] sm:$0xff] }
 0x8ed   :  { %v2718_v7 = vpop.f32.mrf.mxu2  ;;  %v2738_v18 = vpop.f32.mrf.mxu3 }
 0x8ee   :  { %v2719_v44 = vadd.f32 %v2718_v7, %v5919_v9  ;;  %v2739_v31 = vadd.f32 %v2738_v18, %v5920_v27  ;;  %v2975_v7 = vld [vmem:[#allocation10 + $0x48] sm:$0xff]  ;;  %v2974_v18 = vld [vmem:[#allocation10 + $0x40] sm:$0xff]  ;;  %v2973_v9 = vld [vmem:[#allocation10 + $0x38] sm:$0xff] }
 0x8ef   :  { %v2971_v27 = vld [vmem:[#allocation10 + $0x28] sm:$0xff] }
 0x8f0   :  { %v2743_v8 = vadd.f32 %v2719_v44, %v4907_v41  ;;  %v2744_v23 = vadd.f32 %v2739_v31, %v4909_v21  ;;  %v2972_v44 = vld [vmem:[#allocation10 + $0x30] sm:$0xff]  ;;  %v2970_v31 = vld [vmem:[#allocation10 + $0x20] sm:$0xff] }
 0x8f1   :  { %v3215_v30 = vpop.eup %3214 }
 0x8f2   :  { %v3217_v34 = vpop.eup %3216  ;;  %3218 = vtanh.f32 %v2743_v8  ;;  %v2749_v36 = vadd.f32 1.0, %v3215_v30  ;;  %v2969_v8 = vld [vmem:[#allocation10 + $0x18] sm:$0xff]  ;;  %v2968_v30 = vld [vmem:[#allocation10 + $0x10] sm:$0xff] }
 0x8f3   :  { %v2751_v35 = vadd.f32 1.0, %v3217_v34  ;;  %3220 = vtanh.f32 %v2744_v23  ;;  %v2967_v23 = vld [vmem:[#allocation10 + $0x8] sm:$0xff]  ;;  %v2966_v34 = vld [vmem:[#allocation10] sm:$0xff] }
 0x8f4   :  { %v2750_v39 = vmul.f32 0.5, %v2749_v36 }
 0x8f5   :  { %v2752_v3 = vmul.f32 0.5, %v2751_v35 }
 0x8f7   :  { %v2755_v57 = vmul.f32 %v2752_v3, %v5345_v22  ;;  %v5925_v3 = vld [vmem:[#allocation36_spill] sm:$0xff] }
 0x8f8   :  { %v3219_v11 = vpop.eup %3218 }
 0x8f9   :  { %v2756_v61 = vmul.f32 %v3219_v11, %v2750_v39  ;;  %v3221_v26 = vpop.eup %3220  ;;  %v5926_v11 = vld [vmem:[#allocation64_spill] sm:$0xff] }
 0x8fa   :  { %v2753_v38 = vadd.f32 1.0, %v3221_v26 }
 0x8fb   :  { %v2757_v45 = vadd.f32 %v2756_v61, %v2755_v57 }
 0x8fc   :  { %v2754_v5 = vmul.f32 0.5, %v2753_v38 }
 0x8fd   :  { %3222 = vtanh.f32 %v2757_v45 }
 0x903   :  { %v3223_v62 = vpop.eup %3222 }
 0x904   :  { %v2759_v6 = vmul.f32 %v3223_v62, %v2754_v5  ;;  %v5927_v5 = vld [vmem:[#allocation65_spill] sm:$0xff] }
 0x906   :  { %2780 = vmatmul.f32.vlgmr.msra.gmra.mxu0 %v2759_v6  ;;  %2800 = vmatmul.f32.vlgmr.msrb.gmra.mxu1 %v2759_v6 }
 0x907   :  { %2820 = vmatmul.f32.vlgmr.msrb.gmra.mxu2 %v2759_v6  ;;  %2840 = vmatmul.f32.vlgmr.msrb.gmra.mxu3 %v2759_v6  ;;  %v5928_v6 = vld [vmem:[#allocation66_spill] sm:$0xff] }
 0x908   :  { %2986 = vmatpush.msra.mxu0 %v2981_v29 }
 0x90a   :  { %2987 = vmatpush.msra.mxu0 %v2980_v17 }
 0x90c   :  { %2988 = vmatpush.msra.mxu0 %v2979_v0 }
 0x90e   :  { %2989 = vmatpush.msra.mxu0 %v2978_v48 }
 0x910   :  { %2990 = vmatpush.msra.mxu0 %v2977_v1 }
 0x912   :  { %2991 = vmatpush.msra.mxu0 %v2976_v42 }
 0x914   :  { %2992 = vmatpush.msra.mxu0 %v2975_v7 }
 0x916   :  { %2993 = vmatpush.msra.mxu0 %v2974_v18 }
 0x918   :  { %2994 = vmatpush.msra.mxu0 %v2973_v9 }
 0x91a   :  { %2995 = vmatpush.msra.mxu0 %v2972_v44 }
 0x91c   :  { %2996 = vmatpush.msra.mxu0 %v2971_v27 }
 0x91e   :  { %2997 = vmatpush.msra.mxu0 %v2970_v31 }
 0x920   :  { %2998 = vmatpush.msra.mxu0 %v2969_v8 }
 0x922   :  { %2999 = vmatpush.msra.mxu0 %v2968_v30 }
 0x924   :  { %3000 = vmatpush.msra.mxu0 %v2967_v23 }
 0x926   :  { %3001 = vmatpush.msra.mxu0 %v2966_v34 }
 0x983   :  { %v2781_v12 = vpop.f32.mrf.mxu0  ;;  %v2801_v19 = vpop.f32.mrf.mxu1 }
 0x984   :  { %v2782_v10 = vadd.f32 %v2781_v12, %v5921_v20  ;;  %v2802_v37 = vadd.f32 %v2801_v19, %v5922_v51 }
 0x986   :  { %v2844_v22 = vadd.f32 %v2782_v10, %v5815_v59  ;;  %v2845_v24 = vadd.f32 %v2802_v37, %v5918_v2 }
 0x988   :  { %3224 = vtanh.f32 %v2844_v22 }
 0x989   :  { %3226 = vtanh.f32 %v2845_v24 }
 0x98a   :  { %v2821_v4 = vpop.f32.mrf.mxu2  ;;  %v2841_v32 = vpop.f32.mrf.mxu3 }
 0x98b   :  { %v2822_v33 = vadd.f32 %v2821_v4, %v5923_v25  ;;  %v2842_v14 = vadd.f32 %v2841_v32, %v5924_v40 }
 0x98d   :  { %v2846_v15 = vadd.f32 %v2822_v33, %v4907_v41  ;;  %v2847_v43 = vadd.f32 %v2842_v14, %v4909_v21 }
 0x98e   :  { %v3225_v16 = vpop.eup %3224 }
 0x98f   :  { %v3227_v46 = vpop.eup %3226  ;;  %3228 = vtanh.f32 %v2846_v15  ;;  %v2852_v47 = vadd.f32 1.0, %v3225_v16 }
 0x990   :  { %v2854_v49 = vadd.f32 1.0, %v3227_v46  ;;  %3230 = vtanh.f32 %v2847_v43 }
 0x991   :  { %v2853_v13 = vmul.f32 0.5, %v2852_v47 }
 0x992   :  { %v2855_v50 = vmul.f32 0.5, %v2854_v49 }
 0x994   :  { %v2858_v53 = vmul.f32 %v2855_v50, %v2757_v45 }
 0x995   :  { %v3229_v52 = vpop.eup %3228 }
 0x996   :  { %v2859_v54 = vmul.f32 %v3229_v52, %v2853_v13  ;;  %v3231_v55 = vpop.eup %3230 }
 0x997   :  { %v2856_v58 = vadd.f32 1.0, %v3231_v55 }
 0x998   :  { %v5429_v56 = vadd.f32 %v2859_v54, %v2858_v53 }
 0x999   :  { %v2857_v28 = vmul.f32 0.5, %v2856_v58 }
 0x99a   :  { %3232 = vtanh.f32 %v5429_v56 }
 0x9a0   :  { %v3233_v60 = vpop.eup %3232 }
 0x9a1   :  { %v2862_v63 = vmul.f32 %v3233_v60, %v2857_v28 }
 0x9a3   :  { %2883 = vmatmul.f32.vlgmr.msrb.gmra.mxu0 %v2862_v63  ;;  %2903 = vmatmul.f32.vlgmr.msra.gmra.mxu1 %v2862_v63 }
 0x9a4   :  { %2923 = vmatmul.f32.vlgmr.msra.gmra.mxu2 %v2862_v63  ;;  %2943 = vmatmul.f32.vlgmr.msra.gmra.mxu3 %v2862_v63 }
 0xa20   :  { %v2884_v36 = vpop.f32.mrf.mxu0  ;;  %v2904_v35 = vpop.f32.mrf.mxu1 }
 0xa21   :  { %v2885_v39 = vadd.f32 %v2884_v36, %v5925_v3  ;;  %v2905_v57 = vadd.f32 %v2904_v35, %v5926_v11 }
 0xa23   :  { %v2947_v61 = vadd.f32 %v2885_v39, %v5815_v59  ;;  %v2948_v26 = vadd.f32 %v2905_v57, %v5918_v2 }
 0xa25   :  { %3234 = vtanh.f32 %v2947_v61 }
 0xa26   :  { %3236 = vtanh.f32 %v2948_v26 }
 0xa27   :  { %v2924_v45 = vpop.f32.mrf.mxu2  ;;  %v2944_v38 = vpop.f32.mrf.mxu3 }
 0xa28   :  { %v2925_v62 = vadd.f32 %v2924_v45, %v5927_v5  ;;  %v2945_v12 = vadd.f32 %v2944_v38, %v5928_v6 }
 0xa2a   :  { %v2949_v19 = vadd.f32 %v2925_v62, %v4907_v41  ;;  %v2950_v10 = vadd.f32 %v2945_v12, %v4909_v21  ;;  %v3083_v21 = vld [vmem:[%s5455_s8] ss:$0 sm:$0xff] }
 0xa2b   :  { %v3235_v20 = vpop.eup %3234 }
 0xa2c   :  { %v3237_v51 = vpop.eup %3236  ;;  %3238 = vtanh.f32 %v2949_v19  ;;  %v2955_v37 = vadd.f32 1.0, %v3235_v20 }
 0xa2d   :  { %v2957_v22 = vadd.f32 1.0, %v3237_v51  ;;  %3240 = vtanh.f32 %v2950_v10 }
 0xa2e   :  { %v2956_v2 = vmul.f32 0.5, %v2955_v37 }
 0xa2f   :  { %v2958_v59 = vmul.f32 0.5, %v2957_v22 }
 0xa31   :  { %v2961_v4 = vmul.f32 %v2958_v59, %v5429_v56 }
 0xa32   :  { %v3239_v24 = vpop.eup %3238 }
 0xa33   :  { %v2962_v32 = vmul.f32 %v3239_v24, %v2956_v2  ;;  %v3241_v25 = vpop.eup %3240 }
 0xa34   :  { %v2959_v40 = vadd.f32 1.0, %v3241_v25 }
 0xa35   :  { %v2963_v33 = vadd.f32 %v2962_v32, %v2961_v4 }
 0xa36   :  { %v2960_v14 = vmul.f32 0.5, %v2959_v40 }
 0xa37   :  { %3242 = vtanh.f32 %v2963_v33 }
 0xa3d   :  { %v3243_v41 = vpop.eup %3242 }
 0xa3e   :  { %v2965_v15 = vmul.f32 %v3243_v41, %v2960_v14 }
 0xa40   :  { %3002 = vmatmul.f32.vlgmr.msra.gmra.mxu0 %v2965_v15 }
 0xabd   :  { %v3003_v16 = vpop.f32.mrf.mxu0 }
 0xabe   :  { %v3004_v43 = vadd.f32 %v3083_v21, %v3003_v16 }
 0xac0   :  { %v3006_v46 = vmax.f32 %v3004_v43, 0.0 }
 0xac2   :  { %3007 = vst [vmem:[#allocation12] sm:$0xff] %v3006_v46 }
 0xac3   :  { %3018 = dma.vmem_to_hbm [thread:$0]  %s3014_s19, 128, %s3016_s22, [#allocation6]  }
 0xac4   :  { %3434 = dma.done.wait [#allocation6], 128  }
 0xac5   :  { %3435 = vsyncadd [#allocation6], 4294967168 }
 0xac6   :  { %3023 = vsyncpa [#allocation5], 1 }
 0xac7   :  { %3024 = vsyncpa [#allocation8], 1 }
 0xac8   :  { %3025 = vsyncpa [#allocation11], 1 }
 0xac9   :  { %3026 = vsyncpa [#allocation6], 1 }

</bundles_post_ra>
